<compile_context>
chip_gen: v5e
topology: v5e:2x2
jax: 0.10.0
libtpu: 0.0.40
codegen_flags: <defaults>
</compile_context>

<pallas_src>
import functools

import jax
import jax.numpy as jnp
from jax.experimental import pallas as pl
from jax.experimental.pallas import tpu as pltpu


# ----------------------------------------------------------------------------
# Pallas kernel: nb batch elements per grid step, everything fused.
# ----------------------------------------------------------------------------
def _inception_resnet_b_kernel(
    x_ref,                         # (nb, H*W, C)                 f32
    w1_ref, b1_ref,                # (C, nf0) bf16, (1, nf0)      f32
    wa_ref, ba_ref,                # (C, nf1) bf16, (1, nf1)      f32
    w7w_ref, b7w_ref,              # (7, nf1, nf2) bf16, (1, nf2) f32
    w7h_ref, b7h_ref,              # (7, nf2, nf3) bf16, (1, nf3) f32
    wup1_ref, wup2_ref, bup_ref,   # (nf0, C) bf16, (nf3, C) bf16, (1, C) f32
    out_ref,                       # (nb, H*W, C)                 f32
    padw_ref,                      # scratch (nb, H, W+16, nf1)   bf16
    padh_ref,                      # scratch (nb, H+6, W, nf2)    bf16
    *,
    scale,
    H,
    W,
):
    nb, HW, C = x_ref.shape
    nf1 = wa_ref.shape[1]
    nf2 = w7w_ref.shape[2]
    nf3 = w7h_ref.shape[2]
    M = nb * HW
    PL = 8                         # sublane-aligned left edge of padw interior
    bf = jnp.bfloat16

    # Zero only the two 3-wide halos the 7 taps actually read; the interior is
    # fully overwritten every step.  Re-zeroed every step so correctness does
    # not depend on which core ran step 0 (parallel grid sharding).
    padw_ref[:, :, PL - 3:PL, :] = jnp.zeros((nb, H, 3, nf1), bf)
    padw_ref[:, :, PL + W:PL + W + 3, :] = jnp.zeros((nb, H, 3, nf1), bf)
    padh_ref[:, 0:3, :, :] = jnp.zeros((nb, 3, W, nf2), bf)
    padh_ref[:, 3 + H:6 + H, :, :] = jnp.zeros((nb, 3, W, nf2), bf)

    xb = x_ref[...].reshape(M, C).astype(bf)        # bf16 MXU operand

    # ---- both 1x1 convs on x are adjacent (xb's live range ends here) ------
    ta = jnp.maximum(
        jnp.dot(xb, wa_ref[...], preferred_element_type=jnp.float32)
        + ba_ref[...], 0.0)                          # (M, nf1) f32
    b1 = jnp.maximum(
        jnp.dot(xb, w1_ref[...], preferred_element_type=jnp.float32)
        + b1_ref[...], 0.0).astype(bf)               # (M, nf0) bf16

    # Interior store at sublane offset 8 -> unmasked full-sublane stores.
    padw_ref[:, :, PL:PL + W, :] = ta.astype(bf).reshape(nb, H, W, nf1)

    # ---- (1,7) conv along W: 7 per-tap MXU matmuls, one f32 accumulator ----
    acc = jnp.zeros((M, nf2), jnp.float32)
    for kw in range(7):
        off = PL - 3 + kw
        sl = padw_ref[:, :, off:off + W, :].reshape(M, nf1)
        acc = acc + jnp.dot(sl, w7w_ref[kw],
                            preferred_element_type=jnp.float32)
    tb = jnp.maximum(acc + b7w_ref[...], 0.0)        # (M, nf2) f32

    padh_ref[:, 3:3 + H, :, :] = tb.astype(bf).reshape(nb, H, W, nf2)

    # ---- (7,1) conv along H: taps slice a major dim (no sublane cut) -------
    acc = jnp.zeros((M, nf3), jnp.float32)
    for kh in range(7):
        sl = padh_ref[:, kh:kh + H, :, :].reshape(M, nf2)
        acc = acc + jnp.dot(sl, w7h_ref[kh],
                            preferred_element_type=jnp.float32)
    b7 = jnp.maximum(acc + b7h_ref[...], 0.0).astype(bf)   # (M, nf3) bf16

    # ---- up_channel 1x1 on concat([b1, b7]) == split matmul ----------------
    up = (jnp.dot(b1, wup1_ref[...], preferred_element_type=jnp.float32)
          + jnp.dot(b7, wup2_ref[...], preferred_element_type=jnp.float32)
          + bup_ref[...])                            # (M, C) f32

    # ---- residual add, scale, ReLU (f32 VPU).  x is re-read here so it is
    #      not live across the whole kernel (the pipeline block is in VMEM).
    x = x_ref[...].reshape(M, C)
    out_ref[...] = jnp.maximum(up * scale + x, 0.0).reshape(
        nb, HW, C).astype(out_ref.dtype)


# ----------------------------------------------------------------------------
# Wrapper
# ----------------------------------------------------------------------------
def inception_resnet_b(x_nhwc, params, *, scale=0.1, target_rows=512):
    (w1, b1), (wa, ba), (w7w, b7w), (w7h, b7h), (wup, bup) = params
    N, H, W, C = x_nhwc.shape
    nf0, nf1 = w1.shape[1], wa.shape[1]
    nf2, nf3 = w7w.shape[2], w7h.shape[2]
    nf4 = wup.shape[1]
    assert nf4 == C, "residual add requires num_filters[4] == inchannels"
    assert w7w.shape[0] == 7 and w7h.shape[0] == 7, "kernels must be 7-tap"

    HW = H * W
    # Rows per grid step: big enough to fill the MXU M dim (~512 rows), but
    # keep >= 2 grid steps when possible so the "parallel" axis can shard
    # across v7x's two TensorCores.
    nb = max(1, min(N, -(-target_rows // HW)))
    if N >= 2:
        nb = max(1, min(nb, N // 2))
    Np = -(-N // nb) * nb
    grid = Np // nb

    x_flat = x_nhwc.reshape(N, HW, C)
    if Np != N:
        x_flat = jnp.concatenate(
            [x_flat, jnp.zeros((Np - N, HW, C), x_flat.dtype)], axis=0)

    bfd = jnp.bfloat16
    w1b = w1.astype(bfd)                        # (C, nf0)
    wab = wa.astype(bfd)                        # (C, nf1)
    w7wb = w7w.astype(bfd)                      # (7, nf1, nf2)
    w7hb = w7h.astype(bfd)                      # (7, nf2, nf3)
    wup1 = wup[:nf0, :].astype(bfd)             # (nf0, C)
    wup2 = wup[nf0:, :].astype(bfd)             # (nf3, C)
    weights = (w1b, b1, wab, ba, w7wb, b7w, w7hb, b7h, wup1, wup2, bup)

    kernel = functools.partial(
        _inception_resnet_b_kernel, scale=scale, H=H, W=W)

    # Cost estimate (MXU flops + HBM traffic) for XLA's scheduler.
    flops_per_row = 2 * (C * nf0 + C * nf1 + 7 * nf1 * nf2 + 7 * nf2 * nf3
                         + (nf0 + nf3) * nf4)
    bytes_w = sum(int(a.size) * a.dtype.itemsize for a in weights)
    cost = pl.CostEstimate(
        flops=int(flops_per_row) * int(Np) * int(HW),
        transcendentals=0,
        bytes_accessed=int(2 * Np * HW * C * 4 + bytes_w))

    # Explicit VMEM budget: in/out blocks double-buffered + weights + pad
    # scratches + f32 temporaries, clamped to v7x's 64 MiB physical VMEM.
    io_block = nb * HW * C * 4
    scratch_bytes = (nb * H * (W + 16) * nf1 * 2
                     + nb * (H + 6) * W * nf2 * 2)
    live_bytes = nb * HW * 4 * (2 * C + nf0 + nf1 + nf2 + nf3)
    vmem_limit = int(min(max(4 * io_block + 2 * bytes_w + scratch_bytes
                             + 2 * live_bytes, 32 << 20), 64 << 20))

    def run(weight_mode):
        def wspec(a):
            shape = a.shape
            if weight_mode is None:
                return pl.BlockSpec(shape, lambda n: (0,) * len(shape))
            return pl.BlockSpec(shape, lambda n: (0,) * len(shape),
                                pipeline_mode=weight_mode)

        return pl.pallas_call(
            kernel,
            out_shape=jax.ShapeDtypeStruct((Np, HW, C), x_nhwc.dtype),
            grid_spec=pltpu.PrefetchScalarGridSpec(
                num_scalar_prefetch=0,
                grid=(grid,),
                in_specs=[pl.BlockSpec((nb, HW, C), lambda n: (n, 0, 0))]
                         + [wspec(a) for a in weights],
                out_specs=pl.BlockSpec((nb, HW, C), lambda n: (n, 0, 0)),
                scratch_shapes=[
                    pltpu.VMEM((nb, H, W + 16, nf1), jnp.bfloat16),
                    pltpu.VMEM((nb, H + 6, W, nf2), jnp.bfloat16),
                ],
            ),
            compiler_params=pltpu.CompilerParams(
                dimension_semantics=("parallel",),
                vmem_limit_bytes=vmem_limit),
            cost_estimate=cost,
        )(x_flat, *weights)

    try:
        # Grid-invariant weights: single-buffer to halve their VMEM footprint.
        out_flat = run(pl.Buffered(1))
    except Exception:
        # pipeline_mode / Buffered(1) unsupported here -> default buffering.
        out_flat = run(None)

    return out_flat[:N].reshape(N, H, W, C)


# ----------------------------------------------------------------------------
# Deterministic parameter construction (conv + folded eval-mode BatchNorm)
# ----------------------------------------------------------------------------
def _conv_bn_params(key, kin, kout, taps):
    k1, k2, k3, k4, k5, k6 = jax.random.split(key, 6)
    w = 0.1 * jax.random.normal(k1, (taps, kin, kout), jnp.float32)
    b = 0.1 * jax.random.normal(k2, (kout,), jnp.float32)
    gamma = 1.0 + 0.1 * jax.random.normal(k3, (kout,), jnp.float32)
    beta = 0.1 * jax.random.normal(k4, (kout,), jnp.float32)
    mean = 0.1 * jax.random.normal(k5, (kout,), jnp.float32)
    var = jnp.abs(jax.random.normal(k6, (kout,), jnp.float32)) + 0.5
    s = gamma / jnp.sqrt(var + 1e-5)
    w_f = (w * s).astype(jnp.float32)                 # fold BN scale
    b_f = ((b - mean) * s + beta).reshape(1, kout).astype(jnp.float32)
    return w_f, b_f


def make_params(key, inchannels, num_filters):
    nf0, nf1, nf2, nf3, nf4 = num_filters
    ks = jax.random.split(key, 6)
    w1, b1 = _conv_bn_params(ks[0], inchannels, nf0, 1)
    w1 = w1[0]                                        # (C, nf0)
    wa, ba = _conv_bn_params(ks[1], inchannels, nf1, 1)
    wa = wa[0]                                        # (C, nf1)
    w7w, b7w = _conv_bn_params(ks[2], nf1, nf2, 7)    # (7, nf1, nf2)
    w7h, b7h = _conv_bn_params(ks[3], nf2, nf3, 7)    # (7, nf2, nf3)
    wup = 0.1 * jax.random.normal(ks[4], (nf0 + nf3, nf4), jnp.float32)
    bup = 0.1 * jax.random.normal(ks[5], (1, nf4), jnp.float32)
    return (w1, b1), (wa, ba), (w7w, b7w), (w7h, b7h), (wup, bup)


# ----------------------------------------------------------------------------
# Pure-JAX reference (for correctness check)
# ----------------------------------------------------------------------------
def reference_forward(x_nhwc, params, *, scale=0.1):
    (w1, b1), (wa, ba), (w7w, b7w), (w7h, b7h), (wup, bup) = params
    dn = ("NHWC", "HWIO", "NHWC")

    def conv(x, w_hwio, b):
        y = jax.lax.conv_general_dilated(
            x, w_hwio, (1, 1), "SAME", dimension_numbers=dn,
            precision=jax.lax.Precision.HIGHEST)
        return y + b.reshape(1, 1, 1, -1)

    C = x_nhwc.shape[-1]
    nf0, nf1 = w1.shape[1], wa.shape[1]
    nf2, nf3 = w7w.shape[2], w7h.shape[2]

    b1_out = jax.nn.relu(conv(x_nhwc, w1.reshape(1, 1, C, nf0), b1))
    t = jax.nn.relu(conv(x_nhwc, wa.reshape(1, 1, C, nf1), ba))
    t = jax.nn.relu(conv(t, w7w.reshape(1, 7, nf1, nf2), b7w))
    t = jax.nn.relu(conv(t, w7h.reshape(7, 1, nf2, nf3), b7h))
    cat = jnp.concatenate([b1_out, t], axis=-1)
    up = conv(cat, wup.reshape(1, 1, nf0 + nf3, -1), bup) * scale
    return jax.nn.relu(up + x_nhwc)


# ----------------------------------------------------------------------------
if __name__ == "__main__":
    key = jax.random.PRNGKey(0)
    k_x, k_p = jax.random.split(key)

    N, C, H, W = 2, 16, 8, 8
    num_filters = [8, 8, 8, 8, C]   # nf4 must equal inchannels (residual add)
    scale = 0.1

    # PyTorch-style NCHW input, transposed to NHWC for the kernel.
    x_nchw = jax.random.normal(k_x, (N, C, H, W), jnp.float32)
    x_nhwc = jnp.transpose(x_nchw, (0, 2, 3, 1))

    params = make_params(k_p, C, num_filters)

    out = inception_resnet_b(x_nhwc, params, scale=scale)
    out = jax.block_until_ready(out)

    # Reference uses the same bf16-rounded weights the kernel sees (f32 math),
    # so the only deltas are bf16 activation rounding + accumulation order.
    params_ref = tuple(
        (w.astype(jnp.bfloat16).astype(jnp.float32), b) for (w, b) in params)
    ref = reference_forward(x_nhwc, params_ref, scale=scale)

    assert out.shape == (N, H, W, C)
    err = float(jnp.max(jnp.abs(out - ref)))
    assert jnp.allclose(out, ref, rtol=2e-2, atol=2e-2), err

    print("KERNEL_OK")
</pallas_src>

<mosaic_0001>
module attributes {stable_mosaic.version = 11 : i64} {
  func.func @_inception_resnet_b_kernel(%arg0: i32, %arg1: memref<1x64x16xf32, #tpu.memory_space<vmem>>, %arg2: memref<16x8xbf16, #tpu.memory_space<vmem>>, %arg3: memref<1x8xf32, #tpu.memory_space<vmem>>, %arg4: memref<16x8xbf16, #tpu.memory_space<vmem>>, %arg5: memref<1x8xf32, #tpu.memory_space<vmem>>, %arg6: memref<7x8x8xbf16, #tpu.memory_space<vmem>>, %arg7: memref<1x8xf32, #tpu.memory_space<vmem>>, %arg8: memref<7x8x8xbf16, #tpu.memory_space<vmem>>, %arg9: memref<1x8xf32, #tpu.memory_space<vmem>>, %arg10: memref<8x16xbf16, #tpu.memory_space<vmem>>, %arg11: memref<8x16xbf16, #tpu.memory_space<vmem>>, %arg12: memref<1x16xf32, #tpu.memory_space<vmem>>, %arg13: memref<1x64x16xf32, #tpu.memory_space<vmem>>, %arg14: memref<1x8x24x8xbf16, #tpu.memory_space<vmem>>, %arg15: memref<1x14x8x8xbf16, #tpu.memory_space<vmem>>) attributes {dimension_semantics = [#tpu.dimension_semantics<parallel>], iteration_bounds = array<i64: 2>, scalar_prefetch = 0 : i64, scratch_operands = 2 : i64, tpu.core_type = #tpu.core_type<tc>, window_params = [{transform_indices = @transform_0, window_bounds = array<i64: 1, 64, 16>}, {pipeline_mode = #tpu.pipeline_mode<synchronous>, transform_indices = @transform_1, window_bounds = array<i64: 16, 8>}, {pipeline_mode = #tpu.pipeline_mode<synchronous>, transform_indices = @transform_2, window_bounds = array<i64: 1, 8>}, {pipeline_mode = #tpu.pipeline_mode<synchronous>, transform_indices = @transform_3, window_bounds = array<i64: 16, 8>}, {pipeline_mode = #tpu.pipeline_mode<synchronous>, transform_indices = @transform_4, window_bounds = array<i64: 1, 8>}, {pipeline_mode = #tpu.pipeline_mode<synchronous>, transform_indices = @transform_5, window_bounds = array<i64: 7, 8, 8>}, {pipeline_mode = #tpu.pipeline_mode<synchronous>, transform_indices = @transform_6, window_bounds = array<i64: 1, 8>}, {pipeline_mode = #tpu.pipeline_mode<synchronous>, transform_indices = @transform_7, window_bounds = array<i64: 7, 8, 8>}, {pipeline_mode = #tpu.pipeline_mode<synchronous>, transform_indices = @transform_8, window_bounds = array<i64: 1, 8>}, {pipeline_mode = #tpu.pipeline_mode<synchronous>, transform_indices = @transform_9, window_bounds = array<i64: 8, 16>}, {pipeline_mode = #tpu.pipeline_mode<synchronous>, transform_indices = @transform_10, window_bounds = array<i64: 8, 16>}, {pipeline_mode = #tpu.pipeline_mode<synchronous>, transform_indices = @transform_11, window_bounds = array<i64: 1, 16>}, {transform_indices = @transform_12, window_bounds = array<i64: 1, 64, 16>}]} {
    %cst = arith.constant 0.000000e+00 : bf16
    %0 = vector.broadcast %cst : bf16 to vector<1x8x3x8xbf16>
    %c0 = arith.constant 0 : index
    %c0_0 = arith.constant 0 : index
    %c5 = arith.constant 5 : index
    %c0_1 = arith.constant 0 : index
    %1 = vector.load %arg14[%c0, %c0_0, %c5, %c0_1] : memref<1x8x24x8xbf16, #tpu.memory_space<vmem>>, vector<1x8x3x8xbf16>
    tpu.vector_store %arg14[%c0, %c0_0, %c5, %c0_1], %0 {strides = array<i32>} : memref<1x8x24x8xbf16, #tpu.memory_space<vmem>>, vector<1x8x3x8xbf16>,
    %cst_2 = arith.constant 0.000000e+00 : bf16
    %2 = vector.broadcast %cst_2 : bf16 to vector<1x8x3x8xbf16>
    %c0_3 = arith.constant 0 : index
    %c0_4 = arith.constant 0 : index
    %c16 = arith.constant 16 : index
    %c0_5 = arith.constant 0 : index
    %3 = vector.load %arg14[%c0_3, %c0_4, %c16, %c0_5] : memref<1x8x24x8xbf16, #tpu.memory_space<vmem>>, vector<1x8x3x8xbf16>
    tpu.vector_store %arg14[%c0_3, %c0_4, %c16, %c0_5], %2 {strides = array<i32>} : memref<1x8x24x8xbf16, #tpu.memory_space<vmem>>, vector<1x8x3x8xbf16>,
    %cst_6 = arith.constant 0.000000e+00 : bf16
    %4 = vector.broadcast %cst_6 : bf16 to vector<1x3x8x8xbf16>
    %c0_7 = arith.constant 0 : index
    %c0_8 = arith.constant 0 : index
    %c0_9 = arith.constant 0 : index
    %c0_10 = arith.constant 0 : index
    %5 = vector.load %arg15[%c0_7, %c0_8, %c0_9, %c0_10] : memref<1x14x8x8xbf16, #tpu.memory_space<vmem>>, vector<1x3x8x8xbf16>
    tpu.vector_store %arg15[%c0_7, %c0_8, %c0_9, %c0_10], %4 {strides = array<i32>} : memref<1x14x8x8xbf16, #tpu.memory_space<vmem>>, vector<1x3x8x8xbf16>,
    %cst_11 = arith.constant 0.000000e+00 : bf16
    %6 = vector.broadcast %cst_11 : bf16 to vector<1x3x8x8xbf16>
    %c0_12 = arith.constant 0 : index
    %c11 = arith.constant 11 : index
    %c0_13 = arith.constant 0 : index
    %c0_14 = arith.constant 0 : index
    %7 = vector.load %arg15[%c0_12, %c11, %c0_13, %c0_14] : memref<1x14x8x8xbf16, #tpu.memory_space<vmem>>, vector<1x3x8x8xbf16>
    tpu.vector_store %arg15[%c0_12, %c11, %c0_13, %c0_14], %6 {strides = array<i32>} : memref<1x14x8x8xbf16, #tpu.memory_space<vmem>>, vector<1x3x8x8xbf16>,
    %c0_15 = arith.constant 0 : index
    %c0_16 = arith.constant 0 : index
    %c0_17 = arith.constant 0 : index
    %8 = vector.load %arg1[%c0_15, %c0_16, %c0_17] : memref<1x64x16xf32, #tpu.memory_space<vmem>>, vector<1x64x16xf32>
    %9 = vector.shape_cast %8 : vector<1x64x16xf32> to vector<64x16xf32>
    %10 = arith.truncf %9 : vector<64x16xf32> to vector<64x16xbf16>
    %c0_18 = arith.constant 0 : index
    %c0_19 = arith.constant 0 : index
    %11 = vector.load %arg4[%c0_18, %c0_19] : memref<16x8xbf16, #tpu.memory_space<vmem>>, vector<16x8xbf16>
    %cst_20 = arith.constant dense<0.000000e+00> : vector<64x8xf32>
    %12 = tpu.matmul %10, %11, %cst_20 {dimension_numbers = #tpu.dot_dimension_numbers<[1], [0], [0], [1], [0, 0, 1, 1], [], []>} : vector<64x16xbf16>, vector<16x8xbf16>, vector<64x8xf32> -> vector<64x8xf32>
    %c0_21 = arith.constant 0 : index
    %c0_22 = arith.constant 0 : index
    %13 = vector.load %arg5[%c0_21, %c0_22] : memref<1x8xf32, #tpu.memory_space<vmem>>, vector<1x8xf32>
    %14 = vector.broadcast %13 : vector<1x8xf32> to vector<64x8xf32>
    %15 = arith.addf %12, %14 : vector<64x8xf32>
    %cst_23 = arith.constant 0.000000e+00 : f32
    %16 = vector.broadcast %cst_23 : f32 to vector<64x8xf32>
    %17 = arith.maximumf %15, %16 : vector<64x8xf32>
    %c0_24 = arith.constant 0 : index
    %c0_25 = arith.constant 0 : index
    %18 = vector.load %arg2[%c0_24, %c0_25] : memref<16x8xbf16, #tpu.memory_space<vmem>>, vector<16x8xbf16>
    %cst_26 = arith.constant dense<0.000000e+00> : vector<64x8xf32>
    %19 = tpu.matmul %10, %18, %cst_26 {dimension_numbers = #tpu.dot_dimension_numbers<[1], [0], [0], [1], [0, 0, 1, 1], [], []>} : vector<64x16xbf16>, vector<16x8xbf16>, vector<64x8xf32> -> vector<64x8xf32>
    %c0_27 = arith.constant 0 : index
    %c0_28 = arith.constant 0 : index
    %20 = vector.load %arg3[%c0_27, %c0_28] : memref<1x8xf32, #tpu.memory_space<vmem>>, vector<1x8xf32>
    %21 = vector.broadcast %20 : vector<1x8xf32> to vector<64x8xf32>
    %22 = arith.addf %19, %21 : vector<64x8xf32>
    %cst_29 = arith.constant 0.000000e+00 : f32
    %23 = vector.broadcast %cst_29 : f32 to vector<64x8xf32>
    %24 = arith.maximumf %22, %23 : vector<64x8xf32>
    %25 = arith.truncf %24 : vector<64x8xf32> to vector<64x8xbf16>
    %26 = arith.truncf %17 : vector<64x8xf32> to vector<64x8xbf16>
    %27 = vector.shape_cast %26 : vector<64x8xbf16> to vector<1x8x8x8xbf16>
    %c0_30 = arith.constant 0 : index
    %c0_31 = arith.constant 0 : index
    %c8 = arith.constant 8 : index
    %c0_32 = arith.constant 0 : index
    %28 = vector.load %arg14[%c0_30, %c0_31, %c8, %c0_32] : memref<1x8x24x8xbf16, #tpu.memory_space<vmem>>, vector<1x8x8x8xbf16>
    tpu.vector_store %arg14[%c0_30, %c0_31, %c8, %c0_32], %27 {strides = array<i32>} : memref<1x8x24x8xbf16, #tpu.memory_space<vmem>>, vector<1x8x8x8xbf16>,
    %cst_33 = arith.constant 0.000000e+00 : f32
    %29 = vector.broadcast %cst_33 : f32 to vector<64x8xf32>
    %c0_34 = arith.constant 0 : index
    %c0_35 = arith.constant 0 : index
    %c5_36 = arith.constant 5 : index
    %c0_37 = arith.constant 0 : index
    %30 = vector.load %arg14[%c0_34, %c0_35, %c5_36, %c0_37] : memref<1x8x24x8xbf16, #tpu.memory_space<vmem>>, vector<1x8x8x8xbf16>
    %31 = vector.shape_cast %30 : vector<1x8x8x8xbf16> to vector<64x8xbf16>
    %c0_38 = arith.constant 0 : index
    %c0_39 = arith.constant 0 : index
    %c0_40 = arith.constant 0 : index
    %32 = vector.load %arg6[%c0_38, %c0_39, %c0_40] : memref<7x8x8xbf16, #tpu.memory_space<vmem>>, vector<1x8x8xbf16>
    %33 = vector.shape_cast %32 : vector<1x8x8xbf16> to vector<8x8xbf16>
    %cst_41 = arith.constant dense<0.000000e+00> : vector<64x8xf32>
    %34 = tpu.matmul %31, %33, %cst_41 {dimension_numbers = #tpu.dot_dimension_numbers<[1], [0], [0], [1], [0, 0, 1, 1], [], []>} : vector<64x8xbf16>, vector<8x8xbf16>, vector<64x8xf32> -> vector<64x8xf32>
    %35 = arith.addf %29, %34 : vector<64x8xf32>
    %c0_42 = arith.constant 0 : index
    %c0_43 = arith.constant 0 : index
    %c6 = arith.constant 6 : index
    %c0_44 = arith.constant 0 : index
    %36 = vector.load %arg14[%c0_42, %c0_43, %c6, %c0_44] : memref<1x8x24x8xbf16, #tpu.memory_space<vmem>>, vector<1x8x8x8xbf16>
    %37 = vector.shape_cast %36 : vector<1x8x8x8xbf16> to vector<64x8xbf16>
    %c1 = arith.constant 1 : index
    %c0_45 = arith.constant 0 : index
    %c0_46 = arith.constant 0 : index
    %38 = vector.load %arg6[%c1, %c0_45, %c0_46] : memref<7x8x8xbf16, #tpu.memory_space<vmem>>, vector<1x8x8xbf16>
    %39 = vector.shape_cast %38 : vector<1x8x8xbf16> to vector<8x8xbf16>
    %cst_47 = arith.constant dense<0.000000e+00> : vector<64x8xf32>
    %40 = tpu.matmul %37, %39, %cst_47 {dimension_numbers = #tpu.dot_dimension_numbers<[1], [0], [0], [1], [0, 0, 1, 1], [], []>} : vector<64x8xbf16>, vector<8x8xbf16>, vector<64x8xf32> -> vector<64x8xf32>
    %41 = arith.addf %35, %40 : vector<64x8xf32>
    %c0_48 = arith.constant 0 : index
    %c0_49 = arith.constant 0 : index
    %c7 = arith.constant 7 : index
    %c0_50 = arith.constant 0 : index
    %42 = vector.load %arg14[%c0_48, %c0_49, %c7, %c0_50] : memref<1x8x24x8xbf16, #tpu.memory_space<vmem>>, vector<1x8x8x8xbf16>
    %43 = vector.shape_cast %42 : vector<1x8x8x8xbf16> to vector<64x8xbf16>
    %c2 = arith.constant 2 : index
    %c0_51 = arith.constant 0 : index
    %c0_52 = arith.constant 0 : index
    %44 = vector.load %arg6[%c2, %c0_51, %c0_52] : memref<7x8x8xbf16, #tpu.memory_space<vmem>>, vector<1x8x8xbf16>
    %45 = vector.shape_cast %44 : vector<1x8x8xbf16> to vector<8x8xbf16>
    %cst_53 = arith.constant dense<0.000000e+00> : vector<64x8xf32>
    %46 = tpu.matmul %43, %45, %cst_53 {dimension_numbers = #tpu.dot_dimension_numbers<[1], [0], [0], [1], [0, 0, 1, 1], [], []>} : vector<64x8xbf16>, vector<8x8xbf16>, vector<64x8xf32> -> vector<64x8xf32>
    %47 = arith.addf %41, %46 : vector<64x8xf32>
    %c0_54 = arith.constant 0 : index
    %c0_55 = arith.constant 0 : index
    %c8_56 = arith.constant 8 : index
    %c0_57 = arith.constant 0 : index
    %48 = vector.load %arg14[%c0_54, %c0_55, %c8_56, %c0_57] : memref<1x8x24x8xbf16, #tpu.memory_space<vmem>>, vector<1x8x8x8xbf16>
    %49 = vector.shape_cast %48 : vector<1x8x8x8xbf16> to vector<64x8xbf16>
    %c3 = arith.constant 3 : index
    %c0_58 = arith.constant 0 : index
    %c0_59 = arith.constant 0 : index
    %50 = vector.load %arg6[%c3, %c0_58, %c0_59] : memref<7x8x8xbf16, #tpu.memory_space<vmem>>, vector<1x8x8xbf16>
    %51 = vector.shape_cast %50 : vector<1x8x8xbf16> to vector<8x8xbf16>
    %cst_60 = arith.constant dense<0.000000e+00> : vector<64x8xf32>
    %52 = tpu.matmul %49, %51, %cst_60 {dimension_numbers = #tpu.dot_dimension_numbers<[1], [0], [0], [1], [0, 0, 1, 1], [], []>} : vector<64x8xbf16>, vector<8x8xbf16>, vector<64x8xf32> -> vector<64x8xf32>
    %53 = arith.addf %47, %52 : vector<64x8xf32>
    %c0_61 = arith.constant 0 : index
    %c0_62 = arith.constant 0 : index
    %c9 = arith.constant 9 : index
    %c0_63 = arith.constant 0 : index
    %54 = vector.load %arg14[%c0_61, %c0_62, %c9, %c0_63] : memref<1x8x24x8xbf16, #tpu.memory_space<vmem>>, vector<1x8x8x8xbf16>
    %55 = vector.shape_cast %54 : vector<1x8x8x8xbf16> to vector<64x8xbf16>
    %c4 = arith.constant 4 : index
    %c0_64 = arith.constant 0 : index
    %c0_65 = arith.constant 0 : index
    %56 = vector.load %arg6[%c4, %c0_64, %c0_65] : memref<7x8x8xbf16, #tpu.memory_space<vmem>>, vector<1x8x8xbf16>
    %57 = vector.shape_cast %56 : vector<1x8x8xbf16> to vector<8x8xbf16>
    %cst_66 = arith.constant dense<0.000000e+00> : vector<64x8xf32>
    %58 = tpu.matmul %55, %57, %cst_66 {dimension_numbers = #tpu.dot_dimension_numbers<[1], [0], [0], [1], [0, 0, 1, 1], [], []>} : vector<64x8xbf16>, vector<8x8xbf16>, vector<64x8xf32> -> vector<64x8xf32>
    %59 = arith.addf %53, %58 : vector<64x8xf32>
    %c0_67 = arith.constant 0 : index
    %c0_68 = arith.constant 0 : index
    %c10 = arith.constant 10 : index
    %c0_69 = arith.constant 0 : index
    %60 = vector.load %arg14[%c0_67, %c0_68, %c10, %c0_69] : memref<1x8x24x8xbf16, #tpu.memory_space<vmem>>, vector<1x8x8x8xbf16>
    %61 = vector.shape_cast %60 : vector<1x8x8x8xbf16> to vector<64x8xbf16>
    %c5_70 = arith.constant 5 : index
    %c0_71 = arith.constant 0 : index
    %c0_72 = arith.constant 0 : index
    %62 = vector.load %arg6[%c5_70, %c0_71, %c0_72] : memref<7x8x8xbf16, #tpu.memory_space<vmem>>, vector<1x8x8xbf16>
    %63 = vector.shape_cast %62 : vector<1x8x8xbf16> to vector<8x8xbf16>
    %cst_73 = arith.constant dense<0.000000e+00> : vector<64x8xf32>
    %64 = tpu.matmul %61, %63, %cst_73 {dimension_numbers = #tpu.dot_dimension_numbers<[1], [0], [0], [1], [0, 0, 1, 1], [], []>} : vector<64x8xbf16>, vector<8x8xbf16>, vector<64x8xf32> -> vector<64x8xf32>
    %65 = arith.addf %59, %64 : vector<64x8xf32>
    %c0_74 = arith.constant 0 : index
    %c0_75 = arith.constant 0 : index
    %c11_76 = arith.constant 11 : index
    %c0_77 = arith.constant 0 : index
    %66 = vector.load %arg14[%c0_74, %c0_75, %c11_76, %c0_77] : memref<1x8x24x8xbf16, #tpu.memory_space<vmem>>, vector<1x8x8x8xbf16>
    %67 = vector.shape_cast %66 : vector<1x8x8x8xbf16> to vector<64x8xbf16>
    %c6_78 = arith.constant 6 : index
    %c0_79 = arith.constant 0 : index
    %c0_80 = arith.constant 0 : index
    %68 = vector.load %arg6[%c6_78, %c0_79, %c0_80] : memref<7x8x8xbf16, #tpu.memory_space<vmem>>, vector<1x8x8xbf16>
    %69 = vector.shape_cast %68 : vector<1x8x8xbf16> to vector<8x8xbf16>
    %cst_81 = arith.constant dense<0.000000e+00> : vector<64x8xf32>
    %70 = tpu.matmul %67, %69, %cst_81 {dimension_numbers = #tpu.dot_dimension_numbers<[1], [0], [0], [1], [0, 0, 1, 1], [], []>} : vector<64x8xbf16>, vector<8x8xbf16>, vector<64x8xf32> -> vector<64x8xf32>
    %71 = arith.addf %65, %70 : vector<64x8xf32>
    %c0_82 = arith.constant 0 : index
    %c0_83 = arith.constant 0 : index
    %72 = vector.load %arg7[%c0_82, %c0_83] : memref<1x8xf32, #tpu.memory_space<vmem>>, vector<1x8xf32>
    %73 = vector.broadcast %72 : vector<1x8xf32> to vector<64x8xf32>
    %74 = arith.addf %71, %73 : vector<64x8xf32>
    %cst_84 = arith.constant 0.000000e+00 : f32
    %75 = vector.broadcast %cst_84 : f32 to vector<64x8xf32>
    %76 = arith.maximumf %74, %75 : vector<64x8xf32>
    %77 = arith.truncf %76 : vector<64x8xf32> to vector<64x8xbf16>
    %78 = vector.shape_cast %77 : vector<64x8xbf16> to vector<1x8x8x8xbf16>
    %c0_85 = arith.constant 0 : index
    %c3_86 = arith.constant 3 : index
    %c0_87 = arith.constant 0 : index
    %c0_88 = arith.constant 0 : index
    %79 = vector.load %arg15[%c0_85, %c3_86, %c0_87, %c0_88] : memref<1x14x8x8xbf16, #tpu.memory_space<vmem>>, vector<1x8x8x8xbf16>
    tpu.vector_store %arg15[%c0_85, %c3_86, %c0_87, %c0_88], %78 {strides = array<i32>} : memref<1x14x8x8xbf16, #tpu.memory_space<vmem>>, vector<1x8x8x8xbf16>,
    %cst_89 = arith.constant 0.000000e+00 : f32
    %80 = vector.broadcast %cst_89 : f32 to vector<64x8xf32>
    %c0_90 = arith.constant 0 : index
    %c0_91 = arith.constant 0 : index
    %c0_92 = arith.constant 0 : index
    %c0_93 = arith.constant 0 : index
    %81 = vector.load %arg15[%c0_90, %c0_91, %c0_92, %c0_93] : memref<1x14x8x8xbf16, #tpu.memory_space<vmem>>, vector<1x8x8x8xbf16>
    %82 = vector.shape_cast %81 : vector<1x8x8x8xbf16> to vector<64x8xbf16>
    %c0_94 = arith.constant 0 : index
    %c0_95 = arith.constant 0 : index
    %c0_96 = arith.constant 0 : index
    %83 = vector.load %arg8[%c0_94, %c0_95, %c0_96] : memref<7x8x8xbf16, #tpu.memory_space<vmem>>, vector<1x8x8xbf16>
    %84 = vector.shape_cast %83 : vector<1x8x8xbf16> to vector<8x8xbf16>
    %cst_97 = arith.constant dense<0.000000e+00> : vector<64x8xf32>
    %85 = tpu.matmul %82, %84, %cst_97 {dimension_numbers = #tpu.dot_dimension_numbers<[1], [0], [0], [1], [0, 0, 1, 1], [], []>} : vector<64x8xbf16>, vector<8x8xbf16>, vector<64x8xf32> -> vector<64x8xf32>
    %86 = arith.addf %80, %85 : vector<64x8xf32>
    %c0_98 = arith.constant 0 : index
    %c1_99 = arith.constant 1 : index
    %c0_100 = arith.constant 0 : index
    %c0_101 = arith.constant 0 : index
    %87 = vector.load %arg15[%c0_98, %c1_99, %c0_100, %c0_101] : memref<1x14x8x8xbf16, #tpu.memory_space<vmem>>, vector<1x8x8x8xbf16>
    %88 = vector.shape_cast %87 : vector<1x8x8x8xbf16> to vector<64x8xbf16>
    %c1_102 = arith.constant 1 : index
    %c0_103 = arith.constant 0 : index
    %c0_104 = arith.constant 0 : index
    %89 = vector.load %arg8[%c1_102, %c0_103, %c0_104] : memref<7x8x8xbf16, #tpu.memory_space<vmem>>, vector<1x8x8xbf16>
    %90 = vector.shape_cast %89 : vector<1x8x8xbf16> to vector<8x8xbf16>
    %cst_105 = arith.constant dense<0.000000e+00> : vector<64x8xf32>
    %91 = tpu.matmul %88, %90, %cst_105 {dimension_numbers = #tpu.dot_dimension_numbers<[1], [0], [0], [1], [0, 0, 1, 1], [], []>} : vector<64x8xbf16>, vector<8x8xbf16>, vector<64x8xf32> -> vector<64x8xf32>
    %92 = arith.addf %86, %91 : vector<64x8xf32>
    %c0_106 = arith.constant 0 : index
    %c2_107 = arith.constant 2 : index
    %c0_108 = arith.constant 0 : index
    %c0_109 = arith.constant 0 : index
    %93 = vector.load %arg15[%c0_106, %c2_107, %c0_108, %c0_109] : memref<1x14x8x8xbf16, #tpu.memory_space<vmem>>, vector<1x8x8x8xbf16>
    %94 = vector.shape_cast %93 : vector<1x8x8x8xbf16> to vector<64x8xbf16>
    %c2_110 = arith.constant 2 : index
    %c0_111 = arith.constant 0 : index
    %c0_112 = arith.constant 0 : index
    %95 = vector.load %arg8[%c2_110, %c0_111, %c0_112] : memref<7x8x8xbf16, #tpu.memory_space<vmem>>, vector<1x8x8xbf16>
    %96 = vector.shape_cast %95 : vector<1x8x8xbf16> to vector<8x8xbf16>
    %cst_113 = arith.constant dense<0.000000e+00> : vector<64x8xf32>
    %97 = tpu.matmul %94, %96, %cst_113 {dimension_numbers = #tpu.dot_dimension_numbers<[1], [0], [0], [1], [0, 0, 1, 1], [], []>} : vector<64x8xbf16>, vector<8x8xbf16>, vector<64x8xf32> -> vector<64x8xf32>
    %98 = arith.addf %92, %97 : vector<64x8xf32>
    %c0_114 = arith.constant 0 : index
    %c3_115 = arith.constant 3 : index
    %c0_116 = arith.constant 0 : index
    %c0_117 = arith.constant 0 : index
    %99 = vector.load %arg15[%c0_114, %c3_115, %c0_116, %c0_117] : memref<1x14x8x8xbf16, #tpu.memory_space<vmem>>, vector<1x8x8x8xbf16>
    %100 = vector.shape_cast %99 : vector<1x8x8x8xbf16> to vector<64x8xbf16>
    %c3_118 = arith.constant 3 : index
    %c0_119 = arith.constant 0 : index
    %c0_120 = arith.constant 0 : index
    %101 = vector.load %arg8[%c3_118, %c0_119, %c0_120] : memref<7x8x8xbf16, #tpu.memory_space<vmem>>, vector<1x8x8xbf16>
    %102 = vector.shape_cast %101 : vector<1x8x8xbf16> to vector<8x8xbf16>
    %cst_121 = arith.constant dense<0.000000e+00> : vector<64x8xf32>
    %103 = tpu.matmul %100, %102, %cst_121 {dimension_numbers = #tpu.dot_dimension_numbers<[1], [0], [0], [1], [0, 0, 1, 1], [], []>} : vector<64x8xbf16>, vector<8x8xbf16>, vector<64x8xf32> -> vector<64x8xf32>
    %104 = arith.addf %98, %103 : vector<64x8xf32>
    %c0_122 = arith.constant 0 : index
    %c4_123 = arith.constant 4 : index
    %c0_124 = arith.constant 0 : index
    %c0_125 = arith.constant 0 : index
    %105 = vector.load %arg15[%c0_122, %c4_123, %c0_124, %c0_125] : memref<1x14x8x8xbf16, #tpu.memory_space<vmem>>, vector<1x8x8x8xbf16>
    %106 = vector.shape_cast %105 : vector<1x8x8x8xbf16> to vector<64x8xbf16>
    %c4_126 = arith.constant 4 : index
    %c0_127 = arith.constant 0 : index
    %c0_128 = arith.constant 0 : index
    %107 = vector.load %arg8[%c4_126, %c0_127, %c0_128] : memref<7x8x8xbf16, #tpu.memory_space<vmem>>, vector<1x8x8xbf16>
    %108 = vector.shape_cast %107 : vector<1x8x8xbf16> to vector<8x8xbf16>
    %cst_129 = arith.constant dense<0.000000e+00> : vector<64x8xf32>
    %109 = tpu.matmul %106, %108, %cst_129 {dimension_numbers = #tpu.dot_dimension_numbers<[1], [0], [0], [1], [0, 0, 1, 1], [], []>} : vector<64x8xbf16>, vector<8x8xbf16>, vector<64x8xf32> -> vector<64x8xf32>
    %110 = arith.addf %104, %109 : vector<64x8xf32>
    %c0_130 = arith.constant 0 : index
    %c5_131 = arith.constant 5 : index
    %c0_132 = arith.constant 0 : index
    %c0_133 = arith.constant 0 : index
    %111 = vector.load %arg15[%c0_130, %c5_131, %c0_132, %c0_133] : memref<1x14x8x8xbf16, #tpu.memory_space<vmem>>, vector<1x8x8x8xbf16>
    %112 = vector.shape_cast %111 : vector<1x8x8x8xbf16> to vector<64x8xbf16>
    %c5_134 = arith.constant 5 : index
    %c0_135 = arith.constant 0 : index
    %c0_136 = arith.constant 0 : index
    %113 = vector.load %arg8[%c5_134, %c0_135, %c0_136] : memref<7x8x8xbf16, #tpu.memory_space<vmem>>, vector<1x8x8xbf16>
    %114 = vector.shape_cast %113 : vector<1x8x8xbf16> to vector<8x8xbf16>
    %cst_137 = arith.constant dense<0.000000e+00> : vector<64x8xf32>
    %115 = tpu.matmul %112, %114, %cst_137 {dimension_numbers = #tpu.dot_dimension_numbers<[1], [0], [0], [1], [0, 0, 1, 1], [], []>} : vector<64x8xbf16>, vector<8x8xbf16>, vector<64x8xf32> -> vector<64x8xf32>
    %116 = arith.addf %110, %115 : vector<64x8xf32>
    %c0_138 = arith.constant 0 : index
    %c6_139 = arith.constant 6 : index
    %c0_140 = arith.constant 0 : index
    %c0_141 = arith.constant 0 : index
    %117 = vector.load %arg15[%c0_138, %c6_139, %c0_140, %c0_141] : memref<1x14x8x8xbf16, #tpu.memory_space<vmem>>, vector<1x8x8x8xbf16>
    %118 = vector.shape_cast %117 : vector<1x8x8x8xbf16> to vector<64x8xbf16>
    %c6_142 = arith.constant 6 : index
    %c0_143 = arith.constant 0 : index
    %c0_144 = arith.constant 0 : index
    %119 = vector.load %arg8[%c6_142, %c0_143, %c0_144] : memref<7x8x8xbf16, #tpu.memory_space<vmem>>, vector<1x8x8xbf16>
    %120 = vector.shape_cast %119 : vector<1x8x8xbf16> to vector<8x8xbf16>
    %cst_145 = arith.constant dense<0.000000e+00> : vector<64x8xf32>
    %121 = tpu.matmul %118, %120, %cst_145 {dimension_numbers = #tpu.dot_dimension_numbers<[1], [0], [0], [1], [0, 0, 1, 1], [], []>} : vector<64x8xbf16>, vector<8x8xbf16>, vector<64x8xf32> -> vector<64x8xf32>
    %122 = arith.addf %116, %121 : vector<64x8xf32>
    %c0_146 = arith.constant 0 : index
    %c0_147 = arith.constant 0 : index
    %123 = vector.load %arg9[%c0_146, %c0_147] : memref<1x8xf32, #tpu.memory_space<vmem>>, vector<1x8xf32>
    %124 = vector.broadcast %123 : vector<1x8xf32> to vector<64x8xf32>
    %125 = arith.addf %122, %124 : vector<64x8xf32>
    %cst_148 = arith.constant 0.000000e+00 : f32
    %126 = vector.broadcast %cst_148 : f32 to vector<64x8xf32>
    %127 = arith.maximumf %125, %126 : vector<64x8xf32>
    %128 = arith.truncf %127 : vector<64x8xf32> to vector<64x8xbf16>
    %c0_149 = arith.constant 0 : index
    %c0_150 = arith.constant 0 : index
    %129 = vector.load %arg10[%c0_149, %c0_150] : memref<8x16xbf16, #tpu.memory_space<vmem>>, vector<8x16xbf16>
    %cst_151 = arith.constant dense<0.000000e+00> : vector<64x16xf32>
    %130 = tpu.matmul %25, %129, %cst_151 {dimension_numbers = #tpu.dot_dimension_numbers<[1], [0], [0], [1], [0, 0, 1, 1], [], []>} : vector<64x8xbf16>, vector<8x16xbf16>, vector<64x16xf32> -> vector<64x16xf32>
    %c0_152 = arith.constant 0 : index
    %c0_153 = arith.constant 0 : index
    %131 = vector.load %arg11[%c0_152, %c0_153] : memref<8x16xbf16, #tpu.memory_space<vmem>>, vector<8x16xbf16>
    %cst_154 = arith.constant dense<0.000000e+00> : vector<64x16xf32>
    %132 = tpu.matmul %128, %131, %cst_154 {dimension_numbers = #tpu.dot_dimension_numbers<[1], [0], [0], [1], [0, 0, 1, 1], [], []>} : vector<64x8xbf16>, vector<8x16xbf16>, vector<64x16xf32> -> vector<64x16xf32>
    %133 = arith.addf %130, %132 : vector<64x16xf32>
    %c0_155 = arith.constant 0 : index
    %c0_156 = arith.constant 0 : index
    %134 = vector.load %arg12[%c0_155, %c0_156] : memref<1x16xf32, #tpu.memory_space<vmem>>, vector<1x16xf32>
    %135 = vector.broadcast %134 : vector<1x16xf32> to vector<64x16xf32>
    %136 = arith.addf %133, %135 : vector<64x16xf32>
    %c0_157 = arith.constant 0 : index
    %c0_158 = arith.constant 0 : index
    %c0_159 = arith.constant 0 : index
    %137 = vector.load %arg1[%c0_157, %c0_158, %c0_159] : memref<1x64x16xf32, #tpu.memory_space<vmem>>, vector<1x64x16xf32>
    %138 = vector.shape_cast %137 : vector<1x64x16xf32> to vector<64x16xf32>
    %cst_160 = arith.constant 1.000000e-01 : f32
    %139 = vector.broadcast %cst_160 : f32 to vector<64x16xf32>
    %140 = arith.mulf %136, %139 : vector<64x16xf32>
    %141 = arith.addf %140, %138 : vector<64x16xf32>
    %cst_161 = arith.constant 0.000000e+00 : f32
    %142 = vector.broadcast %cst_161 : f32 to vector<64x16xf32>
    %143 = arith.maximumf %141, %142 : vector<64x16xf32>
    %144 = vector.shape_cast %143 : vector<64x16xf32> to vector<1x64x16xf32>
    %c0_162 = arith.constant 0 : index
    %c0_163 = arith.constant 0 : index
    %c0_164 = arith.constant 0 : index
    %145 = vector.load %arg13[%c0_162, %c0_163, %c0_164] : memref<1x64x16xf32, #tpu.memory_space<vmem>>, vector<1x64x16xf32>
    tpu.vector_store %arg13[%c0_162, %c0_163, %c0_164], %144 {strides = array<i32>} : memref<1x64x16xf32, #tpu.memory_space<vmem>>, vector<1x64x16xf32>,
    return
  }
  func.func @transform_0(%arg0: i32) -> (i32, i32, i32) {
    %c0_i32 = arith.constant 0 : i32
    %c0_i32_0 = arith.constant 0 : i32
    %c0_i32_1 = arith.constant 0 : i32
    return %arg0, %c0_i32, %c0_i32_0 : i32, i32, i32
  }
  func.func @transform_1(%arg0: i32) -> (i32, i32) {
    %c0_i32 = arith.constant 0 : i32
    %c0_i32_0 = arith.constant 0 : i32
    %c0_i32_1 = arith.constant 0 : i32
    return %c0_i32, %c0_i32_0 : i32, i32
  }
  func.func @transform_2(%arg0: i32) -> (i32, i32) {
    %c0_i32 = arith.constant 0 : i32
    %c0_i32_0 = arith.constant 0 : i32
    %c0_i32_1 = arith.constant 0 : i32
    return %c0_i32, %c0_i32_0 : i32, i32
  }
  func.func @transform_3(%arg0: i32) -> (i32, i32) {
    %c0_i32 = arith.constant 0 : i32
    %c0_i32_0 = arith.constant 0 : i32
    %c0_i32_1 = arith.constant 0 : i32
    return %c0_i32, %c0_i32_0 : i32, i32
  }
  func.func @transform_4(%arg0: i32) -> (i32, i32) {
    %c0_i32 = arith.constant 0 : i32
    %c0_i32_0 = arith.constant 0 : i32
    %c0_i32_1 = arith.constant 0 : i32
    return %c0_i32, %c0_i32_0 : i32, i32
  }
  func.func @transform_5(%arg0: i32) -> (i32, i32, i32) {
    %c0_i32 = arith.constant 0 : i32
    %c0_i32_0 = arith.constant 0 : i32
    %c0_i32_1 = arith.constant 0 : i32
    %c0_i32_2 = arith.constant 0 : i32
    return %c0_i32, %c0_i32_0, %c0_i32_1 : i32, i32, i32
  }
  func.func @transform_6(%arg0: i32) -> (i32, i32) {
    %c0_i32 = arith.constant 0 : i32
    %c0_i32_0 = arith.constant 0 : i32
    %c0_i32_1 = arith.constant 0 : i32
    return %c0_i32, %c0_i32_0 : i32, i32
  }
  func.func @transform_7(%arg0: i32) -> (i32, i32, i32) {
    %c0_i32 = arith.constant 0 : i32
    %c0_i32_0 = arith.constant 0 : i32
    %c0_i32_1 = arith.constant 0 : i32
    %c0_i32_2 = arith.constant 0 : i32
    return %c0_i32, %c0_i32_0, %c0_i32_1 : i32, i32, i32
  }
  func.func @transform_8(%arg0: i32) -> (i32, i32) {
    %c0_i32 = arith.constant 0 : i32
    %c0_i32_0 = arith.constant 0 : i32
    %c0_i32_1 = arith.constant 0 : i32
    return %c0_i32, %c0_i32_0 : i32, i32
  }
  func.func @transform_9(%arg0: i32) -> (i32, i32) {
    %c0_i32 = arith.constant 0 : i32
    %c0_i32_0 = arith.constant 0 : i32
    %c0_i32_1 = arith.constant 0 : i32
    return %c0_i32, %c0_i32_0 : i32, i32
  }
  func.func @transform_10(%arg0: i32) -> (i32, i32) {
    %c0_i32 = arith.constant 0 : i32
    %c0_i32_0 = arith.constant 0 : i32
    %c0_i32_1 = arith.constant 0 : i32
    return %c0_i32, %c0_i32_0 : i32, i32
  }
  func.func @transform_11(%arg0: i32) -> (i32, i32) {
    %c0_i32 = arith.constant 0 : i32
    %c0_i32_0 = arith.constant 0 : i32
    %c0_i32_1 = arith.constant 0 : i32
    return %c0_i32, %c0_i32_0 : i32, i32
  }
  func.func @transform_12(%arg0: i32) -> (i32, i32, i32) {
    %c0_i32 = arith.constant 0 : i32
    %c0_i32_0 = arith.constant 0 : i32
    %c0_i32_1 = arith.constant 0 : i32
    return %arg0, %c0_i32, %c0_i32_0 : i32, i32, i32
  }
}

module attributes {stable_mosaic.version = 11 : i64} {
  func.func @_inception_resnet_b_kernel(%arg0: i32, %arg1: memref<1x64x16xf32, #tpu.memory_space<vmem>>, %arg2: memref<16x8xbf16, #tpu.memory_space<vmem>>, %arg3: memref<1x8xf32, #tpu.memory_space<vmem>>, %arg4: memref<16x8xbf16, #tpu.memory_space<vmem>>, %arg5: memref<1x8xf32, #tpu.memory_space<vmem>>, %arg6: memref<7x8x8xbf16, #tpu.memory_space<vmem>>, %arg7: memref<1x8xf32, #tpu.memory_space<vmem>>, %arg8: memref<7x8x8xbf16, #tpu.memory_space<vmem>>, %arg9: memref<1x8xf32, #tpu.memory_space<vmem>>, %arg10: memref<8x16xbf16, #tpu.memory_space<vmem>>, %arg11: memref<8x16xbf16, #tpu.memory_space<vmem>>, %arg12: memref<1x16xf32, #tpu.memory_space<vmem>>, %arg13: memref<1x64x16xf32, #tpu.memory_space<vmem>>, %arg14: memref<1x8x24x8xbf16, #tpu.memory_space<vmem>>, %arg15: memref<1x14x8x8xbf16, #tpu.memory_space<vmem>>) attributes {dimension_semantics = [#tpu.dimension_semantics<parallel>], iteration_bounds = array<i64: 2>, scalar_prefetch = 0 : i64, scratch_operands = 2 : i64, tpu.core_type = #tpu.core_type<tc>, window_params = [{transform_indices = @transform_0, window_bounds = array<i64: 1, 64, 16>}, {pipeline_mode = #tpu.pipeline_mode<synchronous>, transform_indices = @transform_1, window_bounds = array<i64: 16, 8>}, {pipeline_mode = #tpu.pipeline_mode<synchronous>, transform_indices = @transform_2, window_bounds = array<i64: 1, 8>}, {pipeline_mode = #tpu.pipeline_mode<synchronous>, transform_indices = @transform_3, window_bounds = array<i64: 16, 8>}, {pipeline_mode = #tpu.pipeline_mode<synchronous>, transform_indices = @transform_4, window_bounds = array<i64: 1, 8>}, {pipeline_mode = #tpu.pipeline_mode<synchronous>, transform_indices = @transform_5, window_bounds = array<i64: 7, 8, 8>}, {pipeline_mode = #tpu.pipeline_mode<synchronous>, transform_indices = @transform_6, window_bounds = array<i64: 1, 8>}, {pipeline_mode = #tpu.pipeline_mode<synchronous>, transform_indices = @transform_7, window_bounds = array<i64: 7, 8, 8>}, {pipeline_mode = #tpu.pipeline_mode<synchronous>, transform_indices = @transform_8, window_bounds = array<i64: 1, 8>}, {pipeline_mode = #tpu.pipeline_mode<synchronous>, transform_indices = @transform_9, window_bounds = array<i64: 8, 16>}, {pipeline_mode = #tpu.pipeline_mode<synchronous>, transform_indices = @transform_10, window_bounds = array<i64: 8, 16>}, {pipeline_mode = #tpu.pipeline_mode<synchronous>, transform_indices = @transform_11, window_bounds = array<i64: 1, 16>}, {transform_indices = @transform_12, window_bounds = array<i64: 1, 64, 16>}]} {
    %cst = arith.constant 0.000000e+00 : bf16
    %0 = vector.broadcast %cst : bf16 to vector<1x8x3x8xbf16>
    %c0 = arith.constant 0 : index
    %c0_0 = arith.constant 0 : index
    %c5 = arith.constant 5 : index
    %c0_1 = arith.constant 0 : index
    %1 = vector.load %arg14[%c0, %c0_0, %c5, %c0_1] : memref<1x8x24x8xbf16, #tpu.memory_space<vmem>>, vector<1x8x3x8xbf16>
    tpu.vector_store %arg14[%c0, %c0_0, %c5, %c0_1], %0 {strides = array<i32>} : memref<1x8x24x8xbf16, #tpu.memory_space<vmem>>, vector<1x8x3x8xbf16>,
    %cst_2 = arith.constant 0.000000e+00 : bf16
    %2 = vector.broadcast %cst_2 : bf16 to vector<1x8x3x8xbf16>
    %c0_3 = arith.constant 0 : index
    %c0_4 = arith.constant 0 : index
    %c16 = arith.constant 16 : index
    %c0_5 = arith.constant 0 : index
    %3 = vector.load %arg14[%c0_3, %c0_4, %c16, %c0_5] : memref<1x8x24x8xbf16, #tpu.memory_space<vmem>>, vector<1x8x3x8xbf16>
    tpu.vector_store %arg14[%c0_3, %c0_4, %c16, %c0_5], %2 {strides = array<i32>} : memref<1x8x24x8xbf16, #tpu.memory_space<vmem>>, vector<1x8x3x8xbf16>,
    %cst_6 = arith.constant 0.000000e+00 : bf16
    %4 = vector.broadcast %cst_6 : bf16 to vector<1x3x8x8xbf16>
    %c0_7 = arith.constant 0 : index
    %c0_8 = arith.constant 0 : index
    %c0_9 = arith.constant 0 : index
    %c0_10 = arith.constant 0 : index
    %5 = vector.load %arg15[%c0_7, %c0_8, %c0_9, %c0_10] : memref<1x14x8x8xbf16, #tpu.memory_space<vmem>>, vector<1x3x8x8xbf16>
    tpu.vector_store %arg15[%c0_7, %c0_8, %c0_9, %c0_10], %4 {strides = array<i32>} : memref<1x14x8x8xbf16, #tpu.memory_space<vmem>>, vector<1x3x8x8xbf16>,
    %cst_11 = arith.constant 0.000000e+00 : bf16
    %6 = vector.broadcast %cst_11 : bf16 to vector<1x3x8x8xbf16>
    %c0_12 = arith.constant 0 : index
    %c11 = arith.constant 11 : index
    %c0_13 = arith.constant 0 : index
    %c0_14 = arith.constant 0 : index
    %7 = vector.load %arg15[%c0_12, %c11, %c0_13, %c0_14] : memref<1x14x8x8xbf16, #tpu.memory_space<vmem>>, vector<1x3x8x8xbf16>
    tpu.vector_store %arg15[%c0_12, %c11, %c0_13, %c0_14], %6 {strides = array<i32>} : memref<1x14x8x8xbf16, #tpu.memory_space<vmem>>, vector<1x3x8x8xbf16>,
    %c0_15 = arith.constant 0 : index
    %c0_16 = arith.constant 0 : index
    %c0_17 = arith.constant 0 : index
    %8 = vector.load %arg1[%c0_15, %c0_16, %c0_17] : memref<1x64x16xf32, #tpu.memory_space<vmem>>, vector<1x64x16xf32>
    %9 = vector.shape_cast %8 : vector<1x64x16xf32> to vector<64x16xf32>
    %10 = arith.truncf %9 : vector<64x16xf32> to vector<64x16xbf16>
    %c0_18 = arith.constant 0 : index
    %c0_19 = arith.constant 0 : index
    %11 = vector.load %arg4[%c0_18, %c0_19] : memref<16x8xbf16, #tpu.memory_space<vmem>>, vector<16x8xbf16>
    %cst_20 = arith.constant dense<0.000000e+00> : vector<64x8xf32>
    %12 = tpu.matmul %10, %11, %cst_20 {dimension_numbers = #tpu.dot_dimension_numbers<[1], [0], [0], [1], [0, 0, 1, 1], [], []>} : vector<64x16xbf16>, vector<16x8xbf16>, vector<64x8xf32> -> vector<64x8xf32>
    %c0_21 = arith.constant 0 : index
    %c0_22 = arith.constant 0 : index
    %13 = vector.load %arg5[%c0_21, %c0_22] : memref<1x8xf32, #tpu.memory_space<vmem>>, vector<1x8xf32>
    %14 = vector.broadcast %13 : vector<1x8xf32> to vector<64x8xf32>
    %15 = arith.addf %12, %14 : vector<64x8xf32>
    %cst_23 = arith.constant 0.000000e+00 : f32
    %16 = vector.broadcast %cst_23 : f32 to vector<64x8xf32>
    %17 = arith.maximumf %15, %16 : vector<64x8xf32>
    %c0_24 = arith.constant 0 : index
    %c0_25 = arith.constant 0 : index
    %18 = vector.load %arg2[%c0_24, %c0_25] : memref<16x8xbf16, #tpu.memory_space<vmem>>, vector<16x8xbf16>
    %cst_26 = arith.constant dense<0.000000e+00> : vector<64x8xf32>
    %19 = tpu.matmul %10, %18, %cst_26 {dimension_numbers = #tpu.dot_dimension_numbers<[1], [0], [0], [1], [0, 0, 1, 1], [], []>} : vector<64x16xbf16>, vector<16x8xbf16>, vector<64x8xf32> -> vector<64x8xf32>
    %c0_27 = arith.constant 0 : index
    %c0_28 = arith.constant 0 : index
    %20 = vector.load %arg3[%c0_27, %c0_28] : memref<1x8xf32, #tpu.memory_space<vmem>>, vector<1x8xf32>
    %21 = vector.broadcast %20 : vector<1x8xf32> to vector<64x8xf32>
    %22 = arith.addf %19, %21 : vector<64x8xf32>
    %cst_29 = arith.constant 0.000000e+00 : f32
    %23 = vector.broadcast %cst_29 : f32 to vector<64x8xf32>
    %24 = arith.maximumf %22, %23 : vector<64x8xf32>
    %25 = arith.truncf %24 : vector<64x8xf32> to vector<64x8xbf16>
    %26 = arith.truncf %17 : vector<64x8xf32> to vector<64x8xbf16>
    %27 = vector.shape_cast %26 : vector<64x8xbf16> to vector<1x8x8x8xbf16>
    %c0_30 = arith.constant 0 : index
    %c0_31 = arith.constant 0 : index
    %c8 = arith.constant 8 : index
    %c0_32 = arith.constant 0 : index
    %28 = vector.load %arg14[%c0_30, %c0_31, %c8, %c0_32] : memref<1x8x24x8xbf16, #tpu.memory_space<vmem>>, vector<1x8x8x8xbf16>
    tpu.vector_store %arg14[%c0_30, %c0_31, %c8, %c0_32], %27 {strides = array<i32>} : memref<1x8x24x8xbf16, #tpu.memory_space<vmem>>, vector<1x8x8x8xbf16>,
    %cst_33 = arith.constant 0.000000e+00 : f32
    %29 = vector.broadcast %cst_33 : f32 to vector<64x8xf32>
    %c0_34 = arith.constant 0 : index
    %c0_35 = arith.constant 0 : index
    %c5_36 = arith.constant 5 : index
    %c0_37 = arith.constant 0 : index
    %30 = vector.load %arg14[%c0_34, %c0_35, %c5_36, %c0_37] : memref<1x8x24x8xbf16, #tpu.memory_space<vmem>>, vector<1x8x8x8xbf16>
    %31 = vector.shape_cast %30 : vector<1x8x8x8xbf16> to vector<64x8xbf16>
    %c0_38 = arith.constant 0 : index
    %c0_39 = arith.constant 0 : index
    %c0_40 = arith.constant 0 : index
    %32 = vector.load %arg6[%c0_38, %c0_39, %c0_40] : memref<7x8x8xbf16, #tpu.memory_space<vmem>>, vector<1x8x8xbf16>
    %33 = vector.shape_cast %32 : vector<1x8x8xbf16> to vector<8x8xbf16>
    %cst_41 = arith.constant dense<0.000000e+00> : vector<64x8xf32>
    %34 = tpu.matmul %31, %33, %cst_41 {dimension_numbers = #tpu.dot_dimension_numbers<[1], [0], [0], [1], [0, 0, 1, 1], [], []>} : vector<64x8xbf16>, vector<8x8xbf16>, vector<64x8xf32> -> vector<64x8xf32>
    %35 = arith.addf %29, %34 : vector<64x8xf32>
    %c0_42 = arith.constant 0 : index
    %c0_43 = arith.constant 0 : index
    %c6 = arith.constant 6 : index
    %c0_44 = arith.constant 0 : index
    %36 = vector.load %arg14[%c0_42, %c0_43, %c6, %c0_44] : memref<1x8x24x8xbf16, #tpu.memory_space<vmem>>, vector<1x8x8x8xbf16>
    %37 = vector.shape_cast %36 : vector<1x8x8x8xbf16> to vector<64x8xbf16>
    %c1 = arith.constant 1 : index
    %c0_45 = arith.constant 0 : index
    %c0_46 = arith.constant 0 : index
    %38 = vector.load %arg6[%c1, %c0_45, %c0_46] : memref<7x8x8xbf16, #tpu.memory_space<vmem>>, vector<1x8x8xbf16>
    %39 = vector.shape_cast %38 : vector<1x8x8xbf16> to vector<8x8xbf16>
    %cst_47 = arith.constant dense<0.000000e+00> : vector<64x8xf32>
    %40 = tpu.matmul %37, %39, %cst_47 {dimension_numbers = #tpu.dot_dimension_numbers<[1], [0], [0], [1], [0, 0, 1, 1], [], []>} : vector<64x8xbf16>, vector<8x8xbf16>, vector<64x8xf32> -> vector<64x8xf32>
    %41 = arith.addf %35, %40 : vector<64x8xf32>
    %c0_48 = arith.constant 0 : index
    %c0_49 = arith.constant 0 : index
    %c7 = arith.constant 7 : index
    %c0_50 = arith.constant 0 : index
    %42 = vector.load %arg14[%c0_48, %c0_49, %c7, %c0_50] : memref<1x8x24x8xbf16, #tpu.memory_space<vmem>>, vector<1x8x8x8xbf16>
    %43 = vector.shape_cast %42 : vector<1x8x8x8xbf16> to vector<64x8xbf16>
    %c2 = arith.constant 2 : index
    %c0_51 = arith.constant 0 : index
    %c0_52 = arith.constant 0 : index
    %44 = vector.load %arg6[%c2, %c0_51, %c0_52] : memref<7x8x8xbf16, #tpu.memory_space<vmem>>, vector<1x8x8xbf16>
    %45 = vector.shape_cast %44 : vector<1x8x8xbf16> to vector<8x8xbf16>
    %cst_53 = arith.constant dense<0.000000e+00> : vector<64x8xf32>
    %46 = tpu.matmul %43, %45, %cst_53 {dimension_numbers = #tpu.dot_dimension_numbers<[1], [0], [0], [1], [0, 0, 1, 1], [], []>} : vector<64x8xbf16>, vector<8x8xbf16>, vector<64x8xf32> -> vector<64x8xf32>
    %47 = arith.addf %41, %46 : vector<64x8xf32>
    %c0_54 = arith.constant 0 : index
    %c0_55 = arith.constant 0 : index
    %c8_56 = arith.constant 8 : index
    %c0_57 = arith.constant 0 : index
    %48 = vector.load %arg14[%c0_54, %c0_55, %c8_56, %c0_57] : memref<1x8x24x8xbf16, #tpu.memory_space<vmem>>, vector<1x8x8x8xbf16>
    %49 = vector.shape_cast %48 : vector<1x8x8x8xbf16> to vector<64x8xbf16>
    %c3 = arith.constant 3 : index
    %c0_58 = arith.constant 0 : index
    %c0_59 = arith.constant 0 : index
    %50 = vector.load %arg6[%c3, %c0_58, %c0_59] : memref<7x8x8xbf16, #tpu.memory_space<vmem>>, vector<1x8x8xbf16>
    %51 = vector.shape_cast %50 : vector<1x8x8xbf16> to vector<8x8xbf16>
    %cst_60 = arith.constant dense<0.000000e+00> : vector<64x8xf32>
    %52 = tpu.matmul %49, %51, %cst_60 {dimension_numbers = #tpu.dot_dimension_numbers<[1], [0], [0], [1], [0, 0, 1, 1], [], []>} : vector<64x8xbf16>, vector<8x8xbf16>, vector<64x8xf32> -> vector<64x8xf32>
    %53 = arith.addf %47, %52 : vector<64x8xf32>
    %c0_61 = arith.constant 0 : index
    %c0_62 = arith.constant 0 : index
    %c9 = arith.constant 9 : index
    %c0_63 = arith.constant 0 : index
    %54 = vector.load %arg14[%c0_61, %c0_62, %c9, %c0_63] : memref<1x8x24x8xbf16, #tpu.memory_space<vmem>>, vector<1x8x8x8xbf16>
    %55 = vector.shape_cast %54 : vector<1x8x8x8xbf16> to vector<64x8xbf16>
    %c4 = arith.constant 4 : index
    %c0_64 = arith.constant 0 : index
    %c0_65 = arith.constant 0 : index
    %56 = vector.load %arg6[%c4, %c0_64, %c0_65] : memref<7x8x8xbf16, #tpu.memory_space<vmem>>, vector<1x8x8xbf16>
    %57 = vector.shape_cast %56 : vector<1x8x8xbf16> to vector<8x8xbf16>
    %cst_66 = arith.constant dense<0.000000e+00> : vector<64x8xf32>
    %58 = tpu.matmul %55, %57, %cst_66 {dimension_numbers = #tpu.dot_dimension_numbers<[1], [0], [0], [1], [0, 0, 1, 1], [], []>} : vector<64x8xbf16>, vector<8x8xbf16>, vector<64x8xf32> -> vector<64x8xf32>
    %59 = arith.addf %53, %58 : vector<64x8xf32>
    %c0_67 = arith.constant 0 : index
    %c0_68 = arith.constant 0 : index
    %c10 = arith.constant 10 : index
    %c0_69 = arith.constant 0 : index
    %60 = vector.load %arg14[%c0_67, %c0_68, %c10, %c0_69] : memref<1x8x24x8xbf16, #tpu.memory_space<vmem>>, vector<1x8x8x8xbf16>
    %61 = vector.shape_cast %60 : vector<1x8x8x8xbf16> to vector<64x8xbf16>
    %c5_70 = arith.constant 5 : index
    %c0_71 = arith.constant 0 : index
    %c0_72 = arith.constant 0 : index
    %62 = vector.load %arg6[%c5_70, %c0_71, %c0_72] : memref<7x8x8xbf16, #tpu.memory_space<vmem>>, vector<1x8x8xbf16>
    %63 = vector.shape_cast %62 : vector<1x8x8xbf16> to vector<8x8xbf16>
    %cst_73 = arith.constant dense<0.000000e+00> : vector<64x8xf32>
    %64 = tpu.matmul %61, %63, %cst_73 {dimension_numbers = #tpu.dot_dimension_numbers<[1], [0], [0], [1], [0, 0, 1, 1], [], []>} : vector<64x8xbf16>, vector<8x8xbf16>, vector<64x8xf32> -> vector<64x8xf32>
    %65 = arith.addf %59, %64 : vector<64x8xf32>
    %c0_74 = arith.constant 0 : index
    %c0_75 = arith.constant 0 : index
    %c11_76 = arith.constant 11 : index
    %c0_77 = arith.constant 0 : index
    %66 = vector.load %arg14[%c0_74, %c0_75, %c11_76, %c0_77] : memref<1x8x24x8xbf16, #tpu.memory_space<vmem>>, vector<1x8x8x8xbf16>
    %67 = vector.shape_cast %66 : vector<1x8x8x8xbf16> to vector<64x8xbf16>
    %c6_78 = arith.constant 6 : index
    %c0_79 = arith.constant 0 : index
    %c0_80 = arith.constant 0 : index
    %68 = vector.load %arg6[%c6_78, %c0_79, %c0_80] : memref<7x8x8xbf16, #tpu.memory_space<vmem>>, vector<1x8x8xbf16>
    %69 = vector.shape_cast %68 : vector<1x8x8xbf16> to vector<8x8xbf16>
    %cst_81 = arith.constant dense<0.000000e+00> : vector<64x8xf32>
    %70 = tpu.matmul %67, %69, %cst_81 {dimension_numbers = #tpu.dot_dimension_numbers<[1], [0], [0], [1], [0, 0, 1, 1], [], []>} : vector<64x8xbf16>, vector<8x8xbf16>, vector<64x8xf32> -> vector<64x8xf32>
    %71 = arith.addf %65, %70 : vector<64x8xf32>
    %c0_82 = arith.constant 0 : index
    %c0_83 = arith.constant 0 : index
    %72 = vector.load %arg7[%c0_82, %c0_83] : memref<1x8xf32, #tpu.memory_space<vmem>>, vector<1x8xf32>
    %73 = vector.broadcast %72 : vector<1x8xf32> to vector<64x8xf32>
    %74 = arith.addf %71, %73 : vector<64x8xf32>
    %cst_84 = arith.constant 0.000000e+00 : f32
    %75 = vector.broadcast %cst_84 : f32 to vector<64x8xf32>
    %76 = arith.maximumf %74, %75 : vector<64x8xf32>
    %77 = arith.truncf %76 : vector<64x8xf32> to vector<64x8xbf16>
    %78 = vector.shape_cast %77 : vector<64x8xbf16> to vector<1x8x8x8xbf16>
    %c0_85 = arith.constant 0 : index
    %c3_86 = arith.constant 3 : index
    %c0_87 = arith.constant 0 : index
    %c0_88 = arith.constant 0 : index
    %79 = vector.load %arg15[%c0_85, %c3_86, %c0_87, %c0_88] : memref<1x14x8x8xbf16, #tpu.memory_space<vmem>>, vector<1x8x8x8xbf16>
    tpu.vector_store %arg15[%c0_85, %c3_86, %c0_87, %c0_88], %78 {strides = array<i32>} : memref<1x14x8x8xbf16, #tpu.memory_space<vmem>>, vector<1x8x8x8xbf16>,
    %cst_89 = arith.constant 0.000000e+00 : f32
    %80 = vector.broadcast %cst_89 : f32 to vector<64x8xf32>
    %c0_90 = arith.constant 0 : index
    %c0_91 = arith.constant 0 : index
    %c0_92 = arith.constant 0 : index
    %c0_93 = arith.constant 0 : index
    %81 = vector.load %arg15[%c0_90, %c0_91, %c0_92, %c0_93] : memref<1x14x8x8xbf16, #tpu.memory_space<vmem>>, vector<1x8x8x8xbf16>
    %82 = vector.shape_cast %81 : vector<1x8x8x8xbf16> to vector<64x8xbf16>
    %c0_94 = arith.constant 0 : index
    %c0_95 = arith.constant 0 : index
    %c0_96 = arith.constant 0 : index
    %83 = vector.load %arg8[%c0_94, %c0_95, %c0_96] : memref<7x8x8xbf16, #tpu.memory_space<vmem>>, vector<1x8x8xbf16>
    %84 = vector.shape_cast %83 : vector<1x8x8xbf16> to vector<8x8xbf16>
    %cst_97 = arith.constant dense<0.000000e+00> : vector<64x8xf32>
    %85 = tpu.matmul %82, %84, %cst_97 {dimension_numbers = #tpu.dot_dimension_numbers<[1], [0], [0], [1], [0, 0, 1, 1], [], []>} : vector<64x8xbf16>, vector<8x8xbf16>, vector<64x8xf32> -> vector<64x8xf32>
    %86 = arith.addf %80, %85 : vector<64x8xf32>
    %c0_98 = arith.constant 0 : index
    %c1_99 = arith.constant 1 : index
    %c0_100 = arith.constant 0 : index
    %c0_101 = arith.constant 0 : index
    %87 = vector.load %arg15[%c0_98, %c1_99, %c0_100, %c0_101] : memref<1x14x8x8xbf16, #tpu.memory_space<vmem>>, vector<1x8x8x8xbf16>
    %88 = vector.shape_cast %87 : vector<1x8x8x8xbf16> to vector<64x8xbf16>
    %c1_102 = arith.constant 1 : index
    %c0_103 = arith.constant 0 : index
    %c0_104 = arith.constant 0 : index
    %89 = vector.load %arg8[%c1_102, %c0_103, %c0_104] : memref<7x8x8xbf16, #tpu.memory_space<vmem>>, vector<1x8x8xbf16>
    %90 = vector.shape_cast %89 : vector<1x8x8xbf16> to vector<8x8xbf16>
    %cst_105 = arith.constant dense<0.000000e+00> : vector<64x8xf32>
    %91 = tpu.matmul %88, %90, %cst_105 {dimension_numbers = #tpu.dot_dimension_numbers<[1], [0], [0], [1], [0, 0, 1, 1], [], []>} : vector<64x8xbf16>, vector<8x8xbf16>, vector<64x8xf32> -> vector<64x8xf32>
    %92 = arith.addf %86, %91 : vector<64x8xf32>
    %c0_106 = arith.constant 0 : index
    %c2_107 = arith.constant 2 : index
    %c0_108 = arith.constant 0 : index
    %c0_109 = arith.constant 0 : index
    %93 = vector.load %arg15[%c0_106, %c2_107, %c0_108, %c0_109] : memref<1x14x8x8xbf16, #tpu.memory_space<vmem>>, vector<1x8x8x8xbf16>
    %94 = vector.shape_cast %93 : vector<1x8x8x8xbf16> to vector<64x8xbf16>
    %c2_110 = arith.constant 2 : index
    %c0_111 = arith.constant 0 : index
    %c0_112 = arith.constant 0 : index
    %95 = vector.load %arg8[%c2_110, %c0_111, %c0_112] : memref<7x8x8xbf16, #tpu.memory_space<vmem>>, vector<1x8x8xbf16>
    %96 = vector.shape_cast %95 : vector<1x8x8xbf16> to vector<8x8xbf16>
    %cst_113 = arith.constant dense<0.000000e+00> : vector<64x8xf32>
    %97 = tpu.matmul %94, %96, %cst_113 {dimension_numbers = #tpu.dot_dimension_numbers<[1], [0], [0], [1], [0, 0, 1, 1], [], []>} : vector<64x8xbf16>, vector<8x8xbf16>, vector<64x8xf32> -> vector<64x8xf32>
    %98 = arith.addf %92, %97 : vector<64x8xf32>
    %c0_114 = arith.constant 0 : index
    %c3_115 = arith.constant 3 : index
    %c0_116 = arith.constant 0 : index
    %c0_117 = arith.constant 0 : index
    %99 = vector.load %arg15[%c0_114, %c3_115, %c0_116, %c0_117] : memref<1x14x8x8xbf16, #tpu.memory_space<vmem>>, vector<1x8x8x8xbf16>
    %100 = vector.shape_cast %99 : vector<1x8x8x8xbf16> to vector<64x8xbf16>
    %c3_118 = arith.constant 3 : index
    %c0_119 = arith.constant 0 : index
    %c0_120 = arith.constant 0 : index
    %101 = vector.load %arg8[%c3_118, %c0_119, %c0_120] : memref<7x8x8xbf16, #tpu.memory_space<vmem>>, vector<1x8x8xbf16>
    %102 = vector.shape_cast %101 : vector<1x8x8xbf16> to vector<8x8xbf16>
    %cst_121 = arith.constant dense<0.000000e+00> : vector<64x8xf32>
    %103 = tpu.matmul %100, %102, %cst_121 {dimension_numbers = #tpu.dot_dimension_numbers<[1], [0], [0], [1], [0, 0, 1, 1], [], []>} : vector<64x8xbf16>, vector<8x8xbf16>, vector<64x8xf32> -> vector<64x8xf32>
    %104 = arith.addf %98, %103 : vector<64x8xf32>
    %c0_122 = arith.constant 0 : index
    %c4_123 = arith.constant 4 : index
    %c0_124 = arith.constant 0 : index
    %c0_125 = arith.constant 0 : index
    %105 = vector.load %arg15[%c0_122, %c4_123, %c0_124, %c0_125] : memref<1x14x8x8xbf16, #tpu.memory_space<vmem>>, vector<1x8x8x8xbf16>
    %106 = vector.shape_cast %105 : vector<1x8x8x8xbf16> to vector<64x8xbf16>
    %c4_126 = arith.constant 4 : index
    %c0_127 = arith.constant 0 : index
    %c0_128 = arith.constant 0 : index
    %107 = vector.load %arg8[%c4_126, %c0_127, %c0_128] : memref<7x8x8xbf16, #tpu.memory_space<vmem>>, vector<1x8x8xbf16>
    %108 = vector.shape_cast %107 : vector<1x8x8xbf16> to vector<8x8xbf16>
    %cst_129 = arith.constant dense<0.000000e+00> : vector<64x8xf32>
    %109 = tpu.matmul %106, %108, %cst_129 {dimension_numbers = #tpu.dot_dimension_numbers<[1], [0], [0], [1], [0, 0, 1, 1], [], []>} : vector<64x8xbf16>, vector<8x8xbf16>, vector<64x8xf32> -> vector<64x8xf32>
    %110 = arith.addf %104, %109 : vector<64x8xf32>
    %c0_130 = arith.constant 0 : index
    %c5_131 = arith.constant 5 : index
    %c0_132 = arith.constant 0 : index
    %c0_133 = arith.constant 0 : index
    %111 = vector.load %arg15[%c0_130, %c5_131, %c0_132, %c0_133] : memref<1x14x8x8xbf16, #tpu.memory_space<vmem>>, vector<1x8x8x8xbf16>
    %112 = vector.shape_cast %111 : vector<1x8x8x8xbf16> to vector<64x8xbf16>
    %c5_134 = arith.constant 5 : index
    %c0_135 = arith.constant 0 : index
    %c0_136 = arith.constant 0 : index
    %113 = vector.load %arg8[%c5_134, %c0_135, %c0_136] : memref<7x8x8xbf16, #tpu.memory_space<vmem>>, vector<1x8x8xbf16>
    %114 = vector.shape_cast %113 : vector<1x8x8xbf16> to vector<8x8xbf16>
    %cst_137 = arith.constant dense<0.000000e+00> : vector<64x8xf32>
    %115 = tpu.matmul %112, %114, %cst_137 {dimension_numbers = #tpu.dot_dimension_numbers<[1], [0], [0], [1], [0, 0, 1, 1], [], []>} : vector<64x8xbf16>, vector<8x8xbf16>, vector<64x8xf32> -> vector<64x8xf32>
    %116 = arith.addf %110, %115 : vector<64x8xf32>
    %c0_138 = arith.constant 0 : index
    %c6_139 = arith.constant 6 : index
    %c0_140 = arith.constant 0 : index
    %c0_141 = arith.constant 0 : index
    %117 = vector.load %arg15[%c0_138, %c6_139, %c0_140, %c0_141] : memref<1x14x8x8xbf16, #tpu.memory_space<vmem>>, vector<1x8x8x8xbf16>
    %118 = vector.shape_cast %117 : vector<1x8x8x8xbf16> to vector<64x8xbf16>
    %c6_142 = arith.constant 6 : index
    %c0_143 = arith.constant 0 : index
    %c0_144 = arith.constant 0 : index
    %119 = vector.load %arg8[%c6_142, %c0_143, %c0_144] : memref<7x8x8xbf16, #tpu.memory_space<vmem>>, vector<1x8x8xbf16>
    %120 = vector.shape_cast %119 : vector<1x8x8xbf16> to vector<8x8xbf16>
    %cst_145 = arith.constant dense<0.000000e+00> : vector<64x8xf32>
    %121 = tpu.matmul %118, %120, %cst_145 {dimension_numbers = #tpu.dot_dimension_numbers<[1], [0], [0], [1], [0, 0, 1, 1], [], []>} : vector<64x8xbf16>, vector<8x8xbf16>, vector<64x8xf32> -> vector<64x8xf32>
    %122 = arith.addf %116, %121 : vector<64x8xf32>
    %c0_146 = arith.constant 0 : index
    %c0_147 = arith.constant 0 : index
    %123 = vector.load %arg9[%c0_146, %c0_147] : memref<1x8xf32, #tpu.memory_space<vmem>>, vector<1x8xf32>
    %124 = vector.broadcast %123 : vector<1x8xf32> to vector<64x8xf32>
    %125 = arith.addf %122, %124 : vector<64x8xf32>
    %cst_148 = arith.constant 0.000000e+00 : f32
    %126 = vector.broadcast %cst_148 : f32 to vector<64x8xf32>
    %127 = arith.maximumf %125, %126 : vector<64x8xf32>
    %128 = arith.truncf %127 : vector<64x8xf32> to vector<64x8xbf16>
    %c0_149 = arith.constant 0 : index
    %c0_150 = arith.constant 0 : index
    %129 = vector.load %arg10[%c0_149, %c0_150] : memref<8x16xbf16, #tpu.memory_space<vmem>>, vector<8x16xbf16>
    %cst_151 = arith.constant dense<0.000000e+00> : vector<64x16xf32>
    %130 = tpu.matmul %25, %129, %cst_151 {dimension_numbers = #tpu.dot_dimension_numbers<[1], [0], [0], [1], [0, 0, 1, 1], [], []>} : vector<64x8xbf16>, vector<8x16xbf16>, vector<64x16xf32> -> vector<64x16xf32>
    %c0_152 = arith.constant 0 : index
    %c0_153 = arith.constant 0 : index
    %131 = vector.load %arg11[%c0_152, %c0_153] : memref<8x16xbf16, #tpu.memory_space<vmem>>, vector<8x16xbf16>
    %cst_154 = arith.constant dense<0.000000e+00> : vector<64x16xf32>
    %132 = tpu.matmul %128, %131, %cst_154 {dimension_numbers = #tpu.dot_dimension_numbers<[1], [0], [0], [1], [0, 0, 1, 1], [], []>} : vector<64x8xbf16>, vector<8x16xbf16>, vector<64x16xf32> -> vector<64x16xf32>
    %133 = arith.addf %130, %132 : vector<64x16xf32>
    %c0_155 = arith.constant 0 : index
    %c0_156 = arith.constant 0 : index
    %134 = vector.load %arg12[%c0_155, %c0_156] : memref<1x16xf32, #tpu.memory_space<vmem>>, vector<1x16xf32>
    %135 = vector.broadcast %134 : vector<1x16xf32> to vector<64x16xf32>
    %136 = arith.addf %133, %135 : vector<64x16xf32>
    %c0_157 = arith.constant 0 : index
    %c0_158 = arith.constant 0 : index
    %c0_159 = arith.constant 0 : index
    %137 = vector.load %arg1[%c0_157, %c0_158, %c0_159] : memref<1x64x16xf32, #tpu.memory_space<vmem>>, vector<1x64x16xf32>
    %138 = vector.shape_cast %137 : vector<1x64x16xf32> to vector<64x16xf32>
    %cst_160 = arith.constant 1.000000e-01 : f32
    %139 = vector.broadcast %cst_160 : f32 to vector<64x16xf32>
    %140 = arith.mulf %136, %139 : vector<64x16xf32>
    %141 = arith.addf %140, %138 : vector<64x16xf32>
    %cst_161 = arith.constant 0.000000e+00 : f32
    %142 = vector.broadcast %cst_161 : f32 to vector<64x16xf32>
    %143 = arith.maximumf %141, %142 : vector<64x16xf32>
    %144 = vector.shape_cast %143 : vector<64x16xf32> to vector<1x64x16xf32>
    %c0_162 = arith.constant 0 : index
    %c0_163 = arith.constant 0 : index
    %c0_164 = arith.constant 0 : index
    %145 = vector.load %arg13[%c0_162, %c0_163, %c0_164] : memref<1x64x16xf32, #tpu.memory_space<vmem>>, vector<1x64x16xf32>
    tpu.vector_store %arg13[%c0_162, %c0_163, %c0_164], %144 {strides = array<i32>} : memref<1x64x16xf32, #tpu.memory_space<vmem>>, vector<1x64x16xf32>,
    return
  }
  func.func @transform_0(%arg0: i32) -> (i32, i32, i32) {
    %c0_i32 = arith.constant 0 : i32
    %c0_i32_0 = arith.constant 0 : i32
    %c0_i32_1 = arith.constant 0 : i32
    return %arg0, %c0_i32, %c0_i32_0 : i32, i32, i32
  }
  func.func @transform_1(%arg0: i32) -> (i32, i32) {
    %c0_i32 = arith.constant 0 : i32
    %c0_i32_0 = arith.constant 0 : i32
    %c0_i32_1 = arith.constant 0 : i32
    return %c0_i32, %c0_i32_0 : i32, i32
  }
  func.func @transform_2(%arg0: i32) -> (i32, i32) {
    %c0_i32 = arith.constant 0 : i32
    %c0_i32_0 = arith.constant 0 : i32
    %c0_i32_1 = arith.constant 0 : i32
    return %c0_i32, %c0_i32_0 : i32, i32
  }
  func.func @transform_3(%arg0: i32) -> (i32, i32) {
    %c0_i32 = arith.constant 0 : i32
    %c0_i32_0 = arith.constant 0 : i32
    %c0_i32_1 = arith.constant 0 : i32
    return %c0_i32, %c0_i32_0 : i32, i32
  }
  func.func @transform_4(%arg0: i32) -> (i32, i32) {
    %c0_i32 = arith.constant 0 : i32
    %c0_i32_0 = arith.constant 0 : i32
    %c0_i32_1 = arith.constant 0 : i32
    return %c0_i32, %c0_i32_0 : i32, i32
  }
  func.func @transform_5(%arg0: i32) -> (i32, i32, i32) {
    %c0_i32 = arith.constant 0 : i32
    %c0_i32_0 = arith.constant 0 : i32
    %c0_i32_1 = arith.constant 0 : i32
    %c0_i32_2 = arith.constant 0 : i32
    return %c0_i32, %c0_i32_0, %c0_i32_1 : i32, i32, i32
  }
  func.func @transform_6(%arg0: i32) -> (i32, i32) {
    %c0_i32 = arith.constant 0 : i32
    %c0_i32_0 = arith.constant 0 : i32
    %c0_i32_1 = arith.constant 0 : i32
    return %c0_i32, %c0_i32_0 : i32, i32
  }
  func.func @transform_7(%arg0: i32) -> (i32, i32, i32) {
    %c0_i32 = arith.constant 0 : i32
    %c0_i32_0 = arith.constant 0 : i32
    %c0_i32_1 = arith.constant 0 : i32
    %c0_i32_2 = arith.constant 0 : i32
    return %c0_i32, %c0_i32_0, %c0_i32_1 : i32, i32, i32
  }
  func.func @transform_8(%arg0: i32) -> (i32, i32) {
    %c0_i32 = arith.constant 0 : i32
    %c0_i32_0 = arith.constant 0 : i32
    %c0_i32_1 = arith.constant 0 : i32
    return %c0_i32, %c0_i32_0 : i32, i32
  }
  func.func @transform_9(%arg0: i32) -> (i32, i32) {
    %c0_i32 = arith.constant 0 : i32
    %c0_i32_0 = arith.constant 0 : i32
    %c0_i32_1 = arith.constant 0 : i32
    return %c0_i32, %c0_i32_0 : i32, i32
  }
  func.func @transform_10(%arg0: i32) -> (i32, i32) {
    %c0_i32 = arith.constant 0 : i32
    %c0_i32_0 = arith.constant 0 : i32
    %c0_i32_1 = arith.constant 0 : i32
    return %c0_i32, %c0_i32_0 : i32, i32
  }
  func.func @transform_11(%arg0: i32) -> (i32, i32) {
    %c0_i32 = arith.constant 0 : i32
    %c0_i32_0 = arith.constant 0 : i32
    %c0_i32_1 = arith.constant 0 : i32
    return %c0_i32, %c0_i32_0 : i32, i32
  }
  func.func @transform_12(%arg0: i32) -> (i32, i32, i32) {
    %c0_i32 = arith.constant 0 : i32
    %c0_i32_0 = arith.constant 0 : i32
    %c0_i32_1 = arith.constant 0 : i32
    return %arg0, %c0_i32, %c0_i32_0 : i32, i32, i32
  }
}

</mosaic_0001>

<bundles_post_ra>
// kernel: tpu_custom_call.1
= control target key start
LH: loop header
LB: loop body
LE: loop exit
PB: predicated region body
PF: predicated region fallthrough
CT: control target
= control target key end

     0   :  { %s2957_s21 = smov 0   ;;  %s3591_s0 = inlined_call_operand.vmem [shape: f32[2,64,16], index: 0, kind: input, shape index: {}]   ;;  %s3592_s1 = inlined_call_operand.vmem [shape: bf16[16,8], index: 1, kind: input, shape index: {}]   ;;  %s3593_s2 = inlined_call_operand.vmem [shape: f32[1,8], index: 2, kind: input, shape index: {}]   ;;  %s3594_s3 = inlined_call_operand.vmem [shape: bf16[16,8], index: 3, kind: input, shape index: {}]   ;;  %s3595_s4 = inlined_call_operand.vmem [shape: f32[1,8], index: 4, kind: input, shape index: {}]   ;;  %s3596_s5 = inlined_call_operand.vmem [shape: bf16[7,8,8], index: 5, kind: input, shape index: {}]   ;;  %s3597_s6 = inlined_call_operand.vmem [shape: f32[1,8], index: 6, kind: input, shape index: {}]   ;;  %s3598_s7 = inlined_call_operand.vmem [shape: bf16[7,8,8], index: 7, kind: input, shape index: {}]   ;;  %s3599_s8 = inlined_call_operand.vmem [shape: f32[1,8], index: 8, kind: input, shape index: {}]   ;;  %s3600_s9 = inlined_call_operand.vmem [shape: bf16[8,16], index: 9, kind: input, shape index: {}]   ;;  %s3601_s10 = inlined_call_operand.vmem [shape: bf16[8,16], index: 10, kind: input, shape index: {}]   ;;  %s3602_s11 = inlined_call_operand.vmem [shape: f32[1,16], index: 11, kind: input, shape index: {}]   ;;  %s3603_s12 = inlined_call_operand.vmem [shape: f32[2,64,16], index: 12, kind: output, shape index: {}]  }
   0x1 LB: > { %s2576_s22 = sadd.s32 4294967295, %s2889_s21   ;;  %p2580_p0 = scmp.ge.s32.totalorder %s2889_s21, 1  ;;  %s2889_s21 = sphi %s2957_s21, %s22_s21  }
   0x2   : > { %p362_p1 = scmp.lt.s32.totalorder %s2889_s21, 3 }
   0x4   : > { %p363_p2 = pnand %p2580_p0, %p362_p1 }
   0x5   : > { %p404_p3 = scmp.lt.s32.totalorder (!%p363_p2), %s2576_s22, 1 }
   0x6   : > { %366 = sbr.rel (%p363_p2) target bundleno = 797 (0x31d), region = 68 }
   0xb   : > { %v2833_v0 = vld [vmem:[%s3594_s3] sm:$0xff]  ;;  %s3621_s22 = smov (!%p404_p3, %s2576_s22), 1  ;;  %vm501_vm0 = vcmask 130048   ;;  %vm415_vm1 = vcmask 60418   ;;  %vm416_vm2 = vsmask.f32 7946 }
   0xc   : > { %v2834_v1 = vld [vmem:[%s3592_s1] sm:$0xff]  ;;  %521 = vmatpush.bf16.msra.mxu0 %v2833_v0  ;;  %2867 = vmatpush.bf16.msra.mxu2 %v2833_v0  ;;  %s2831_s27 = sshll.u32 %s3621_s22, 6  ;;  %vm2997_vm3 = vmand %vm415_vm1, %vm416_vm2  ;;  %vm442_vm4 = vcmask 58368   ;;  %vm443_vm5 = vsmask.f32 1280  ;;  %vm869_vm7 = vcmask 1043456  }
   0xd   : > { %570 = vmatpush.bf16.msra.mxu1 %v2834_v1  ;;  %2868 = vmatpush.bf16.msra.mxu3 %v2834_v1  ;;  %s2979_s30 = scalar_lea.vmem %s3591_s0, %s2831_s27  ;;  %v418_v15 = vld [vmem:[#allocation2] sm:$0xc]  ;;  %vm3004_vm6 = vmand %vm442_vm4, %vm443_vm5  ;;  %v445_v18 = vld [vmem:[#allocation2 + $0x8] sm:$0x3]  ;;  %vm469_vm8 = vcmask 60416   ;;  %vm807_vm9 = vcmask 1040384   ;;  %s3556_s15 = scalar_lea.vmem %s3603_s12, %s2831_s27 }
   0xe   : > { %v477_v2 = vld [vmem:[%s2979_s30] sm:$0xff]  ;;  %v478_v3 = vld [vmem:[%s2979_s30 + $0x8] sm:$0xff]  ;;  %v479_v8 = vld [vmem:[%s2979_s30 + $0x10] sm:$0xff]  ;;  %v419_v16 = vsel %vm2997_vm3, 0, %v418_v15  ;;  %v446_v19 = vsel %vm3004_vm6, 0, %v445_v18  ;;  %vm808_vm10 = vcmask 1044484  }
   0xf   : > { %v485_v4 = vpack.c.bf16 %v478_v3, %v477_v2  ;;  %v481_v5 = vld [vmem:[%s2979_s30 + $0x20] sm:$0xff]  ;;  %v482_v6 = vld [vmem:[%s2979_s30 + $0x28] sm:$0xff]  ;;  %v480_v9 = vld [vmem:[%s2979_s30 + $0x18] sm:$0xff]  ;;  %420 = vst [vmem:[#allocation2] sm:$0xc] %v419_v16  ;;  %vm856_vm12 = vcmask 64512  }
  0x10   : > { %v487_v7 = vpack.c.bf16 %v482_v6, %v481_v5  ;;  %v483_v10 = vld [vmem:[%s2979_s30 + $0x30] sm:$0xff]  ;;  %v484_v11 = vld [vmem:[%s2979_s30 + $0x38] sm:$0xff]  ;;  %v486_v12 = vpack.c.bf16 %v480_v9, %v479_v8  ;;  %v2609_v20 = vld [vmem:[%s3596_s5 + $0x4] sm:$0xf]  ;;  %447 = vst [vmem:[#allocation2 + $0x8] sm:$0x3] %v446_v19 }
  0x11   : > { %2589 = vmatmul.msk.bf16.vlgmr.msra.gmra.mxu0 %vm501_vm0, %v485_v4  ;;  %2597 = vmatmul.msk.bf16.vlgmr.msra.gmra.mxu1 %vm501_vm0, %v485_v4  ;;  %v488_v13 = vpack.c.bf16 %v484_v11, %v483_v10  ;;  %v782_v21 = vld [vmem:[%s3596_s5] sm:$0xf]  ;;  %v871_v22 = vsel %vm869_vm7, %v2609_v20, 0  ;;  %v421_v24 = vld [vmem:[#allocation2 + $0xc] sm:$0xc]  ;;  %vm3086_vm13 = vmor %vm807_vm9, %vm808_vm10 }
  0x12   : > { %2591 = vmatmul.msk.bf16.vlgmr.msra.gmra.mxu2 %vm501_vm0, %v487_v7  ;;  %2599 = vmatmul.msk.bf16.vlgmr.msra.gmra.mxu3 %vm501_vm0, %v487_v7  ;;  %v927_v23 = vsel %vm869_vm7, %v782_v21, 0  ;;  %v422_v25 = vsel %vm2997_vm3, 0, %v421_v24  ;;  %v448_v26 = vld [vmem:[#allocation2 + $0x14] sm:$0x3]  ;;  %v2626_v28 = vld [vmem:[%s3596_s5 + $0x8] sm:$0xf] }
  0x13   : > { %880 = vmatpush.bf16.msrb.mxu2 %v871_v22  ;;  %936 = vmatpush.bf16.msrb.mxu3 %v927_v23  ;;  %423 = vst [vmem:[#allocation2 + $0xc] sm:$0xc] %v422_v25  ;;  %v449_v27 = vsel %vm3004_vm6, 0, %v448_v26  ;;  %v1100_v29 = vsel %vm869_vm7, %v2626_v28, 0  ;;  %v2631_v30 = vld [vmem:[%s3596_s5 + $0xc] sm:$0xf] }
  0x14   : > { %450 = vst [vmem:[#allocation2 + $0x14] sm:$0x3] %v449_v27  ;;  %1109 = vmatpush.bf16.msrb.mxu0 %v1100_v29  ;;  %v1174_v31 = vsel %vm869_vm7, %v2631_v30, 0  ;;  %v451_v32 = vld [vmem:[#allocation2 + $0x20] sm:$0x3] }
  0x15   : > { %1183 = vmatpush.bf16.msrb.mxu1 %v1174_v31  ;;  %v452_v33 = vsel %vm3004_vm6, 0, %v451_v32  ;;  %v424_v34 = vld [vmem:[#allocation2 + $0x18] sm:$0xc]  ;;  %v3037_v36 = vld [vmem:[%s3595_s4] ss:$0 sm:$0xff] }
  0x16   : > { %453 = vst [vmem:[#allocation2 + $0x20] sm:$0x3] %v452_v33  ;;  %v425_v35 = vsel %vm2997_vm3, 0, %v424_v34  ;;  %v454_v37 = vld [vmem:[#allocation2 + $0x2c] sm:$0x3] }
  0x17   : > { %426 = vst [vmem:[#allocation2 + $0x18] sm:$0xc] %v425_v35  ;;  %v620_v38 = vld [vmem:[#allocation2] sm:$0xc]  ;;  %v455_v39 = vsel %vm3004_vm6, 0, %v454_v37 }
  0x18   : > { %v2652_v40 = vld [vmem:[%s3596_s5 + $0x10] sm:$0xf]  ;;  %v457_v41 = vld [vmem:[#allocation2 + $0x38] sm:$0x3]  ;;  %v460_v42 = vld [vmem:[#allocation2 + $0x44] sm:$0x3] }
  0x19   : > { %v1371_v45 = vsel %vm869_vm7, %v2652_v40, 0  ;;  %v458_v46 = vsel %vm3004_vm6, 0, %v457_v41  ;;  %v461_v47 = vsel %vm3004_vm6, 0, %v460_v42  ;;  %v463_v48 = vld [vmem:[#allocation2 + $0x50] sm:$0x3]  ;;  %v639_v49 = vshrl.u32 %v620_v38, 16 }
  0x1a   : > { %v622_v43 = vld [vmem:[#allocation2 + $0xc] sm:$0xc]  ;;  %1380 = vmatpush.bf16.msra.mxu2 %v1371_v45  ;;  %v464_v51 = vsel %vm3004_vm6, 0, %v463_v48  ;;  %v466_v52 = vld [vmem:[#allocation2 + $0x5c] sm:$0x3]  ;;  %v642_v53 = vshll.u32 %v620_v38, 16 }
  0x1b   : > { %456 = vst [vmem:[#allocation2 + $0x2c] sm:$0x3] %v455_v39  ;;  %v467_v54 = vsel %vm3004_vm6, 0, %v466_v52  ;;  %v427_v55 = vld [vmem:[#allocation2 + $0x24] sm:$0xc]  ;;  %v641_v58 = vrot.slane %v639_v49, 6 }
  0x1c   : > { %459 = vst [vmem:[#allocation2 + $0x38] sm:$0x3] %v458_v46  ;;  %v428_v57 = vsel %vm2997_vm3, 0, %v427_v55  ;;  %v657_v59 = vshrl.u32 %v622_v43, 16  ;;  %v644_v62 = vrot.slane %v642_v53, 7  ;;  %v660_v63 = vshll.u32 %v622_v43, 16 }
  0x1d   : > { %462 = vst [vmem:[#allocation2 + $0x44] sm:$0x3] %v461_v47  ;;  %v2665_v0 = vld [vmem:[%s3596_s5 + $0x14] sm:$0xf]  ;;  %v430_v5 = vld [vmem:[#allocation2 + $0x30] sm:$0xc] }
  0x1e   : > { %465 = vst [vmem:[#allocation2 + $0x50] sm:$0x3] %v464_v51  ;;  %v624_v60 = vld [vmem:[#allocation2 + $0x18] sm:$0xc]  ;;  %v1496_v1 = vsel %vm869_vm7, %v2665_v0, 0  ;;  %v659_v9 = vrot.slane %v657_v59, 6 }
  0x1f   : > { %468 = vst [vmem:[#allocation2 + $0x5c] sm:$0x3] %v467_v54  ;;  %1505 = vmatpush.bf16.msra.mxu3 %v1496_v1  ;;  %v675_v3 = vshrl.u32 %v624_v60, 16  ;;  %v678_v4 = vshll.u32 %v624_v60, 16  ;;  %v783_v8 = vld [vmem:[#allocation2] sm:$0x8] }
  0x20   : > { %429 = vst [vmem:[#allocation2 + $0x24] sm:$0xc] %v428_v57  ;;  %v431_v10 = vsel %vm2997_vm3, 0, %v430_v5  ;;  %v433_v11 = vld [vmem:[#allocation2 + $0x3c] sm:$0xc]  ;;  %v662_v15 = vrot.slane %v660_v63, 7 }
  0x21   : > { %2590 = vmatmul.msk.bf16.gmra.mxu0 %vm501_vm0, %v486_v12  ;;  %2598 = vmatmul.msk.bf16.gmra.mxu1 %vm501_vm0, %v486_v12  ;;  %v2670_v16 = vld [vmem:[%s3596_s5 + $0x18] sm:$0xf]  ;;  %432 = vst [vmem:[#allocation2 + $0x30] sm:$0xc] %v431_v10  ;;  %v434_v17 = vsel %vm2997_vm3, 0, %v433_v11  ;;  %v970_v19 = vshrl.u32 %v783_v8, 16 }
  0x22   : > { %2592 = vmatmul.msk.bf16.gmra.mxu2 %vm501_vm0, %v488_v13  ;;  %2600 = vmatmul.msk.bf16.gmra.mxu3 %vm501_vm0, %v488_v13  ;;  %v645_v13 = vor.u32 %v644_v62, %v641_v58  ;;  %v1717_v20 = vsel %vm869_vm7, %v2670_v16, 0  ;;  %435 = vst [vmem:[#allocation2 + $0x3c] sm:$0xc] %v434_v17  ;;  %v677_v22 = vrot.slane %v675_v3, 6  ;;  %v680_v23 = vrot.slane %v678_v4, 7 }
  0x23   : > { %1726 = vmatpush.bf16.msra.mxu0 %v1717_v20  ;;  %v3071_v25 = vld [vmem:[#allocation2 + $0xc] sm:$0x8]  ;;  %v2601_v26 = vrot.slane %v783_v8, 11  ;;  %vm636_vm11 = vsmask.f32 5392  ;;  %v663_v29 = vor.u32 %v662_v15, %v659_v9  ;;  %v3079_v33 = vrot.slane %v970_v19, 11 }
  0x24   : > { %v3073_v28 = vrot.slane %v645_v13, 4  ;;  %v983_v30 = vshrl.u32 %v3071_v25, 16  ;;  %v3076_v31 = vld [vmem:[#allocation2 + $0x18] sm:$0x8]  ;;  %v681_v40 = vor.u32 %v680_v23, %v677_v22  ;;  %vm966_vm14 = vsmask.f32 256  ;;  %vm3111_vm1 = vmor %vm443_vm5, %vm636_vm11 }
  0x25   : > { %v996_v34 = vshrl.u32 %v3076_v31, 16  ;;  %vm967_vm15 = vsmask.f32 4368  ;;  %v664_v47 = vrot.slane %v663_v29, 4  ;;  %v2603_v49 = vrot.slane %v3076_v31, 11 }
  0x26   : > { %v3092_v48 = vrot.slane %v983_v30, 11  ;;  %v3099_v58 = vrot.slane %v681_v40, 4  ;;  %vm3131_vm2 = vmor %vm966_vm14, %vm967_vm15  ;;  %vm1230_vm4 = vsmask.f32 7440  ;;  %vm1434_vm5 = vcmask 1042432  }
  0x27   : > { %v3095_v55 = vld [vmem:[#allocation2 + $0x24] sm:$0x8]  ;;  %v3101_v59 = vrot.slane %v996_v34, 11  ;;  %vm1435_vm6 = vcmask 1046532   ;;  %vm1543_vm11 = vsmask.f32 2304 }
  0x28   : > { %v1009_v63 = vshrl.u32 %v3095_v55, 16  ;;  %v2604_v4 = vrot.slane %v3095_v55, 11  ;;  %v3106_v9 = vld [vmem:[#allocation2 + $0x30] sm:$0x8]  ;;  %vm3270_vm10 = vmor %vm1434_vm5, %vm1435_vm6 }
  0x29   : > { %v628_v40 = vld [vmem:[#allocation2 + $0x30] sm:$0xc] }
  0x2a   : > { %v3120_v22 = vrot.slane %v1009_v63, 11 }
  0x8e   : > { %v523_v44 = vpop.f32.mrf.mxu0 }
  0x8f   : > { %v524_v50 = vadd.f32 %v3037_v36, %v523_v44  ;;  %v2602_v44 = vrot.slane %v3071_v25, 11 }
  0x91   : > { %v543_v56 = vmax.f32 %v524_v50, 0.0  ;;  %v626_v50 = vld [vmem:[#allocation2 + $0x24] sm:$0xc] }
  0x92   : > { %v696_v62 = vshll.u32 %v626_v50, 16 }
  0x93   : > { %v604_v61 = vpack.c.bf16 %v543_v56, %v543_v56 }
  0x95   : > { %612 = vst.msk [vmem:[#allocation2 + $0x4] sm:$0xf] %vm469_vm8, %v604_v61  ;;  %v533_v2 = vpop.f32.mrf.mxu2  ;;  %v693_v61 = vshrl.u32 %v626_v50, 16 }
  0x96   : > { %v525_v6 = vpop.f32.mrf.mxu0  ;;  %v534_v7 = vadd.f32 %v3037_v36, %v533_v2 }
  0x97   : > { %v526_v12 = vadd.f32 %v3037_v36, %v525_v6  ;;  %v3116_v20 = vrot.slane %v693_v61, 6  ;;  %v711_v61 = vshrl.u32 %v628_v40, 16 }
  0x98   : > { %v547_v18 = vmax.f32 %v534_v7, 0.0 }
  0x99   : > { %v544_v21 = vmax.f32 %v526_v12, 0.0  ;;  %v1535_v12 = vld [vmem:[#allocation2 + $0x8] sm:$0x3] }
  0x9a   : > { %v608_v24 = vpack.c.bf16 %v547_v18, %v547_v18 }
  0x9b   : > { %v605_v27 = vpack.c.bf16 %v544_v21, %v544_v21  ;;  %v3118_v21 = vrot.slane %v696_v62, 7 }
  0x9c   : > { %616 = vst.msk [vmem:[#allocation2 + $0x34] sm:$0xf] %vm469_vm8, %v608_v24  ;;  %v621_v32 = vld [vmem:[#allocation2 + $0x4] sm:$0x7] }
  0x9d   : > { %613 = vst.msk [vmem:[#allocation2 + $0x10] sm:$0xf] %vm469_vm8, %v605_v27  ;;  %v535_v35 = vpop.f32.mrf.mxu2  ;;  %v812_v37 = vrot.slane %v621_v32, 7  ;;  %v648_v38 = vshrl.u32 %v621_v32, 16  ;;  %v651_v39 = vshll.u32 %v621_v32, 16 }
  0x9e   : > { %v528_v41 = vpop.f32.mrf.mxu0  ;;  %v536_v42 = vadd.f32 %v3037_v36, %v535_v35  ;;  %v958_v45 = vld [vmem:[#allocation2 + $0x4] sm:$0xf] }
  0x9f   : > { %v529_v46 = vadd.f32 %v3037_v36, %v528_v41  ;;  %v650_v52 = vrot.slane %v648_v38, 6  ;;  %v653_v53 = vrot.slane %v651_v39, 7  ;;  %v975_v54 = vshrl.u32 %v958_v45, 16  ;;  %v2634_v1 = vld [vmem:[#allocation2 + $0x4] sm:$0xf] }
  0xa0   : > { %v548_v51 = vmax.f32 %v536_v42, 0.0  ;;  %v813_v57 = vsel %vm3086_vm13, %v2601_v26, %v812_v37  ;;  %v978_v3 = vshll.u32 %v958_v45, 16  ;;  %v2605_v39 = vrot.slane %v3106_v9, 11 }
  0xa1   : > { %v545_v56 = vmax.f32 %v529_v46, 0.0  ;;  %v977_v2 = vrot.slane %v975_v54, 7  ;;  %v844_v7 = vunpack.c.l.b16 %v813_v57  ;;  %v654_v8 = vor.u32 %v653_v53, %v650_v52 }
  0xa2   : > { %v609_v60 = vpack.c.bf16 %v548_v51, %v548_v51 }
  0xa3   : > { %v606_v0 = vpack.c.bf16 %v545_v56, %v545_v56  ;;  %v655_v29 = vsel %vm3111_vm1, %v3073_v28, %v654_v8  ;;  %v980_v30 = vor.u32 %v978_v3, %v977_v2  ;;  %v699_v28 = vor.u32 %v3118_v21, %v3116_v20  ;;  %v3140_v52 = vld [vmem:[#allocation2 + $0x34] sm:$0x7] }
  0xa4   : > { %v2835_v5 = vld [vmem:[#allocation2 + $0xc] sm:$0xf0]  ;;  %617 = vst.msk [vmem:[#allocation2 + $0x40] sm:$0xf] %vm469_vm8, %v609_v60  ;;  %v902_v50 = vunpack.c.l.b16 %v655_v29  ;;  %v723_v31 = vshll.u32 %v3140_v52, 16 }
  0xa5   : > { %v623_v6 = vld [vmem:[#allocation2 + $0x10] sm:$0x7]  ;;  %614 = vst.msk [vmem:[#allocation2 + $0x1c] sm:$0xf] %vm469_vm8, %v606_v0  ;;  %v2635_v10 = vor.u32 %v2835_v5, %v2634_v1  ;;  %v538_v16 = vpop.f32.mrf.mxu2  ;;  %v981_v54 = vsel %vm3131_vm2, %v3079_v33, %v980_v30  ;;  %v3152_v5 = vld [vmem:[#allocation2 + $0x3c] sm:$0x8] }
  0xa6   : > { %v816_v11 = vrot.slane %v623_v6, 7  ;;  %v666_v13 = vshrl.u32 %v623_v6, 16  ;;  %v669_v15 = vshll.u32 %v623_v6, 16  ;;  %v530_v17 = vpop.f32.mrf.mxu0  ;;  %v959_v18 = vld [vmem:[#allocation2 + $0x10] sm:$0xf]  ;;  %v539_v19 = vadd.f32 %v3037_v36, %v538_v16 }
  0xa7   : > { %v531_v23 = vadd.f32 %v3037_v36, %v530_v17  ;;  %2648 = vmatmul.msk.bf16.vlgmr.msrb.gmra.mxu1 %vm856_vm12, %v2635_v10  ;;  %v988_v32 = vshrl.u32 %v959_v18, 16  ;;  %v714_v6 = vshll.u32 %v628_v40, 16  ;;  %v2606_v20 = vrot.slane %v3152_v5, 11 }
  0xa8   : > { %v817_v24 = vsel %vm3086_vm13, %v2602_v44, %v816_v11  ;;  %v668_v25 = vrot.slane %v666_v13, 6  ;;  %v671_v26 = vrot.slane %v669_v15, 7  ;;  %v549_v38 = vmax.f32 %v539_v19, 0.0 }
  0xa9   : > { %v845_v27 = vunpack.c.l.b16 %v817_v24  ;;  %v546_v34 = vmax.f32 %v531_v23, 0.0  ;;  %v990_v42 = vrot.slane %v988_v32, 7  ;;  %v991_v44 = vshll.u32 %v959_v18, 16 }
  0xaa   : > { %v672_v35 = vor.u32 %v671_v26, %v668_v25  ;;  %v610_v51 = vpack.c.bf16 %v549_v38, %v549_v38  ;;  %v713_v24 = vrot.slane %v711_v61, 6  ;;  %v716_v25 = vrot.slane %v714_v6, 7  ;;  %v962_v6 = vld [vmem:[#allocation2 + $0x34] sm:$0xf] }
  0xab   : > { %v852_v41 = vpack.c.b16 %v845_v27, %v844_v7  ;;  %v607_v45 = vpack.c.bf16 %v546_v34, %v546_v34  ;;  %v993_v56 = vor.u32 %v991_v44, %v990_v42  ;;  %v1075_v7 = vunpack.c.l.b16 %v981_v54  ;;  %v3155_v17 = vld [vmem:[#allocation2 + $0x40] sm:$0x7] }
  0xac   : > { %v673_v46 = vsel %vm3111_vm1, %v664_v47, %v672_v35  ;;  %v625_v57 = vld [vmem:[#allocation2 + $0x1c] sm:$0x7]  ;;  %618 = vst.msk [vmem:[#allocation2 + $0x4c] sm:$0xf] %vm469_vm8, %v610_v51  ;;  %v700_v27 = vrot.slane %v699_v28, 4  ;;  %v832_v29 = vrot.slane %v3155_v17, 7  ;;  %v717_v51 = vor.u32 %v716_v25, %v713_v24 }
  0xad   : > { %2610 = vmatmul.msk.bf16.vlgmr.msrb.gmra.mxu2 %vm856_vm12, %v852_v41  ;;  %v903_v53 = vunpack.c.l.b16 %v673_v46  ;;  %v960_v60 = vld [vmem:[#allocation2 + $0x1c] sm:$0xf]  ;;  %615 = vst.msk [vmem:[#allocation2 + $0x28] sm:$0xf] %vm469_vm8, %v607_v45  ;;  %v540_v62 = vpop.f32.mrf.mxu2  ;;  %v820_v63 = vrot.slane %v625_v57, 7  ;;  %v684_v47 = vshrl.u32 %v625_v57, 16  ;;  %v994_v3 = vsel %vm3131_vm2, %v3092_v48, %v993_v56 }
  0xae   : > { %v687_v0 = vshll.u32 %v625_v57, 16  ;;  %v1001_v1 = vshrl.u32 %v960_v60, 16  ;;  %v541_v33 = vadd.f32 %v3037_v36, %v540_v62  ;;  %v1076_v8 = vunpack.c.l.b16 %v994_v3  ;;  %v2638_v26 = vld [vmem:[#allocation2 + $0x1c] sm:$0xf]  ;;  %v436_v24 = vld [vmem:[#allocation2 + $0x48] sm:$0xc] }
  0xaf   : > { %v910_v2 = vpack.c.b16 %v903_v53, %v902_v50  ;;  %v686_v10 = vrot.slane %v684_v47, 6  ;;  %v1004_v16 = vshll.u32 %v960_v60, 16  ;;  %v828_v48 = vrot.slane %v3140_v52, 7  ;;  %v630_v50 = vld [vmem:[#allocation2 + $0x3c] sm:$0xc] }
  0xb0   : > { %v689_v11 = vrot.slane %v687_v0, 7  ;;  %v550_v13 = vmax.f32 %v541_v33, 0.0  ;;  %v1003_v15 = vrot.slane %v1001_v1, 7  ;;  %v1083_v18 = vpack.c.b16 %v1076_v8, %v1075_v7  ;;  %v439_v25 = vld [vmem:[#allocation2 + $0x54] sm:$0xc] }
  0xb1   : > { %2614 = vmatmul.msk.bf16.vlgmr.msrb.gmra.mxu3 %vm856_vm12, %v910_v2  ;;  %v821_v36 = vsel %vm3086_vm13, %v2603_v49, %v820_v63  ;;  %v720_v30 = vshrl.u32 %v3140_v52, 16  ;;  %v3170_v35 = vsel %vm3086_vm13, %v2605_v39, %v828_v48  ;;  %v725_v60 = vrot.slane %v723_v31, 7 }
  0xb2   : > { %v690_v19 = vor.u32 %v689_v11, %v686_v10  ;;  %v611_v21 = vpack.c.bf16 %v550_v13, %v550_v13  ;;  %v1006_v23 = vor.u32 %v1004_v16, %v1003_v15  ;;  %2627 = vmatmul.msk.bf16.vlgmr.msrb.gmra.mxu0 %vm856_vm12, %v1083_v18  ;;  %v846_v34 = vunpack.c.l.b16 %v821_v36  ;;  %v963_v18 = vld [vmem:[#allocation2 + $0x40] sm:$0xf] }
  0xb3   : > { %v729_v62 = vshrl.u32 %v630_v50, 16  ;;  %v738_v63 = vshrl.u32 %v3155_v17, 16  ;;  %v741_v55 = vshll.u32 %v3155_v17, 16  ;;  %v718_v15 = vrot.slane %v717_v51, 4 }
  0xb4   : > { %v2836_v32 = vld [vmem:[#allocation2 + $0x24] sm:$0xf0]  ;;  %619 = vst.msk [vmem:[#allocation2 + $0x58] sm:$0xf] %vm469_vm8, %v611_v21  ;;  %v691_v28 = vsel %vm3111_vm1, %v3099_v58, %v690_v19  ;;  %v1007_v45 = vsel %vm3131_vm2, %v3101_v59, %v1006_v23  ;;  %v722_v58 = vrot.slane %v720_v30, 6  ;;  %v732_v59 = vshll.u32 %v630_v50, 16 }
  0xb5   : > { %v627_v49 = vld [vmem:[#allocation2 + $0x28] sm:$0x7]  ;;  %v2639_v38 = vor.u32 %v2836_v32, %v2638_v26  ;;  %v904_v0 = vunpack.c.l.b16 %v691_v28  ;;  %v731_v2 = vrot.slane %v729_v62, 6  ;;  %v740_v33 = vrot.slane %v738_v63, 6  ;;  %v964_v50 = vld [vmem:[#allocation2 + $0x4c] sm:$0xf] }
  0xb6   : > { %v824_v40 = vrot.slane %v627_v49, 7  ;;  %v702_v41 = vshrl.u32 %v627_v49, 16  ;;  %v705_v42 = vshll.u32 %v627_v49, 16  ;;  %v961_v44 = vld [vmem:[#allocation2 + $0x28] sm:$0xf]  ;;  %v734_v3 = vrot.slane %v732_v59, 7 }
  0xb7   : > { %v1014_v46 = vshrl.u32 %v961_v44, 16  ;;  %2649 = vmatmul.msk.bf16.gmra.mxu1 %vm856_vm12, %v2639_v38  ;;  %v1017_v54 = vshll.u32 %v961_v44, 16  ;;  %v1077_v10 = vunpack.c.l.b16 %v1007_v45  ;;  %v743_v11 = vrot.slane %v741_v55, 7  ;;  %v3194_v38 = vld [vmem:[#allocation2 + $0x4c] sm:$0x7] }
  0xb8   : > { %v825_v39 = vsel %vm3086_vm13, %v2604_v4, %v824_v40  ;;  %v704_v52 = vrot.slane %v702_v41, 6  ;;  %v707_v53 = vrot.slane %v705_v42, 7  ;;  %v726_v16 = vor.u32 %v725_v60, %v722_v58  ;;  %v2837_v40 = vld [vmem:[#allocation2 + $0x3c] sm:$0xf0] }
  0xb9   : > { %v847_v56 = vunpack.c.l.b16 %v825_v39  ;;  %v1016_v57 = vrot.slane %v1014_v46, 7  ;;  %v735_v48 = vor.u32 %v734_v3, %v731_v2  ;;  %v744_v19 = vor.u32 %v743_v11, %v740_v33 }
  0xba   : > { %v708_v61 = vor.u32 %v707_v53, %v704_v52  ;;  %v1022_v21 = vshrl.u32 %v3106_v9, 16  ;;  %v1027_v23 = vshrl.u32 %v962_v6, 16  ;;  %v1030_v30 = vshll.u32 %v962_v6, 16 }
  0xbb   : > { %v853_v47 = vpack.c.b16 %v847_v56, %v846_v34  ;;  %v1019_v1 = vor.u32 %v1017_v54, %v1016_v57  ;;  %v1035_v31 = vshrl.u32 %v3152_v5, 16  ;;  %v1040_v49 = vshrl.u32 %v963_v18, 16  ;;  %v3201_v44 = vld [vmem:[#allocation2 + $0x58] sm:$0x7] }
  0xbc   : > { %v709_v4 = vsel %vm3111_vm1, %v700_v27, %v708_v61  ;;  %v736_v27 = vrot.slane %v735_v48, 4  ;;  %v1029_v32 = vrot.slane %v1027_v23, 7  ;;  %v1043_v34 = vshll.u32 %v963_v18, 16  ;;  %v965_v58 = vld [vmem:[#allocation2 + $0x58] sm:$0xf] }
  0xbd   : > { %2611 = vmatmul.msk.bf16.gmra.mxu2 %vm856_vm12, %v853_v47  ;;  %v905_v7 = vunpack.c.l.b16 %v709_v4  ;;  %v1020_v8 = vsel %vm3131_vm2, %v3120_v22, %v1019_v1  ;;  %v2642_v22 = vld [vmem:[#allocation2 + $0x34] sm:$0xf]  ;;  %v848_v41 = vunpack.c.l.b16 %v3170_v35  ;;  %v437_v9 = vsel %vm2997_vm3, 0, %v436_v24  ;;  %v1213_v4 = vld [vmem:[#allocation2 + $0x4] sm:$0xf] }
  0xbe   : > { %v1078_v13 = vunpack.c.l.b16 %v1020_v8  ;;  %v440_v42 = vsel %vm2997_vm3, 0, %v439_v25  ;;  %v833_v28 = vsel %vm3086_vm13, %v2606_v20, %v832_v29  ;;  %v727_v45 = vsel %vm3111_vm1, %v718_v15, %v726_v16  ;;  %438 = vst [vmem:[#allocation2 + $0x48] sm:$0xc] %v437_v9 }
  0xbf   : > { %v911_v36 = vpack.c.b16 %v905_v7, %v904_v0  ;;  %v745_v35 = vsel %vm3111_vm1, %v736_v27, %v744_v19  ;;  %v1042_v46 = vrot.slane %v1040_v49, 7  ;;  %v2622_v14 = vrot.slane %v1022_v21, 11  ;;  %441 = vst [vmem:[#allocation2 + $0x54] sm:$0xc] %v440_v42 }
  0xc0   : > { %v1084_v26 = vpack.c.b16 %v1078_v13, %v1077_v10  ;;  %v1032_v51 = vor.u32 %v1030_v30, %v1029_v32  ;;  %v2623_v39 = vrot.slane %v1035_v31, 11  ;;  %v756_v5 = vshrl.u32 %v3194_v38, 16 }
  0xc1   : > { %2615 = vmatmul.msk.bf16.gmra.mxu3 %vm856_vm12, %v911_v36  ;;  %v1045_v17 = vor.u32 %v1043_v34, %v1042_v46  ;;  %v759_v20 = vshll.u32 %v3194_v38, 16  ;;  %v774_v29 = vshrl.u32 %v3201_v44, 16  ;;  %v777_v52 = vshll.u32 %v3201_v44, 16 }
  0xc2   : > { %2628 = vmatmul.msk.bf16.gmra.mxu0 %vm856_vm12, %v1084_v26  ;;  %v2643_v53 = vor.u32 %v2837_v40, %v2642_v22  ;;  %v849_v54 = vunpack.c.l.b16 %v833_v28  ;;  %v906_v56 = vunpack.c.l.b16 %v727_v45  ;;  %v907_v57 = vunpack.c.l.b16 %v745_v35  ;;  %v2646_v28 = vld [vmem:[#allocation2 + $0x4c] sm:$0xf] }
  0xc3   : > { %v1053_v60 = vshrl.u32 %v964_v50, 16  ;;  %v1033_v61 = vsel %vm3131_vm2, %v2622_v14, %v1032_v51  ;;  %v1046_v62 = vsel %vm3131_vm2, %v2623_v39, %v1045_v17  ;;  %v836_v59 = vrot.slane %v3194_v38, 7  ;;  %v2838_v14 = vld [vmem:[#allocation2 + $0x54] sm:$0xf0] }
  0xc4   : > { %v840_v63 = vrot.slane %v3201_v44, 7  ;;  %v3225_v47 = vrot.slane %v756_v5, 6  ;;  %v3227_v0 = vrot.slane %v759_v20, 7  ;;  %v3229_v1 = vrot.slane %v774_v29, 6  ;;  %v1215_v44 = vld [vmem:[#allocation2 + $0x10] sm:$0xf] }
  0xc5   : > { %v779_v55 = vrot.slane %v777_v52, 7  ;;  %v854_v2 = vpack.c.b16 %v849_v54, %v848_v41  ;;  %v912_v3 = vpack.c.b16 %v907_v57, %v906_v56  ;;  %v789_v33 = vld [vmem:[#allocation2 + $0x48] sm:$0x8]  ;;  %v1056_v7 = vshll.u32 %v964_v50, 16  ;;  %v3240_v52 = vld [vmem:[#allocation2 + $0x8] sm:$0x1] }
  0xc6   : > { %v632_v6 = vld [vmem:[#allocation2 + $0x48] sm:$0xc]  ;;  %v1066_v8 = vshrl.u32 %v965_v58, 16  ;;  %v1079_v10 = vunpack.c.l.b16 %v1033_v61  ;;  %v1080_v11 = vunpack.c.l.b16 %v1046_v62  ;;  %v790_v13 = vld [vmem:[#allocation2 + $0x54] sm:$0x8]  ;;  %v1055_v48 = vrot.slane %v1053_v60, 7 }
  0xc7   : > { %2650 = vmatmul.msk.bf16.gmra.mxu1 %vm856_vm12, %v2643_v53  ;;  %v634_v15 = vld [vmem:[#allocation2 + $0x54] sm:$0xc]  ;;  %v747_v16 = vshrl.u32 %v632_v6, 16  ;;  %v750_v18 = vshll.u32 %v632_v6, 16  ;;  %v1233_v21 = vshrl.u32 %v1213_v4, 16  ;;  %v2607_v23 = vrot.slane %v789_v33, 11 }
  0xc8   : > { %v765_v36 = vshrl.u32 %v634_v15, 16  ;;  %v768_v19 = vshll.u32 %v634_v15, 16  ;;  %v2608_v24 = vrot.slane %v790_v13, 11  ;;  %v1048_v26 = vshrl.u32 %v789_v33, 16 }
  0xc9   : > { %v749_v25 = vrot.slane %v747_v16, 6  ;;  %v752_v27 = vrot.slane %v750_v18, 7  ;;  %v1061_v31 = vshrl.u32 %v790_v13, 16  ;;  %v1236_v22 = vshll.u32 %v1213_v4, 16  ;;  %v1536_v18 = vld [vmem:[#allocation2 + $0x14] sm:$0x3] }
  0xca   : > { %v767_v30 = vrot.slane %v765_v36, 6  ;;  %v762_v32 = vor.u32 %v3227_v0, %v3225_v47  ;;  %v770_v49 = vrot.slane %v768_v19, 7  ;;  %v1068_v34 = vrot.slane %v1066_v8, 7 }
  0xcb   : > { %v1069_v38 = vshll.u32 %v965_v58, 16  ;;  %v1085_v40 = vpack.c.b16 %v1080_v11, %v1079_v10  ;;  %v753_v41 = vor.u32 %v752_v27, %v749_v25  ;;  %v780_v9 = vor.u32 %v779_v55, %v3229_v1  ;;  %v1410_v1 = vld [vmem:[#allocation2 + $0x4] sm:$0xe]  ;;  %v1411_v10 = vld [vmem:[#allocation2 + $0x10] sm:$0xe] }
  0xcc   : > { %v1058_v42 = vor.u32 %v1056_v7, %v1055_v48  ;;  %v837_v45 = vsel %vm3086_vm13, %v2607_v23, %v836_v59  ;;  %v841_v35 = vsel %vm3086_vm13, %v2608_v24, %v840_v63  ;;  %v771_v46 = vor.u32 %v770_v49, %v767_v30  ;;  %v3250_v63 = vld [vmem:[#allocation2 + $0x14] sm:$0x1] }
  0xcd   : > { %2612 = vmatmul.msk.bf16.gmra.mxu2 %vm856_vm12, %v854_v2  ;;  %v2624_v50 = vrot.slane %v1048_v26, 11  ;;  %v754_v51 = vrot.slane %v753_v41, 4  ;;  %v2625_v39 = vrot.slane %v1061_v31, 11  ;;  %v1235_v5 = vrot.slane %v1233_v21, 4  ;;  %v1217_v31 = vld [vmem:[#allocation2 + $0x1c] sm:$0xf] }
  0xce   : > { %v1238_v17 = vrot.slane %v1236_v22, 5  ;;  %v772_v20 = vrot.slane %v771_v46, 4  ;;  %v1071_v29 = vor.u32 %v1069_v38, %v1068_v34  ;;  %v1247_v53 = vshrl.u32 %v1215_v44, 16 }
  0xcf   : > { %v1250_v54 = vshll.u32 %v1215_v44, 16  ;;  %v850_v56 = vunpack.c.l.b16 %v837_v45  ;;  %v851_v57 = vunpack.c.l.b16 %v841_v35  ;;  %v1242_v43 = vshll.u32 %v3240_v52, 16 }
  0xd0   : > { %v2647_v58 = vor.u32 %v2838_v14, %v2646_v28  ;;  %v1059_v60 = vsel %vm3131_vm2, %v2624_v50, %v1058_v42  ;;  %v1249_v61 = vrot.slane %v1247_v53, 4  ;;  %v763_v62 = vsel %vm3111_vm1, %v754_v51, %v762_v32 }
  0xd1   : > { %2616 = vmatmul.msk.bf16.gmra.mxu3 %vm856_vm12, %v912_v3  ;;  %v781_v59 = vsel %vm3111_vm1, %v772_v20, %v780_v9  ;;  %v1239_v47 = vor.u32 %v1238_v17, %v1235_v5  ;;  %v1252_v0 = vrot.slane %v1250_v54, 5  ;;  %v1072_v55 = vsel %vm3131_vm2, %v2625_v39, %v1071_v29 }
  0xd2   : > { %2629 = vmatmul.msk.bf16.gmra.mxu0 %vm856_vm12, %v1085_v40  ;;  %vm1229_vm3 = vsmask.f32 3328  ;;  %v1256_v4 = vshll.u32 %v3250_v63, 16  ;;  %v855_v2 = vpack.c.b16 %v851_v57, %v850_v56  ;;  %v3256_v3 = vrot.slane %v1242_v43, 5  ;;  %v1219_v40 = vld [vmem:[#allocation2 + $0x28] sm:$0xf] }
  0xd3   : > { %v1253_v33 = vor.u32 %v1252_v0, %v1249_v61  ;;  %v908_v6 = vunpack.c.l.b16 %v763_v62  ;;  %v909_v7 = vunpack.c.l.b16 %v781_v59  ;;  %v1081_v8 = vunpack.c.l.b16 %v1059_v60  ;;  %vm3262_vm9 = vmor %vm1229_vm3, %vm1230_vm4  ;;  %v1412_v60 = vld [vmem:[#allocation2 + $0x1c] sm:$0xe]  ;;  %v2716_v61 = vld [vmem:[%s3598_s7 + $0x8] sm:$0xf] }
  0xd4   : > { %v1547_v11 = vshrl.u32 %v1410_v1, 16  ;;  %v1082_v13 = vunpack.c.l.b16 %v1072_v55  ;;  %v1240_v15 = vrot.slane %v1239_v47, 4  ;;  %v1550_v37 = vshll.u32 %v1410_v1, 16 }
  0xd5   : > { %v1254_v16 = vrot.slane %v1253_v33, 4  ;;  %v1258_v48 = vrot.slane %v1256_v4, 5  ;;  %v1556_v19 = vshrl.u32 %v1535_v12, 16  ;;  %v1559_v23 = vshll.u32 %v1535_v12, 16  ;;  %v1537_v4 = vld [vmem:[#allocation2 + $0x20] sm:$0x3] }
  0xd6   : > { %v1549_v36 = vrot.slane %v1547_v11, 5  ;;  %v1552_v21 = vrot.slane %v1550_v37, 6  ;;  %v1565_v24 = vshrl.u32 %v1411_v10, 16  ;;  %v1568_v25 = vshll.u32 %v1411_v10, 16  ;;  %v1220_v33 = vld [vmem:[#allocation2 + $0x2c] sm:$0x1] }
  0xd7   : > { %2651 = vmatmul.msk.bf16.gmra.mxu1 %vm856_vm12, %v2647_v58  ;;  %v913_v26 = vpack.c.b16 %v909_v7, %v908_v6  ;;  %v2657_v27 = vrot.slane %v1410_v1, 9  ;;  %v1439_v30 = vrot.slane %v3240_v52, 5  ;;  %v2658_v32 = vrot.slane %v1411_v10, 9  ;;  %v1413_v12 = vld [vmem:[#allocation2 + $0x28] sm:$0xe] }
  0xd8   : > { %v1567_v49 = vrot.slane %v1565_v24, 5  ;;  %v1570_v34 = vrot.slane %v1568_v25, 6  ;;  %v1574_v38 = vshrl.u32 %v1536_v18, 16  ;;  %v1259_v41 = vsel %vm3262_vm9, %v1254_v16, %v1258_v48 }
  0xd9   : > { %v1443_v9 = vrot.slane %v3250_v63, 5  ;;  %v1558_v42 = vrot.slane %v1556_v19, 5  ;;  %v1577_v44 = vshll.u32 %v1536_v18, 16  ;;  %v1553_v45 = vor.u32 %v1552_v21, %v1549_v36  ;;  %v1218_v63 = vld [vmem:[#allocation2 + $0x20] sm:$0x1] }
  0xda   : > { %v1561_v35 = vrot.slane %v1559_v23, 6  ;;  %v1261_v46 = vshrl.u32 %v1217_v31, 16  ;;  %v1264_v50 = vshll.u32 %v1217_v31, 16  ;;  %v1571_v14 = vor.u32 %v1570_v34, %v1567_v49 }
  0xdb   : > { %v1576_v51 = vrot.slane %v1574_v38, 5  ;;  %v1579_v39 = vrot.slane %v1577_v44, 6  ;;  %v1275_v5 = vshrl.u32 %v1219_v40, 16  ;;  %v1086_v17 = vpack.c.b16 %v1082_v13, %v1081_v8 }
  0xdc   : > { %vm1544_vm13 = vsmask.f32 6416  ;;  %v1278_v20 = vshll.u32 %v1219_v40, 16  ;;  %v1245_v29 = vsel %vm3262_vm9, %v1240_v15, %v3256_v3  ;;  %v1347_v52 = vunpack.c.l.b16 %v1259_v41 }
  0xdd   : > { %2613 = vmatmul.msk.bf16.gmra.mxu2 %vm856_vm12, %v855_v2  ;;  %v1440_v53 = vsel %vm3270_vm10, %v2657_v27, %v1439_v30  ;;  %v1444_v54 = vsel %vm3270_vm10, %v2658_v32, %v1443_v9  ;;  %v1554_v56 = vrot.slane %v1553_v45, 4  ;;  %v1562_v57 = vor.u32 %v1561_v35, %v1558_v42  ;;  %vm3283_vm14 = vmor %vm1543_vm11, %vm1544_vm13 }
  0xde   : > { %v1263_v43 = vrot.slane %v1261_v46, 4  ;;  %v1266_v58 = vrot.slane %v1264_v50, 5  ;;  %v1572_v62 = vrot.slane %v1571_v14, 4  ;;  %v1580_v59 = vor.u32 %v1579_v39, %v1576_v51  ;;  %v1221_v51 = vld [vmem:[#allocation2 + $0x34] sm:$0xf] }
  0xdf   : > { %v1277_v47 = vrot.slane %v1275_v5, 4  ;;  %v1280_v0 = vrot.slane %v1278_v20, 5  ;;  %v1346_v1 = vunpack.c.l.b16 %v1245_v29  ;;  %v1270_v55 = vshll.u32 %v1218_v63, 16  ;;  %v1223_v39 = vld [vmem:[#allocation2 + $0x40] sm:$0xf] }
  0xe0   : > { %v1471_v2 = vunpack.c.l.b16 %v1440_v53  ;;  %v1472_v3 = vunpack.c.l.b16 %v1444_v54  ;;  %v1583_v6 = vshrl.u32 %v1412_v60, 16  ;;  %v1586_v7 = vshll.u32 %v1412_v60, 16 }
  0xe1   : > { %2617 = vmatmul.msk.bf16.gmra.mxu3 %vm856_vm12, %v913_v26  ;;  %v1354_v8 = vpack.c.b16 %v1347_v52, %v1346_v1  ;;  %v1563_v10 = vsel %vm3283_vm14, %v1554_v56, %v1562_v57  ;;  %v1267_v11 = vor.u32 %v1266_v58, %v1263_v43  ;;  %v1284_v13 = vshll.u32 %v1220_v33, 16  ;;  %v1538_v26 = vld [vmem:[#allocation2 + $0x2c] sm:$0x3] }
  0xe2   : > { %2630 = vmatmul.msk.bf16.gmra.mxu0 %vm856_vm12, %v1086_v17  ;;  %v1581_v15 = vsel %vm3283_vm14, %v1572_v62, %v1580_v59  ;;  %v1281_v37 = vor.u32 %v1280_v0, %v1277_v47  ;;  %v1585_v16 = vrot.slane %v1583_v6, 5  ;;  %v1588_v48 = vrot.slane %v1586_v7, 6  ;;  %v1414_v47 = vld [vmem:[#allocation2 + $0x34] sm:$0xe]  ;;  %v1415_v6 = vld [vmem:[#allocation2 + $0x40] sm:$0xe] }
  0xe3   : > { %v1272_v18 = vrot.slane %v1270_v55, 5  ;;  %v1592_v36 = vshrl.u32 %v1537_v4, 16  ;;  %v1595_v19 = vshll.u32 %v1537_v4, 16  ;;  %v1601_v21 = vshrl.u32 %v1413_v12, 16 }
  0xe4   : > { %v2659_v23 = vrot.slane %v1412_v60, 9  ;;  %v1447_v24 = vrot.slane %v1218_v63, 5  ;;  %v2660_v25 = vrot.slane %v1413_v12, 9  ;;  %v1604_v27 = vshll.u32 %v1413_v12, 16 }
  0xe5   : > { %v1693_v30 = vunpack.c.l.b16 %v1581_v15  ;;  %v1268_v31 = vrot.slane %v1267_v11, 4  ;;  %v1286_v32 = vrot.slane %v1284_v13, 5  ;;  %v1451_v49 = vrot.slane %v1220_v33, 5  ;;  %v1222_v13 = vld [vmem:[#allocation2 + $0x38] sm:$0x1] }
  0xe6   : > { %v1282_v34 = vrot.slane %v1281_v37, 4  ;;  %v1589_v38 = vor.u32 %v1588_v48, %v1585_v16  ;;  %v1594_v40 = vrot.slane %v1592_v36, 5  ;;  %v1597_v41 = vrot.slane %v1595_v19, 6  ;;  %v1224_v15 = vld [vmem:[#allocation2 + $0x44] sm:$0x1] }
  0xe7   : > { %v1603_v9 = vrot.slane %v1601_v21, 5  ;;  %v1606_v42 = vrot.slane %v1604_v27, 6  ;;  %v1610_v44 = vshrl.u32 %v1538_v26, 16  ;;  %v1613_v45 = vshll.u32 %v1538_v26, 16  ;;  %v1539_v37 = vld [vmem:[#allocation2 + $0x38] sm:$0x3] }
  0xe8   : > { %v1479_v35 = vpack.c.b16 %v1472_v3, %v1471_v2  ;;  %v1692_v46 = vunpack.c.l.b16 %v1563_v10  ;;  %v1448_v50 = vsel %vm3270_vm10, %v2659_v23, %v1447_v24  ;;  %v1452_v14 = vsel %vm3270_vm10, %v2660_v25, %v1451_v49  ;;  %v1540_v36 = vld [vmem:[#allocation2 + $0x44] sm:$0x3] }
  0xe9   : > { %v1273_v17 = vsel %vm3262_vm9, %v1268_v31, %v1272_v18  ;;  %v1287_v20 = vsel %vm3262_vm9, %v1282_v34, %v1286_v32  ;;  %v1590_v29 = vrot.slane %v1589_v38, 4  ;;  %v1598_v52 = vor.u32 %v1597_v41, %v1594_v40 }
  0xea   : > { %v1700_v5 = vpack.c.b16 %v1693_v30, %v1692_v46  ;;  %v1607_v53 = vor.u32 %v1606_v42, %v1603_v9  ;;  %v1612_v54 = vrot.slane %v1610_v44, 5  ;;  %v1615_v56 = vrot.slane %v1613_v45, 6  ;;  %v1225_v44 = vld [vmem:[#allocation2 + $0x4c] sm:$0xf] }
  0xeb   : > { %v1289_v57 = vshrl.u32 %v1221_v51, 16  ;;  %v1292_v43 = vshll.u32 %v1221_v51, 16  ;;  %v1303_v58 = vshrl.u32 %v1223_v39, 16  ;;  %v1306_v60 = vshll.u32 %v1223_v39, 16 }
  0xec   : > { %v1349_v62 = vunpack.c.l.b16 %v1287_v20  ;;  %v1473_v59 = vunpack.c.l.b16 %v1448_v50  ;;  %v1474_v63 = vunpack.c.l.b16 %v1452_v14  ;;  %v1348_v0 = vunpack.c.l.b16 %v1273_v17  ;;  %v1227_v17 = vld [vmem:[#allocation2 + $0x58] sm:$0xf] }
  0xed   : > { %2653 = vmatmul.msk.bf16.vlgmr.msra.gmra.mxu2 %vm856_vm12, %v1354_v8  ;;  %v1599_v1 = vsel %vm3283_vm14, %v1590_v29, %v1598_v52  ;;  %v1608_v55 = vrot.slane %v1607_v53, 4  ;;  %v1616_v4 = vor.u32 %v1615_v56, %v1612_v54  ;;  %v1291_v2 = vrot.slane %v1289_v57, 4 }
  0xee   : > { %v1294_v3 = vrot.slane %v1292_v43, 5  ;;  %v1305_v33 = vrot.slane %v1303_v58, 4  ;;  %v1308_v12 = vrot.slane %v1306_v60, 5  ;;  %v1619_v7 = vshrl.u32 %v1414_v47, 16 }
  0xef   : > { %v1622_v8 = vshll.u32 %v1414_v47, 16  ;;  %v1355_v10 = vpack.c.b16 %v1349_v62, %v1348_v0  ;;  %v1480_v11 = vpack.c.b16 %v1474_v63, %v1473_v59  ;;  %v1694_v16 = vunpack.c.l.b16 %v1599_v1 }
  0xf0   : > { %v1298_v48 = vshll.u32 %v1222_v13, 16  ;;  %v1312_v18 = vshll.u32 %v1224_v15, 16  ;;  %v1637_v19 = vshrl.u32 %v1415_v6, 16  ;;  %v1617_v21 = vsel %vm3283_vm14, %v1608_v55, %v1616_v4 }
  0xf1   : > { %2666 = vmatmul.msk.bf16.vlgmr.msra.gmra.mxu3 %vm856_vm12, %v1479_v35  ;;  %v1295_v23 = vor.u32 %v1294_v3, %v1291_v2  ;;  %v1309_v24 = vor.u32 %v1308_v12, %v1305_v33  ;;  %v1640_v25 = vshll.u32 %v1415_v6, 16  ;;  %v1621_v26 = vrot.slane %v1619_v7, 5 }
  0xf2   : > { %2671 = vmatmul.msk.bf16.vlgmr.msra.gmra.mxu0 %vm856_vm12, %v1700_v5  ;;  %v1624_v27 = vrot.slane %v1622_v8, 6  ;;  %v1628_v30 = vshrl.u32 %v1539_v37, 16  ;;  %v1631_v31 = vshll.u32 %v1539_v37, 16  ;;  %v1639_v32 = vrot.slane %v1637_v19, 5  ;;  %v1541_v19 = vld [vmem:[#allocation2 + $0x50] sm:$0x3] }
  0xf3   : > { %v1642_v49 = vrot.slane %v1640_v25, 6  ;;  %v1646_v34 = vshrl.u32 %v1540_v36, 16  ;;  %v1649_v38 = vshll.u32 %v1540_v36, 16  ;;  %v1695_v40 = vunpack.c.l.b16 %v1617_v21 }
  0xf4   : > { %v1300_v41 = vrot.slane %v1298_v48, 5  ;;  %v1314_v9 = vrot.slane %v1312_v18, 5  ;;  %v2661_v42 = vrot.slane %v1414_v47, 9  ;;  %v1296_v45 = vrot.slane %v1295_v23, 4 }
  0xf5   : > { %v1455_v35 = vrot.slane %v1222_v13, 5  ;;  %v2662_v46 = vrot.slane %v1415_v6, 9  ;;  %v1459_v50 = vrot.slane %v1224_v15, 5  ;;  %v1310_v14 = vrot.slane %v1309_v24, 4  ;;  %v1416_v6 = vld [vmem:[#allocation2 + $0x4c] sm:$0xe] }
  0xf6   : > { %v1625_v51 = vor.u32 %v1624_v27, %v1621_v26  ;;  %v1630_v39 = vrot.slane %v1628_v30, 5  ;;  %v1633_v5 = vrot.slane %v1631_v31, 6  ;;  %v1643_v20 = vor.u32 %v1642_v49, %v1639_v32  ;;  %v1228_v13 = vld [vmem:[#allocation2 + $0x5c] sm:$0x1]  ;;  %v1417_v15 = vld [vmem:[#allocation2 + $0x58] sm:$0xe] }
  0xf7   : > { %v1648_v29 = vrot.slane %v1646_v34, 5  ;;  %v1651_v52 = vrot.slane %v1649_v38, 6  ;;  %v1317_v53 = vshrl.u32 %v1225_v44, 16  ;;  %v1701_v54 = vpack.c.b16 %v1695_v40, %v1694_v16  ;;  %v1542_v31 = vld [vmem:[#allocation2 + $0x5c] sm:$0x3] }
  0xf8   : > { %v1320_v56 = vshll.u32 %v1225_v44, 16  ;;  %v1301_v57 = vsel %vm3262_vm9, %v1296_v45, %v1300_v41  ;;  %v1456_v43 = vsel %vm3270_vm10, %v2661_v42, %v1455_v35  ;;  %v1331_v58 = vshrl.u32 %v1227_v17, 16  ;;  %v3322_v41 = vpop.f32.mrf.mxu3 }
  0xf9   : > { %v1334_v60 = vshll.u32 %v1227_v17, 16  ;;  %v1315_v62 = vsel %vm3262_vm9, %v1310_v14, %v1314_v9  ;;  %v1460_v59 = vsel %vm3270_vm10, %v2662_v46, %v1459_v50  ;;  %v1626_v63 = vrot.slane %v1625_v51, 4 }
  0xfa   : > { %v1634_v47 = vor.u32 %v1633_v5, %v1630_v39  ;;  %v1644_v0 = vrot.slane %v1643_v20, 4  ;;  %v1652_v1 = vor.u32 %v1651_v52, %v1648_v29  ;;  %v1319_v55 = vrot.slane %v1317_v53, 4 }
  0xfb   : > { %v1322_v4 = vrot.slane %v1320_v56, 5  ;;  %v1333_v2 = vrot.slane %v1331_v58, 4  ;;  %v1336_v3 = vrot.slane %v1334_v60, 5  ;;  %v1350_v33 = vunpack.c.l.b16 %v1301_v57 }
  0xfc   : > { %v1351_v12 = vunpack.c.l.b16 %v1315_v62  ;;  %v1475_v7 = vunpack.c.l.b16 %v1456_v43  ;;  %v1476_v8 = vunpack.c.l.b16 %v1460_v59  ;;  %v1653_v37 = vsel %vm3283_vm14, %v1644_v0, %v1652_v1 }
  0xfd   : > { %2654 = vmatmul.msk.bf16.gmra.mxu2 %vm856_vm12, %v1355_v10  ;;  %v1635_v10 = vsel %vm3283_vm14, %v1626_v63, %v1634_v47  ;;  %v1323_v16 = vor.u32 %v1322_v4, %v1319_v55  ;;  %v1340_v18 = vshll.u32 %v1228_v13, 16  ;;  %v1337_v36 = vor.u32 %v1336_v3, %v1333_v2 }
  0xfe   : > { %v1655_v21 = vshrl.u32 %v1416_v6, 16  ;;  %v1658_v23 = vshll.u32 %v1416_v6, 16  ;;  %v1356_v24 = vpack.c.b16 %v1351_v12, %v1350_v33  ;;  %v1673_v25 = vshrl.u32 %v1417_v15, 16 }
  0xff   : > { %v1481_v26 = vpack.c.b16 %v1476_v8, %v1475_v7  ;;  %v1696_v27 = vunpack.c.l.b16 %v1635_v10  ;;  %v1697_v30 = vunpack.c.l.b16 %v1653_v37  ;;  %v1676_v32 = vshll.u32 %v1417_v15, 16 }
 0x100   : > { %v1324_v49 = vrot.slane %v1323_v16, 4  ;;  %v1342_v38 = vrot.slane %v1340_v18, 5  ;;  %v1664_v40 = vshrl.u32 %v1541_v19, 16  ;;  %v1338_v9 = vrot.slane %v1337_v36, 4  ;;  %v3332_v1 = vpop.f32.mrf.mxu3 }
 0x101   : > { %2667 = vmatmul.msk.bf16.gmra.mxu3 %vm856_vm12, %v1480_v11  ;;  %v1226_v11 = vld [vmem:[#allocation2 + $0x50] sm:$0x1]  ;;  %v1657_v42 = vrot.slane %v1655_v21, 5  ;;  %v1660_v44 = vrot.slane %v1658_v23, 6  ;;  %v1667_v45 = vshll.u32 %v1541_v19, 16  ;;  %v1675_v35 = vrot.slane %v1673_v25, 5 }
 0x102   : > { %2672 = vmatmul.msk.bf16.gmra.mxu0 %vm856_vm12, %v1701_v54  ;;  %v1326_v48 = vshll.u32 %v1226_v11, 16  ;;  %v1678_v46 = vrot.slane %v1676_v32, 6  ;;  %v1682_v50 = vshrl.u32 %v1542_v31, 16  ;;  %v1685_v14 = vshll.u32 %v1542_v31, 16 }
 0x103   : > { %v1702_v51 = vpack.c.b16 %v1697_v30, %v1696_v27  ;;  %v2663_v39 = vrot.slane %v1416_v6, 9  ;;  %v1463_v5 = vrot.slane %v1226_v11, 5  ;;  %v1343_v20 = vsel %vm3262_vm9, %v1338_v9, %v1342_v38  ;;  %v1801_v11 = vld [vmem:[%s3598_s7] sm:$0xf] }
 0x104   : > { %v1328_v34 = vrot.slane %v1326_v48, 5  ;;  %v1661_v29 = vor.u32 %v1660_v44, %v1657_v42  ;;  %v1666_v52 = vrot.slane %v1664_v40, 5  ;;  %v1669_v53 = vrot.slane %v1667_v45, 6 }
 0x105   : > { %v1679_v54 = vor.u32 %v1678_v46, %v1675_v35  ;;  %v1684_v56 = vrot.slane %v1682_v50, 5  ;;  %v1687_v57 = vrot.slane %v1685_v14, 6  ;;  %v2664_v43 = vrot.slane %v1417_v15, 9 }
 0x106   : > { %v1329_v17 = vsel %vm3262_vm9, %v1324_v49, %v1328_v34  ;;  %v1467_v58 = vrot.slane %v1228_v13, 5  ;;  %v1353_v62 = vunpack.c.l.b16 %v1343_v20  ;;  %v1464_v59 = vsel %vm3270_vm10, %v2663_v39, %v1463_v5  ;;  %v2675_v13 = vld [vmem:[%s3598_s7 + $0x4] sm:$0xf] }
 0x107   : > { %v1352_v60 = vunpack.c.l.b16 %v1329_v17  ;;  %v1662_v63 = vrot.slane %v1661_v29, 4  ;;  %v1670_v47 = vor.u32 %v1669_v53, %v1666_v52  ;;  %v1680_v0 = vrot.slane %v1679_v54, 4 }
 0x108   : > { %v1688_v22 = vor.u32 %v1687_v57, %v1684_v56  ;;  %v1468_v55 = vsel %vm3270_vm10, %v2664_v43, %v1467_v58  ;;  %v1477_v4 = vunpack.c.l.b16 %v1464_v59  ;;  %v3342_v10 = vpop.f32.mrf.mxu3  ;;  %v1910_v15 = vsel %vm869_vm7, %v1801_v11, 0  ;;  %v2779_v43 = vld [vmem:[%s3598_s7 + $0x14] sm:$0xf]  ;;  %v2737_v58 = vld [vmem:[%s3598_s7 + $0xc] sm:$0xf] }
 0x109   : > { %v1357_v2 = vpack.c.b16 %v1353_v62, %v1352_v60  ;;  %v1478_v3 = vunpack.c.l.b16 %v1468_v55  ;;  %v1671_v33 = vsel %vm3283_vm14, %v1662_v63, %v1670_v47  ;;  %v1985_v37 = vsel %vm869_vm7, %v2716_v61, 0  ;;  %1919 = vmatpush.bf16.msrb.mxu2 %v1910_v15  ;;  %v2800_v60 = vld [vmem:[%s3598_s7 + $0x18] sm:$0xf] }
 0x10a   : > { %v1689_v12 = vsel %vm3283_vm14, %v1680_v0, %v1688_v22  ;;  %v1698_v6 = vunpack.c.l.b16 %v1671_v33  ;;  %v1846_v16 = vsel %vm869_vm7, %v2675_v13, 0  ;;  %1994 = vmatpush.bf16.msrb.mxu3 %v1985_v37  ;;  %v2891_v14 = vmov 0   ;;  %v2758_v0 = vld [vmem:[%s3598_s7 + $0x10] sm:$0xf] }
 0x10b   : > { %v1699_v7 = vunpack.c.l.b16 %v1689_v12  ;;  %v1482_v8 = vpack.c.b16 %v1478_v3, %v1477_v4  ;;  %1855 = vmatpush.bf16.msra.mxu1 %v1846_v16  ;;  %470 = vst.msk [vmem:[#allocation3] sm:$0xf] %vm469_vm8, %v2891_v14  ;;  %v2233_v59 = vsel %vm869_vm7, %v2779_v43, 0  ;;  %v2067_v63 = vsel %vm869_vm7, %v2737_v58, 0 }
 0x10c   : > { %471 = vst.msk [vmem:[#allocation3 + $0x4] sm:$0xf] %vm469_vm8, %v2891_v14  ;;  %v2316_v47 = vsel %vm869_vm7, %v2800_v60, 0  ;;  %2076 = vmatpush.bf16.msrb.mxu0 %v2067_v63 }
 0x10d   : > { %2655 = vmatmul.msk.bf16.gmra.mxu2 %vm856_vm12, %v1356_v24  ;;  %v1703_v28 = vpack.c.b16 %v1699_v7, %v1698_v6  ;;  %v3359_v24 = vpop.f32.mrf.mxu1  ;;  %472 = vst.msk [vmem:[#allocation3 + $0x8] sm:$0xf] %vm469_vm8, %v2891_v14  ;;  %v3426_v7 = vld [vmem:[%s3597_s6] ss:$0 sm:$0xff] }
 0x10e   : > { %474 = vst.msk [vmem:[#allocation3 + $0x2c] sm:$0xf] %vm469_vm8, %v2891_v14  ;;  %2242 = vmatpush.bf16.msra.mxu2 %v2233_v59  ;;  %2325 = vmatpush.bf16.msra.mxu3 %v2316_v47 }
 0x10f   : > { %475 = vst.msk [vmem:[#allocation3 + $0x30] sm:$0xf] %vm469_vm8, %v2891_v14 }
 0x110   : > { %v3357_v48 = vpop.f32.mrf.mxu3  ;;  %476 = vst.msk [vmem:[#allocation3 + $0x34] sm:$0xf] %vm469_vm8, %v2891_v14 }
 0x111   : > { %2668 = vmatmul.msk.bf16.gmra.mxu3 %vm856_vm12, %v1481_v26 }
 0x112   : > { %2673 = vmatmul.msk.bf16.gmra.mxu0 %vm856_vm12, %v1702_v51 }
 0x113   : > { %v2839_v20 = vld [vmem:[#allocation3] sm:$0xff] }
 0x114   : > { %v2843_v53 = vld [vmem:[#allocation3 + $0x4] sm:$0xff] }
 0x115   : > { %v3363_v30 = vpop.f32.mrf.mxu1  ;;  %2692 = vmatmul.msk.bf16.vlgmr.msra.gmra.mxu1 %vm856_vm12, %v2843_v53 }
 0x11d   : > { %2656 = vmatmul.msk.bf16.gmra.mxu2 %vm856_vm12, %v1357_v2  ;;  %v3371_v38 = vpop.f32.mrf.mxu1  ;;  %v2150_v2 = vsel %vm869_vm7, %v2758_v0, 0 }
 0x11e   : > { %2159 = vmatpush.bf16.msrb.mxu1 %v2150_v2 }
 0x121   : > { %2669 = vmatmul.msk.bf16.gmra.mxu3 %vm856_vm12, %v1482_v8 }
 0x122   : > { %2674 = vmatmul.msk.bf16.gmra.mxu0 %vm856_vm12, %v1703_v28 }
 0x125   : > { %v3379_v44 = vpop.f32.mrf.mxu1 }
 0x12d   : > { %v1185_v39 = vpop.f32.mrf.mxu1  ;;  %2712 = vmatmul.msk.bf16.vlgmr.msrb.gmra.mxu2 %vm856_vm12, %v2839_v20 }
 0x12f   : > { %v1111_v36 = vpop.f32.mrf.mxu0 }
 0x130   : > { %v882_v18 = vpop.f32.mrf.mxu2 }
 0x134   : > { %v938_v19 = vpop.f32.mrf.mxu3 }
 0x135   : > { %v939_v29 = vadd.f32 %v938_v19, %v882_v18  ;;  %v1187_v54 = vpop.f32.mrf.mxu1 }
 0x137   : > { %v1113_v23 = vpop.f32.mrf.mxu0  ;;  %v1131_v57 = vadd.f32 %v1111_v36, %v939_v29 }
 0x138   : > { %v884_v21 = vpop.f32.mrf.mxu2 }
 0x139   : > { %v1205_v4 = vadd.f32 %v1185_v39, %v1131_v57 }
 0x13c   : > { %v940_v25 = vpop.f32.mrf.mxu3 }
 0x13d   : > { %v941_v22 = vadd.f32 %v940_v25, %v884_v21  ;;  %v1190_v8 = vpop.f32.mrf.mxu1 }
 0x13f   : > { %v3361_v27 = vpop.f32.mrf.mxu0  ;;  %v1132_v12 = vadd.f32 %v1113_v23, %v941_v22 }
 0x140   : > { %v887_v26 = vpop.f32.mrf.mxu2 }
 0x141   : > { %v1206_v37 = vadd.f32 %v1187_v54, %v1132_v12 }
 0x144   : > { %v943_v31 = vpop.f32.mrf.mxu3 }
 0x145   : > { %v944_v61 = vadd.f32 %v943_v31, %v887_v26  ;;  %v1192_v14 = vpop.f32.mrf.mxu1 }
 0x147   : > { %v3367_v49 = vpop.f32.mrf.mxu0  ;;  %v1133_v19 = vadd.f32 %v3361_v27, %v944_v61 }
 0x148   : > { %v3365_v32 = vpop.f32.mrf.mxu2 }
 0x149   : > { %v1207_v29 = vadd.f32 %v1190_v8, %v1133_v19 }
 0x14c   : > { %v3369_v34 = vpop.f32.mrf.mxu3 }
 0x14d   : > { %v946_v20 = vadd.f32 %v3369_v34, %v3365_v32 }
 0x14f   : > { %v3375_v9 = vpop.f32.mrf.mxu0  ;;  %v1134_v43 = vadd.f32 %v3367_v49, %v946_v20  ;;  %v1195_v49 = vpop.f32.mrf.mxu1 }
 0x150   : > { %v3373_v40 = vpop.f32.mrf.mxu2 }
 0x151   : > { %v1208_v0 = vadd.f32 %v1192_v14, %v1134_v43 }
 0x154   : > { %v3377_v42 = vpop.f32.mrf.mxu3 }
 0x155   : > { %v949_v32 = vadd.f32 %v3377_v42, %v3373_v40 }
 0x157   : > { %v3383_v35 = vpop.f32.mrf.mxu0  ;;  %v1135_v2 = vadd.f32 %v3375_v9, %v949_v32 }
 0x158   : > { %v3381_v45 = vpop.f32.mrf.mxu2 }
 0x159   : > { %v1209_v61 = vadd.f32 %v1195_v49, %v1135_v2 }
 0x15c   : > { %v3385_v46 = vpop.f32.mrf.mxu3 }
 0x15d   : > { %v951_v40 = vadd.f32 %v3385_v46, %v3381_v45 }
 0x15f   : > { %v3390_v51 = vpop.f32.mrf.mxu0 }
 0x160   : > { %v3387_v50 = vpop.f32.mrf.mxu2 }
 0x164   : > { %v3395_v5 = vpop.f32.mrf.mxu3 }
 0x165   : > { %v954_v45 = vadd.f32 %v3395_v5, %v3387_v50 }
 0x167   : > { %v3401_v52 = vpop.f32.mrf.mxu0 }
 0x168   : > { %v3399_v17 = vpop.f32.mrf.mxu2 }
 0x16c   : > { %v3405_v56 = vpop.f32.mrf.mxu3 }
 0x16d   : > { %v956_v50 = vadd.f32 %v3405_v56, %v3399_v17 }
 0x16f   : > { %v1728_v55 = vpop.f32.mrf.mxu0  ;;  %v1138_v32 = vadd.f32 %v3401_v52, %v956_v50 }
 0x170   : > { %v1382_v62 = vpop.f32.mrf.mxu2 }
 0x171   : > { %v1402_v3 = vadd.f32 %v1382_v62, %v1205_v4 }
 0x174   : > { %v1507_v33 = vpop.f32.mrf.mxu3 }
 0x175   : > { %v1527_v6 = vadd.f32 %v1507_v33, %v1402_v3 }
 0x177   : > { %v1748_v28 = vadd.f32 %v1728_v55, %v1527_v6  ;;  %v1730_v15 = vpop.f32.mrf.mxu0 }
 0x178   : > { %v1384_v11 = vpop.f32.mrf.mxu2 }
 0x179   : > { %v1760_v13 = vadd.f32 %v3426_v7, %v1748_v28  ;;  %v1403_v18 = vadd.f32 %v1384_v11, %v1206_v37 }
 0x17b   : > { %v1768_v16 = vmax.f32 %v1760_v13, 0.0 }
 0x17c   : > { %v1509_v36 = vpop.f32.mrf.mxu3 }
 0x17d   : > { %v1776_v21 = vpack.c.bf16 %v1768_v16, %v1768_v16  ;;  %v1528_v23 = vadd.f32 %v1509_v36, %v1403_v18  ;;  %v1136_v16 = vadd.f32 %v3383_v35, %v951_v40 }
 0x17f   : > { %1785 = vst.msk [vmem:[#allocation3 + $0xc] sm:$0xf] %vm469_vm8, %v1776_v21  ;;  %v1749_v25 = vadd.f32 %v1730_v15, %v1528_v23  ;;  %v1733_v31 = vpop.f32.mrf.mxu0  ;;  %v1197_v15 = vpop.f32.mrf.mxu1 }
 0x180   : > { %v1387_v39 = vpop.f32.mrf.mxu2  ;;  %v1210_v14 = vadd.f32 %v1197_v15, %v1136_v16 }
 0x181   : > { %v1761_v26 = vadd.f32 %v3426_v7, %v1749_v25  ;;  %v1404_v54 = vadd.f32 %v1387_v39, %v1207_v29 }
 0x183   : > { %v1769_v53 = vmax.f32 %v1761_v26, 0.0 }
 0x184   : > { %v1512_v57 = vpop.f32.mrf.mxu3 }
 0x185   : > { %v1777_v27 = vpack.c.bf16 %v1769_v53, %v1769_v53  ;;  %v1529_v58 = vadd.f32 %v1512_v57, %v1404_v54 }
 0x186   : > { %v2840_v60 = vld [vmem:[#allocation3 + $0x8] sm:$0xff] }
 0x187   : > { %v2847_v62 = vld [vmem:[#allocation3 + $0x8] sm:$0xff]  ;;  %1786 = vst.msk [vmem:[#allocation3 + $0x10] sm:$0xf] %vm469_vm8, %v1777_v27  ;;  %v1750_v59 = vadd.f32 %v1733_v31, %v1529_v58  ;;  %2713 = vmatmul.msk.bf16.gmra.mxu2 %vm856_vm12, %v2840_v60  ;;  %v1735_v47 = vpop.f32.mrf.mxu0  ;;  %v1137_v31 = vadd.f32 %v3390_v51, %v954_v45  ;;  %v1200_v54 = vpop.f32.mrf.mxu1 }
 0x188   : > { %v1389_v63 = vpop.f32.mrf.mxu2  ;;  %2733 = vmatmul.msk.bf16.vlgmr.msrb.gmra.mxu3 %vm856_vm12, %v2847_v62  ;;  %v2862_v45 = vld [vmem:[#allocation3 + $0x2c] sm:$0xff] }
 0x189   : > { %v1762_v34 = vadd.f32 %v3426_v7, %v1750_v59  ;;  %v1405_v55 = vadd.f32 %v1389_v63, %v1208_v0  ;;  %v1211_v60 = vadd.f32 %v1200_v54, %v1137_v31  ;;  %v2866_v31 = vld [vmem:[#allocation3 + $0x30] sm:$0xff] }
 0x18b   : > { %v1770_v22 = vmax.f32 %v1762_v34, 0.0 }
 0x18c   : > { %v1514_v4 = vpop.f32.mrf.mxu3 }
 0x18d   : > { %v1778_v3 = vpack.c.bf16 %v1770_v22, %v1770_v22  ;;  %v1530_v33 = vadd.f32 %v1514_v4, %v1405_v55 }
 0x18e   : > { %v2844_v12 = vld [vmem:[#allocation3 + $0xc] sm:$0xff] }
 0x18f   : > { %v2851_v6 = vld [vmem:[#allocation3 + $0xc] sm:$0xff]  ;;  %1787 = vst.msk [vmem:[#allocation3 + $0x14] sm:$0xf] %vm469_vm8, %v1778_v3  ;;  %v1751_v8 = vadd.f32 %v1735_v47, %v1530_v33  ;;  %2693 = vmatmul.msk.bf16.gmra.mxu1 %vm856_vm12, %v2844_v12  ;;  %v1738_v11 = vpop.f32.mrf.mxu0  ;;  %v1202_v55 = vpop.f32.mrf.mxu1 }
 0x190   : > { %v1392_v28 = vpop.f32.mrf.mxu2  ;;  %2754 = vmatmul.msk.bf16.vlgmr.msrb.gmra.mxu0 %vm856_vm12, %v2851_v6  ;;  %v1212_v56 = vadd.f32 %v1202_v55, %v1138_v32 }
 0x191   : > { %v1763_v42 = vadd.f32 %v3426_v7, %v1751_v8  ;;  %v1406_v13 = vadd.f32 %v1392_v28, %v1209_v61 }
 0x193   : > { %v1771_v9 = vmax.f32 %v1763_v42, 0.0 }
 0x194   : > { %v1517_v37 = vpop.f32.mrf.mxu3 }
 0x195   : > { %v1779_v18 = vpack.c.bf16 %v1771_v9, %v1771_v9  ;;  %v1531_v36 = vadd.f32 %v1517_v37, %v1406_v13 }
 0x196   : > { %v2841_v19 = vld [vmem:[#allocation3 + $0x10] sm:$0xff] }
 0x197   : > { %v2848_v21 = vld [vmem:[#allocation3 + $0x10] sm:$0xff]  ;;  %1788 = vst.msk [vmem:[#allocation3 + $0x18] sm:$0xf] %vm469_vm8, %v1779_v18  ;;  %v1752_v23 = vadd.f32 %v1738_v11, %v1531_v36  ;;  %2714 = vmatmul.msk.bf16.gmra.mxu2 %vm856_vm12, %v2841_v19  ;;  %v1740_v39 = vpop.f32.mrf.mxu0 }
 0x198   : > { %v1394_v25 = vpop.f32.mrf.mxu2  ;;  %2734 = vmatmul.msk.bf16.gmra.mxu3 %vm856_vm12, %v2848_v21  ;;  %v2855_v37 = vld [vmem:[#allocation3 + $0x10] sm:$0xff]  ;;  %v2379_v21 = vld [vmem:[%s3600_s9] sm:$0xf] }
 0x199   : > { %v1764_v46 = vadd.f32 %v3426_v7, %v1752_v23  ;;  %v1407_v20 = vadd.f32 %v1394_v25, %v1210_v14  ;;  %v2438_v23 = vsel %vm869_vm7, %v2379_v21, 0 }
 0x19a   : > { %2447 = vmatpush.bf16.msra.mxu1 %v2438_v23 }
 0x19b   : > { %v1772_v35 = vmax.f32 %v1764_v46, 0.0 }
 0x19c   : > { %v1519_v26 = vpop.f32.mrf.mxu3 }
 0x19d   : > { %v1780_v29 = vpack.c.bf16 %v1772_v35, %v1772_v35  ;;  %v1532_v53 = vadd.f32 %v1519_v26, %v1407_v20  ;;  %v2879_v26 = vld [vmem:[%s3593_s2] ss:$0 sm:$0xff] }
 0x19e   : > { %v2845_v57 = vld [vmem:[#allocation3 + $0x14] sm:$0xff]  ;;  %v583_v55 = vadd.f32 %v2879_v26, %v3322_v41  ;;  %v590_v41 = vadd.f32 %v2879_v26, %v3357_v48 }
 0x19f   : > { %v2852_v43 = vld [vmem:[#allocation3 + $0x14] sm:$0xff]  ;;  %1789 = vst.msk [vmem:[#allocation3 + $0x1c] sm:$0xf] %vm469_vm8, %v1780_v29  ;;  %v1753_v27 = vadd.f32 %v1740_v39, %v1532_v53  ;;  %2694 = vmatmul.msk.bf16.gmra.mxu1 %vm856_vm12, %v2845_v57  ;;  %v1743_v59 = vpop.f32.mrf.mxu0  ;;  %v1857_v39 = vpop.f32.mrf.mxu1  ;;  %v573_v29 = vadd.f32 %v2879_v26, %v3359_v24  ;;  %v575_v53 = vadd.f32 %v2879_v26, %v3363_v30 }
 0x1a0   : > { %v1397_v58 = vpop.f32.mrf.mxu2  ;;  %2755 = vmatmul.msk.bf16.gmra.mxu0 %vm856_vm12, %v2852_v43  ;;  %v2859_v13 = vld [vmem:[#allocation3 + $0x14] sm:$0xff]  ;;  %v2380_v43 = vld [vmem:[%s3601_s10] sm:$0xf]  ;;  %v578_v24 = vadd.f32 %v2879_v26, %v3371_v38  ;;  %v580_v30 = vadd.f32 %v2879_v26, %v3379_v44  ;;  %v596_v38 = vmax.f32 %v583_v55, 0.0 }
 0x1a1   : > { %v1765_v5 = vadd.f32 %v3426_v7, %v1753_v27  ;;  %v1408_v62 = vadd.f32 %v1397_v58, %v1211_v60  ;;  %v592_v54 = vmax.f32 %v573_v29, 0.0  ;;  %v593_v57 = vmax.f32 %v575_v53, 0.0 }
 0x1a2   : > { %v2394_v27 = vsel %vm869_vm7, %v2380_v43, 0  ;;  %v594_v60 = vmax.f32 %v578_v24, 0.0 }
 0x1a3   : > { %v1773_v51 = vmax.f32 %v1765_v5, 0.0  ;;  %v600_v58 = vpack.c.bf16 %v593_v57, %v592_v54  ;;  %2403 = vmatpush.bf16.msra.mxu0 %v2394_v27  ;;  %v3524_v27 = vld [vmem:[%s3599_s8] ss:$0 sm:$0xff] }
 0x1a4   : > { %v1522_v63 = vpop.f32.mrf.mxu3 }
 0x1a5   : > { %v1781_v34 = vpack.c.bf16 %v1773_v51, %v1773_v51  ;;  %v1533_v47 = vadd.f32 %v1522_v63, %v1408_v62  ;;  %v595_v51 = vmax.f32 %v580_v30, 0.0 }
 0x1a6   : > { %v2842_v0 = vld [vmem:[#allocation3 + $0x18] sm:$0xff] }
 0x1a7   : > { %v2849_v49 = vld [vmem:[#allocation3 + $0x18] sm:$0xff]  ;;  %1790 = vst.msk [vmem:[#allocation3 + $0x20] sm:$0xf] %vm469_vm8, %v1781_v34  ;;  %v1754_v22 = vadd.f32 %v1743_v59, %v1533_v47  ;;  %2715 = vmatmul.msk.bf16.gmra.mxu2 %vm856_vm12, %v2842_v0  ;;  %v1745_v6 = vpop.f32.mrf.mxu0  ;;  %v1859_v5 = vpop.f32.mrf.mxu1  ;;  %v601_v34 = vpack.c.bf16 %v595_v51, %v594_v60 }
 0x1a8   : > { %v1399_v4 = vpop.f32.mrf.mxu2  ;;  %2735 = vmatmul.msk.bf16.gmra.mxu3 %vm856_vm12, %v2849_v49  ;;  %v2863_v18 = vld [vmem:[#allocation3 + $0x18] sm:$0xff] }
 0x1a9   : > { %v1766_v17 = vadd.f32 %v3426_v7, %v1754_v22  ;;  %v1409_v3 = vadd.f32 %v1399_v4, %v1212_v56  ;;  %v585_v4 = vadd.f32 %v2879_v26, %v3332_v1 }
 0x1ab   : > { %v1774_v2 = vmax.f32 %v1766_v17, 0.0  ;;  %v597_v17 = vmax.f32 %v585_v4, 0.0 }
 0x1ac   : > { %v1524_v33 = vpop.f32.mrf.mxu3 }
 0x1ad   : > { %v1782_v52 = vpack.c.bf16 %v1774_v2, %v1774_v2  ;;  %v1534_v12 = vadd.f32 %v1524_v33, %v1409_v3  ;;  %v602_v33 = vpack.c.bf16 %v597_v17, %v596_v38 }
 0x1ae   : > { %v2846_v8 = vld [vmem:[#allocation3 + $0x1c] sm:$0xff] }
 0x1af   : > { %v2853_v28 = vld [vmem:[#allocation3 + $0x1c] sm:$0xff]  ;;  %1791 = vst.msk [vmem:[#allocation3 + $0x24] sm:$0xf] %vm469_vm8, %v1782_v52  ;;  %v1755_v40 = vadd.f32 %v1745_v6, %v1534_v12  ;;  %2695 = vmatmul.msk.bf16.gmra.mxu1 %vm856_vm12, %v2846_v8 }
 0x1b0   : > { %2756 = vmatmul.msk.bf16.gmra.mxu0 %vm856_vm12, %v2853_v28  ;;  %v2860_v16 = vld [vmem:[#allocation3 + $0x1c] sm:$0xff]  ;;  %v1921_v14 = vpop.f32.mrf.mxu2  ;;  %v588_v28 = vadd.f32 %v2879_v26, %v3342_v10 }
 0x1b1   : > { %v1767_v42 = vadd.f32 %v3426_v7, %v1755_v40  ;;  %v2856_v7 = vld [vmem:[#allocation3 + $0x18] sm:$0xff]  ;;  %v1922_v20 = vadd.f32 %v1921_v14, %v1857_v39  ;;  %v599_v40 = vmax.f32 %v590_v41, 0.0 }
 0x1b2   : > { %v598_v1 = vmax.f32 %v588_v28, 0.0 }
 0x1b3   : > { %v1775_v11 = vmax.f32 %v1767_v42, 0.0 }
 0x1b5   : > { %v1783_v61 = vpack.c.bf16 %v1775_v11, %v1775_v11 }
 0x1b6   : > { %v2850_v9 = vld [vmem:[#allocation3 + $0x20] sm:$0xff] }
 0x1b7   : > { %1792 = vst.msk [vmem:[#allocation3 + $0x28] sm:$0xf] %vm469_vm8, %v1783_v61  ;;  %2796 = vmatmul.msk.bf16.vlgmr.msra.gmra.mxu2 %vm856_vm12, %v2859_v13  ;;  %v2864_v19 = vld [vmem:[#allocation3 + $0x20] sm:$0xff]  ;;  %v603_v13 = vpack.c.bf16 %v599_v40, %v598_v1 }
 0x1b8   : > { %2736 = vmatmul.msk.bf16.gmra.mxu3 %vm856_vm12, %v2850_v9  ;;  %v2857_v25 = vld [vmem:[#allocation3 + $0x20] sm:$0xff]  ;;  %v1923_v50 = vpop.f32.mrf.mxu2 }
 0x1be   : > { %v2854_v15 = vld [vmem:[#allocation3 + $0x24] sm:$0xff] }
 0x1bf   : > { %2775 = vmatmul.msk.bf16.vlgmr.msrb.gmra.mxu1 %vm856_vm12, %v2855_v37  ;;  %v2861_v36 = vld [vmem:[#allocation3 + $0x24] sm:$0xff] }
 0x1c0   : > { %2757 = vmatmul.msk.bf16.gmra.mxu0 %vm856_vm12, %v2854_v15  ;;  %v2865_v46 = vld [vmem:[#allocation3 + $0x28] sm:$0xff] }
 0x1c1   : > { %v2858_v35 = vld [vmem:[#allocation3 + $0x28] sm:$0xff] }
 0x1c7   : > { %2797 = vmatmul.msk.bf16.gmra.mxu2 %vm856_vm12, %v2860_v16 }
 0x1c8   : > { %2817 = vmatmul.msk.bf16.vlgmr.msra.gmra.mxu3 %vm856_vm12, %v2863_v18 }
 0x1cf   : > { %2776 = vmatmul.msk.bf16.gmra.mxu1 %vm856_vm12, %v2856_v7 }
 0x1d7   : > { %2798 = vmatmul.msk.bf16.gmra.mxu2 %vm856_vm12, %v2861_v36 }
 0x1d8   : > { %2818 = vmatmul.msk.bf16.gmra.mxu3 %vm856_vm12, %v2864_v19 }
 0x1df   : > { %2777 = vmatmul.msk.bf16.gmra.mxu1 %vm856_vm12, %v2857_v25 }
 0x1e7   : > { %2799 = vmatmul.msk.bf16.gmra.mxu2 %vm856_vm12, %v2862_v45 }
 0x1e8   : > { %2819 = vmatmul.msk.bf16.gmra.mxu3 %vm856_vm12, %v2865_v46  ;;  %v1924_v46 = vadd.f32 %v1923_v50, %v1859_v5 }
 0x1ef   : > { %2778 = vmatmul.msk.bf16.gmra.mxu1 %vm856_vm12, %v2858_v35 }
 0x1f8   : > { %2820 = vmatmul.msk.bf16.gmra.mxu3 %vm856_vm12, %v2866_v31 }
 0x1ff   : > { %2825 = vmatmul.msk.bf16.vlgmr.msra.gmra.mxu1 %vm856_vm12, %v600_v58 }
 0x20a   : > { %v1926_v62 = vpop.f32.mrf.mxu2 }
 0x20b   : > { %v1996_v59 = vpop.f32.mrf.mxu3 }
 0x20c   : > { %v2016_v63 = vadd.f32 %v1996_v59, %v1922_v20  ;;  %v1862_v32 = vpop.f32.mrf.mxu1 }
 0x20d   : > { %v1927_v47 = vadd.f32 %v1926_v62, %v1862_v32  ;;  %v2078_v37 = vpop.f32.mrf.mxu0 }
 0x20e   : > { %v2098_v39 = vadd.f32 %v2078_v37, %v2016_v63 }
 0x20f   : > { %2826 = vmatmul.msk.bf16.gmra.mxu1 %vm856_vm12, %v601_v34 }
 0x212   : > { %v1928_v0 = vpop.f32.mrf.mxu2 }
 0x213   : > { %v1998_v49 = vpop.f32.mrf.mxu3 }
 0x214   : > { %v1864_v22 = vpop.f32.mrf.mxu1  ;;  %v2017_v35 = vadd.f32 %v1998_v49, %v1924_v46 }
 0x215   : > { %v2080_v48 = vpop.f32.mrf.mxu0  ;;  %v1929_v51 = vadd.f32 %v1928_v0, %v1864_v22 }
 0x216   : > { %v2099_v31 = vadd.f32 %v2080_v48, %v2017_v35 }
 0x21a   : > { %v1931_v44 = vpop.f32.mrf.mxu2 }
 0x21b   : > { %v2001_v56 = vpop.f32.mrf.mxu3 }
 0x21c   : > { %v2018_v2 = vadd.f32 %v2001_v56, %v1927_v47  ;;  %v1867_v3 = vpop.f32.mrf.mxu1 }
 0x21d   : > { %v1932_v52 = vadd.f32 %v1931_v44, %v1867_v3  ;;  %v2083_v14 = vpop.f32.mrf.mxu0 }
 0x21e   : > { %v2100_v59 = vadd.f32 %v2083_v14, %v2018_v2 }
 0x21f   : > { %2827 = vmatmul.msk.bf16.gmra.mxu1 %vm856_vm12, %v602_v33 }
 0x222   : > { %v3506_v12 = vpop.f32.mrf.mxu2 }
 0x223   : > { %v2003_v6 = vpop.f32.mrf.mxu3 }
 0x224   : > { %v3508_v8 = vpop.f32.mrf.mxu1  ;;  %v2019_v63 = vadd.f32 %v2003_v6, %v1929_v51 }
 0x225   : > { %v2085_v58 = vpop.f32.mrf.mxu0  ;;  %v1934_v41 = vadd.f32 %v3506_v12, %v3508_v8 }
 0x226   : > { %v2101_v17 = vadd.f32 %v2085_v58, %v2019_v63 }
 0x22a   : > { %v1936_v42 = vpop.f32.mrf.mxu2 }
 0x22b   : > { %v2006_v11 = vpop.f32.mrf.mxu3 }
 0x22c   : > { %v2020_v61 = vadd.f32 %v2006_v11, %v1932_v52  ;;  %v1872_v9 = vpop.f32.mrf.mxu1 }
 0x22d   : > { %v1937_v15 = vadd.f32 %v1936_v42, %v1872_v9  ;;  %v2088_v4 = vpop.f32.mrf.mxu0 }
 0x22e   : > { %v2102_v42 = vadd.f32 %v2088_v4, %v2020_v61 }
 0x22f   : > { %2828 = vmatmul.msk.bf16.gmra.mxu1 %vm856_vm12, %v603_v13 }
 0x232   : > { %v3513_v16 = vpop.f32.mrf.mxu2 }
 0x233   : > { %v2008_v18 = vpop.f32.mrf.mxu3 }
 0x234   : > { %v3515_v7 = vpop.f32.mrf.mxu1  ;;  %v2021_v11 = vadd.f32 %v2008_v18, %v1934_v41 }
 0x235   : > { %v2090_v28 = vpop.f32.mrf.mxu0  ;;  %v1939_v35 = vadd.f32 %v3513_v16, %v3515_v7 }
 0x23a   : > { %v2244_v10 = vpop.f32.mrf.mxu2 }
 0x23b   : > { %v2011_v36 = vpop.f32.mrf.mxu3 }
 0x23c   : > { %v3517_v19 = vadd.f32 %v2011_v36, %v1937_v15  ;;  %v2161_v21 = vpop.f32.mrf.mxu1 }
 0x23d   : > { %v2181_v20 = vadd.f32 %v2161_v21, %v2098_v39 }
 0x23f   : > { %v2264_v54 = vadd.f32 %v2244_v10, %v2181_v20  ;;  %v2103_v10 = vadd.f32 %v2090_v28, %v2021_v11  ;;  %v2483_v11 = vld [vmem:[%s2979_s30 + $0x10] sm:$0xff] }
 0x242   : > { %v2246_v25 = vpop.f32.mrf.mxu2 }
 0x243   : > { %v3519_v23 = vpop.f32.mrf.mxu3 }
 0x244   : > { %v2163_v45 = vpop.f32.mrf.mxu1 }
 0x245   : > { %v2182_v53 = vadd.f32 %v2163_v45, %v2099_v31  ;;  %v2093_v45 = vpop.f32.mrf.mxu0  ;;  %v2023_v31 = vadd.f32 %v3519_v23, %v1939_v35 }
 0x247   : > { %v2265_v24 = vadd.f32 %v2246_v25, %v2182_v53 }
 0x24a   : > { %v2249_v57 = vpop.f32.mrf.mxu2 }
 0x24b   : > { %v2327_v26 = vpop.f32.mrf.mxu3 }
 0x24c   : > { %v2166_v29 = vpop.f32.mrf.mxu1  ;;  %v2347_v43 = vadd.f32 %v2327_v26, %v2264_v54  ;;  %v2104_v26 = vadd.f32 %v2093_v45, %v3517_v19 }
 0x24d   : > { %v2183_v49 = vadd.f32 %v2166_v29, %v2100_v59  ;;  %v2095_v54 = vpop.f32.mrf.mxu0 }
 0x24e   : > { %v2359_v50 = vadd.f32 %v3524_v27, %v2347_v43 }
 0x24f   : > { %v2266_v3 = vadd.f32 %v2249_v57, %v2183_v49  ;;  %v3547_v49 = vld [vmem:[%s3602_s11] ss:$0 sm:$0xff] }
 0x250   : > { %v2367_v32 = vmax.f32 %v2359_v50, 0.0 }
 0x252   : > { %v2251_v47 = vpop.f32.mrf.mxu2 }
 0x253   : > { %v2329_v30 = vpop.f32.mrf.mxu3 }
 0x254   : > { %v2348_v5 = vadd.f32 %v2329_v30, %v2265_v24  ;;  %v2168_v60 = vpop.f32.mrf.mxu1  ;;  %v2105_v30 = vadd.f32 %v2095_v54, %v2023_v31 }
 0x255   : > { %v2184_v56 = vadd.f32 %v2168_v60, %v2101_v17  ;;  %v2481_v17 = vld [vmem:[%s2979_s30] sm:$0xff] }
 0x256   : > { %v2360_v62 = vadd.f32 %v3524_v27, %v2348_v5 }
 0x257   : > { %v2267_v52 = vadd.f32 %v2251_v47, %v2184_v56 }
 0x258   : > { %v2368_v34 = vmax.f32 %v2360_v62, 0.0 }
 0x25a   : > { %v2375_v55 = vpack.c.bf16 %v2368_v34, %v2367_v32  ;;  %v2254_v0 = vpop.f32.mrf.mxu2 }
 0x25b   : > { %v2332_v38 = vpop.f32.mrf.mxu3 }
 0x25c   : > { %2821 = vmatmul.msk.bf16.vlgmr.msra.gmra.mxu0 %vm856_vm12, %v2375_v55  ;;  %v2171_v44 = vpop.f32.mrf.mxu1  ;;  %v2349_v33 = vadd.f32 %v2332_v38, %v2266_v3 }
 0x25d   : > { %v2185_v15 = vadd.f32 %v2171_v44, %v2102_v42 }
 0x25e   : > { %v2361_v2 = vadd.f32 %v3524_v27, %v2349_v33 }
 0x25f   : > { %v2268_v25 = vadd.f32 %v2254_v0, %v2185_v15 }
 0x260   : > { %v2369_v9 = vmax.f32 %v2361_v2, 0.0 }
 0x262   : > { %v2256_v48 = vpop.f32.mrf.mxu2 }
 0x263   : > { %v2334_v22 = vpop.f32.mrf.mxu3 }
 0x264   : > { %v2350_v6 = vadd.f32 %v2334_v22, %v2267_v52  ;;  %v2173_v40 = vpop.f32.mrf.mxu1  ;;  %v2482_v22 = vld [vmem:[%s2979_s30 + $0x8] sm:$0xff] }
 0x265   : > { %v2186_v21 = vadd.f32 %v2173_v40, %v2103_v10 }
 0x266   : > { %v2362_v1 = vadd.f32 %v3524_v27, %v2350_v6 }
 0x267   : > { %v2269_v12 = vadd.f32 %v2256_v48, %v2186_v21  ;;  %v2484_v21 = vld [vmem:[%s2979_s30 + $0x18] sm:$0xff] }
 0x268   : > { %v2370_v13 = vmax.f32 %v2362_v1, 0.0 }
 0x26a   : > { %v2376_v37 = vpack.c.bf16 %v2370_v13, %v2369_v9  ;;  %v2259_v18 = vpop.f32.mrf.mxu2 }
 0x26b   : > { %v2337_v36 = vpop.f32.mrf.mxu3 }
 0x26c   : > { %2822 = vmatmul.msk.bf16.gmra.mxu0 %vm856_vm12, %v2376_v37  ;;  %v2351_v46 = vadd.f32 %v2337_v36, %v2268_v25  ;;  %v2176_v14 = vpop.f32.mrf.mxu1 }
 0x26d   : > { %v2187_v57 = vadd.f32 %v2176_v14, %v2104_v26 }
 0x26e   : > { %v2363_v39 = vadd.f32 %v3524_v27, %v2351_v46 }
 0x26f   : > { %v2270_v50 = vadd.f32 %v2259_v18, %v2187_v57 }
 0x270   : > { %v2371_v29 = vmax.f32 %v2363_v39, 0.0 }
 0x272   : > { %v2261_v60 = vpop.f32.mrf.mxu2 }
 0x273   : > { %v2339_v8 = vpop.f32.mrf.mxu3 }
 0x274   : > { %v2352_v61 = vadd.f32 %v2339_v8, %v2269_v12  ;;  %v2178_v58 = vpop.f32.mrf.mxu1 }
 0x275   : > { %v2188_v5 = vadd.f32 %v2178_v58, %v2105_v30 }
 0x276   : > { %v2364_v20 = vadd.f32 %v3524_v27, %v2352_v61  ;;  %v2485_v61 = vld [vmem:[%s2979_s30 + $0x20] sm:$0xff] }
 0x277   : > { %v2271_v7 = vadd.f32 %v2261_v60, %v2188_v5  ;;  %v2487_v5 = vld [vmem:[%s2979_s30 + $0x30] sm:$0xff] }
 0x278   : > { %v2372_v53 = vmax.f32 %v2364_v20, 0.0 }
 0x27a   : > { %v2377_v43 = vpack.c.bf16 %v2372_v53, %v2371_v29  ;;  %v2486_v53 = vld [vmem:[%s2979_s30 + $0x28] sm:$0xff] }
 0x27b   : > { %v2342_v24 = vpop.f32.mrf.mxu3 }
 0x27c   : > { %2823 = vmatmul.msk.bf16.gmra.mxu0 %vm856_vm12, %v2377_v43  ;;  %v2353_v16 = vadd.f32 %v2342_v24, %v2270_v50  ;;  %v2449_v34 = vpop.f32.mrf.mxu1 }
 0x27e   : > { %v2365_v19 = vadd.f32 %v3524_v27, %v2353_v16 }
 0x280   : > { %v2373_v59 = vmax.f32 %v2365_v19, 0.0 }
 0x283   : > { %v2344_v51 = vpop.f32.mrf.mxu3 }
 0x284   : > { %v2354_v23 = vadd.f32 %v2344_v51, %v2271_v7  ;;  %v2451_v47 = vpop.f32.mrf.mxu1 }
 0x286   : > { %v2366_v62 = vadd.f32 %v3524_v27, %v2354_v23 }
 0x288   : > { %v2374_v63 = vmax.f32 %v2366_v62, 0.0 }
 0x28a   : > { %v2378_v32 = vpack.c.bf16 %v2374_v63, %v2373_v59  ;;  %v2488_v59 = vld [vmem:[%s2979_s30 + $0x38] sm:$0xff] }
 0x28c   : > { %2824 = vmatmul.msk.bf16.gmra.mxu0 %vm856_vm12, %v2378_v32  ;;  %v2454_v27 = vpop.f32.mrf.mxu1 }
 0x294   : > { %v2456_v28 = vpop.f32.mrf.mxu1 }
 0x29c   : > { %v2459_v10 = vpop.f32.mrf.mxu1 }
 0x2a4   : > { %v2461_v39 = vpop.f32.mrf.mxu1 }
 0x2ac   : > { %v2464_v57 = vpop.f32.mrf.mxu1 }
 0x2b4   : > { %v2466_v7 = vpop.f32.mrf.mxu1 }
 0x2d9   : > { %v2405_v55 = vpop.f32.mrf.mxu0 }
 0x2da   : > { %v2450_v4 = vadd.f32 %v2449_v34, %v2405_v55 }
 0x2dc   : > { %v2473_v38 = vadd.f32 %v3547_v49, %v2450_v4 }
 0x2de   : > { %v2489_v44 = vmul.f32 0.1, %v2473_v38 }
 0x2e0   : > { %v2497_v56 = vadd.f32 %v2489_v44, %v2481_v17 }
 0x2e1   : > { %v2407_v3 = vpop.f32.mrf.mxu0 }
 0x2e2   : > { %v2505_v33 = vmax.f32 %v2497_v56, 0.0  ;;  %v2452_v52 = vadd.f32 %v2451_v47, %v2407_v3 }
 0x2e4   : > { %2513 = vst.msk [vmem:[%s3556_s15] sm:$0xff] %vm501_vm0, %v2505_v33  ;;  %v2474_v0 = vadd.f32 %v3547_v49, %v2452_v52 }
 0x2e6   : > { %v2490_v2 = vmul.f32 0.1, %v2474_v0 }
 0x2e8   : > { %v2498_v6 = vadd.f32 %v2490_v2, %v2482_v22 }
 0x2e9   : > { %v2410_v41 = vpop.f32.mrf.mxu0 }
 0x2ea   : > { %v2506_v1 = vmax.f32 %v2498_v6, 0.0  ;;  %v2455_v40 = vadd.f32 %v2454_v27, %v2410_v41 }
 0x2ec   : > { %2514 = vst.msk [vmem:[%s3556_s15 + $0x8] sm:$0xff] %vm501_vm0, %v2506_v1  ;;  %v2475_v42 = vadd.f32 %v3547_v49, %v2455_v40 }
 0x2ee   : > { %v2491_v9 = vmul.f32 0.1, %v2475_v42 }
 0x2f0   : > { %v2499_v13 = vadd.f32 %v2491_v9, %v2483_v11 }
 0x2f1   : > { %v2412_v15 = vpop.f32.mrf.mxu0 }
 0x2f2   : > { %v2507_v37 = vmax.f32 %v2499_v13, 0.0  ;;  %v2457_v36 = vadd.f32 %v2456_v28, %v2412_v15 }
 0x2f4   : > { %2515 = vst.msk [vmem:[%s3556_s15 + $0x10] sm:$0xff] %vm501_vm0, %v2507_v37  ;;  %v2476_v48 = vadd.f32 %v3547_v49, %v2457_v36 }
 0x2f6   : > { %v2492_v25 = vmul.f32 0.1, %v2476_v48 }
 0x2f8   : > { %v2500_v45 = vadd.f32 %v2492_v25, %v2484_v21 }
 0x2f9   : > { %v2415_v46 = vpop.f32.mrf.mxu0 }
 0x2fa   : > { %v2508_v14 = vmax.f32 %v2500_v45, 0.0  ;;  %v2460_v12 = vadd.f32 %v2459_v10, %v2415_v46 }
 0x2fc   : > { %2516 = vst.msk [vmem:[%s3556_s15 + $0x18] sm:$0xff] %vm501_vm0, %v2508_v14  ;;  %v2477_v8 = vadd.f32 %v3547_v49, %v2460_v12 }
 0x2fe   : > { %v2493_v18 = vmul.f32 0.1, %v2477_v8 }
 0x300   : > { %v2501_v35 = vadd.f32 %v2493_v18, %v2485_v61 }
 0x301   : > { %v2417_v20 = vpop.f32.mrf.mxu0 }
 0x302   : > { %v2509_v26 = vmax.f32 %v2501_v35, 0.0  ;;  %v2462_v31 = vadd.f32 %v2461_v39, %v2417_v20 }
 0x304   : > { %2517 = vst.msk [vmem:[%s3556_s15 + $0x20] sm:$0xff] %vm501_vm0, %v2509_v26  ;;  %v2478_v29 = vadd.f32 %v3547_v49, %v2462_v31 }
 0x306   : > { %v2494_v54 = vmul.f32 0.1, %v2478_v29 }
 0x308   : > { %v2502_v43 = vadd.f32 %v2494_v54, %v2486_v53 }
 0x309   : > { %v2420_v58 = vpop.f32.mrf.mxu0 }
 0x30a   : > { %v2510_v24 = vmax.f32 %v2502_v43, 0.0  ;;  %v2465_v30 = vadd.f32 %v2464_v57, %v2420_v58 }
 0x30c   : > { %2518 = vst.msk [vmem:[%s3556_s15 + $0x28] sm:$0xff] %vm501_vm0, %v2510_v24  ;;  %v2479_v50 = vadd.f32 %v3547_v49, %v2465_v30 }
 0x30e   : > { %v2495_v60 = vmul.f32 0.1, %v2479_v50 }
 0x310   : > { %v2503_v16 = vadd.f32 %v2495_v60, %v2487_v5 }
 0x311   : > { %v2422_v51 = vpop.f32.mrf.mxu0 }
 0x312   : > { %v2511_v19 = vmax.f32 %v2503_v16, 0.0  ;;  %v2467_v23 = vadd.f32 %v2466_v7, %v2422_v51 }
 0x314   : > { %2519 = vst.msk [vmem:[%s3556_s15 + $0x30] sm:$0xff] %vm501_vm0, %v2511_v19  ;;  %v2480_v62 = vadd.f32 %v3547_v49, %v2467_v23 }
 0x316   : > { %v2496_v63 = vmul.f32 0.1, %v2480_v62 }
 0x318   : > { %v2504_v32 = vadd.f32 %v2496_v63, %v2488_v59 }
 0x31a   : > { %v2512_v34 = vmax.f32 %v2504_v32, 0.0 }
 0x31c   : > { %2520 = vst.msk [vmem:[%s3556_s15 + $0x38] sm:$0xff] %vm501_vm0, %v2512_v34 }
 0x31d PF: > { %s22_s21 = sadd.s32 1, %s2889_s21  }
 0x31e   : > { %p19_p4 = scmp.ge.s32.totalorder %s22_s21, 4  }
 0x320   :  { %21 = sbr.rel (!%p19_p4) target bundleno = 1 (0x1), region = 117 }

// kernel: tpu_custom_call.1
= control target key start
LH: loop header
LB: loop body
LE: loop exit
PB: predicated region body
PF: predicated region fallthrough
CT: control target
= control target key end

     0   :  { %s2957_s21 = smov 0   ;;  %s3591_s0 = inlined_call_operand.vmem [shape: f32[2,64,16], index: 0, kind: input, shape index: {}]   ;;  %s3592_s1 = inlined_call_operand.vmem [shape: bf16[16,8], index: 1, kind: input, shape index: {}]   ;;  %s3593_s2 = inlined_call_operand.vmem [shape: f32[1,8], index: 2, kind: input, shape index: {}]   ;;  %s3594_s3 = inlined_call_operand.vmem [shape: bf16[16,8], index: 3, kind: input, shape index: {}]   ;;  %s3595_s4 = inlined_call_operand.vmem [shape: f32[1,8], index: 4, kind: input, shape index: {}]   ;;  %s3596_s5 = inlined_call_operand.vmem [shape: bf16[7,8,8], index: 5, kind: input, shape index: {}]   ;;  %s3597_s6 = inlined_call_operand.vmem [shape: f32[1,8], index: 6, kind: input, shape index: {}]   ;;  %s3598_s7 = inlined_call_operand.vmem [shape: bf16[7,8,8], index: 7, kind: input, shape index: {}]   ;;  %s3599_s8 = inlined_call_operand.vmem [shape: f32[1,8], index: 8, kind: input, shape index: {}]   ;;  %s3600_s9 = inlined_call_operand.vmem [shape: bf16[8,16], index: 9, kind: input, shape index: {}]   ;;  %s3601_s10 = inlined_call_operand.vmem [shape: bf16[8,16], index: 10, kind: input, shape index: {}]   ;;  %s3602_s11 = inlined_call_operand.vmem [shape: f32[1,16], index: 11, kind: input, shape index: {}]   ;;  %s3603_s12 = inlined_call_operand.vmem [shape: f32[2,64,16], index: 12, kind: output, shape index: {}]  }
   0x1 LB: > { %s2576_s22 = sadd.s32 4294967295, %s2889_s21   ;;  %p2580_p0 = scmp.ge.s32.totalorder %s2889_s21, 1  ;;  %s2889_s21 = sphi %s2957_s21, %s22_s21  }
   0x2   : > { %p362_p1 = scmp.lt.s32.totalorder %s2889_s21, 3 }
   0x4   : > { %p363_p2 = pnand %p2580_p0, %p362_p1 }
   0x5   : > { %p404_p3 = scmp.lt.s32.totalorder (!%p363_p2), %s2576_s22, 1 }
   0x6   : > { %366 = sbr.rel (%p363_p2) target bundleno = 797 (0x31d), region = 68 }
   0xb   : > { %v2833_v0 = vld [vmem:[%s3594_s3] sm:$0xff]  ;;  %s3621_s22 = smov (!%p404_p3, %s2576_s22), 1  ;;  %vm501_vm0 = vcmask 130048   ;;  %vm415_vm1 = vcmask 60418   ;;  %vm416_vm2 = vsmask.f32 7946 }
   0xc   : > { %v2834_v1 = vld [vmem:[%s3592_s1] sm:$0xff]  ;;  %521 = vmatpush.bf16.msra.mxu0 %v2833_v0  ;;  %2867 = vmatpush.bf16.msra.mxu2 %v2833_v0  ;;  %s2831_s27 = sshll.u32 %s3621_s22, 6  ;;  %vm2997_vm3 = vmand %vm415_vm1, %vm416_vm2  ;;  %vm442_vm4 = vcmask 58368   ;;  %vm443_vm5 = vsmask.f32 1280  ;;  %vm869_vm7 = vcmask 1043456  }
   0xd   : > { %570 = vmatpush.bf16.msra.mxu1 %v2834_v1  ;;  %2868 = vmatpush.bf16.msra.mxu3 %v2834_v1  ;;  %s2979_s30 = scalar_lea.vmem %s3591_s0, %s2831_s27  ;;  %v418_v15 = vld [vmem:[#allocation2] sm:$0xc]  ;;  %vm3004_vm6 = vmand %vm442_vm4, %vm443_vm5  ;;  %v445_v18 = vld [vmem:[#allocation2 + $0x8] sm:$0x3]  ;;  %vm469_vm8 = vcmask 60416   ;;  %vm807_vm9 = vcmask 1040384   ;;  %s3556_s15 = scalar_lea.vmem %s3603_s12, %s2831_s27 }
   0xe   : > { %v477_v2 = vld [vmem:[%s2979_s30] sm:$0xff]  ;;  %v478_v3 = vld [vmem:[%s2979_s30 + $0x8] sm:$0xff]  ;;  %v479_v8 = vld [vmem:[%s2979_s30 + $0x10] sm:$0xff]  ;;  %v419_v16 = vsel %vm2997_vm3, 0, %v418_v15  ;;  %v446_v19 = vsel %vm3004_vm6, 0, %v445_v18  ;;  %vm808_vm10 = vcmask 1044484  }
   0xf   : > { %v485_v4 = vpack.c.bf16 %v478_v3, %v477_v2  ;;  %v481_v5 = vld [vmem:[%s2979_s30 + $0x20] sm:$0xff]  ;;  %v482_v6 = vld [vmem:[%s2979_s30 + $0x28] sm:$0xff]  ;;  %v480_v9 = vld [vmem:[%s2979_s30 + $0x18] sm:$0xff]  ;;  %420 = vst [vmem:[#allocation2] sm:$0xc] %v419_v16  ;;  %vm856_vm12 = vcmask 64512  }
  0x10   : > { %v487_v7 = vpack.c.bf16 %v482_v6, %v481_v5  ;;  %v483_v10 = vld [vmem:[%s2979_s30 + $0x30] sm:$0xff]  ;;  %v484_v11 = vld [vmem:[%s2979_s30 + $0x38] sm:$0xff]  ;;  %v486_v12 = vpack.c.bf16 %v480_v9, %v479_v8  ;;  %v2609_v20 = vld [vmem:[%s3596_s5 + $0x4] sm:$0xf]  ;;  %447 = vst [vmem:[#allocation2 + $0x8] sm:$0x3] %v446_v19 }
  0x11   : > { %2589 = vmatmul.msk.bf16.vlgmr.msra.gmra.mxu0 %vm501_vm0, %v485_v4  ;;  %2597 = vmatmul.msk.bf16.vlgmr.msra.gmra.mxu1 %vm501_vm0, %v485_v4  ;;  %v488_v13 = vpack.c.bf16 %v484_v11, %v483_v10  ;;  %v782_v21 = vld [vmem:[%s3596_s5] sm:$0xf]  ;;  %v871_v22 = vsel %vm869_vm7, %v2609_v20, 0  ;;  %v421_v24 = vld [vmem:[#allocation2 + $0xc] sm:$0xc]  ;;  %vm3086_vm13 = vmor %vm807_vm9, %vm808_vm10 }
  0x12   : > { %2591 = vmatmul.msk.bf16.vlgmr.msra.gmra.mxu2 %vm501_vm0, %v487_v7  ;;  %2599 = vmatmul.msk.bf16.vlgmr.msra.gmra.mxu3 %vm501_vm0, %v487_v7  ;;  %v927_v23 = vsel %vm869_vm7, %v782_v21, 0  ;;  %v422_v25 = vsel %vm2997_vm3, 0, %v421_v24  ;;  %v448_v26 = vld [vmem:[#allocation2 + $0x14] sm:$0x3]  ;;  %v2626_v28 = vld [vmem:[%s3596_s5 + $0x8] sm:$0xf] }
  0x13   : > { %880 = vmatpush.bf16.msrb.mxu2 %v871_v22  ;;  %936 = vmatpush.bf16.msrb.mxu3 %v927_v23  ;;  %423 = vst [vmem:[#allocation2 + $0xc] sm:$0xc] %v422_v25  ;;  %v449_v27 = vsel %vm3004_vm6, 0, %v448_v26  ;;  %v1100_v29 = vsel %vm869_vm7, %v2626_v28, 0  ;;  %v2631_v30 = vld [vmem:[%s3596_s5 + $0xc] sm:$0xf] }
  0x14   : > { %450 = vst [vmem:[#allocation2 + $0x14] sm:$0x3] %v449_v27  ;;  %1109 = vmatpush.bf16.msrb.mxu0 %v1100_v29  ;;  %v1174_v31 = vsel %vm869_vm7, %v2631_v30, 0  ;;  %v451_v32 = vld [vmem:[#allocation2 + $0x20] sm:$0x3] }
  0x15   : > { %1183 = vmatpush.bf16.msrb.mxu1 %v1174_v31  ;;  %v452_v33 = vsel %vm3004_vm6, 0, %v451_v32  ;;  %v424_v34 = vld [vmem:[#allocation2 + $0x18] sm:$0xc]  ;;  %v3037_v36 = vld [vmem:[%s3595_s4] ss:$0 sm:$0xff] }
  0x16   : > { %453 = vst [vmem:[#allocation2 + $0x20] sm:$0x3] %v452_v33  ;;  %v425_v35 = vsel %vm2997_vm3, 0, %v424_v34  ;;  %v454_v37 = vld [vmem:[#allocation2 + $0x2c] sm:$0x3] }
  0x17   : > { %426 = vst [vmem:[#allocation2 + $0x18] sm:$0xc] %v425_v35  ;;  %v620_v38 = vld [vmem:[#allocation2] sm:$0xc]  ;;  %v455_v39 = vsel %vm3004_vm6, 0, %v454_v37 }
  0x18   : > { %v2652_v40 = vld [vmem:[%s3596_s5 + $0x10] sm:$0xf]  ;;  %v457_v41 = vld [vmem:[#allocation2 + $0x38] sm:$0x3]  ;;  %v460_v42 = vld [vmem:[#allocation2 + $0x44] sm:$0x3] }
  0x19   : > { %v1371_v45 = vsel %vm869_vm7, %v2652_v40, 0  ;;  %v458_v46 = vsel %vm3004_vm6, 0, %v457_v41  ;;  %v461_v47 = vsel %vm3004_vm6, 0, %v460_v42  ;;  %v463_v48 = vld [vmem:[#allocation2 + $0x50] sm:$0x3]  ;;  %v639_v49 = vshrl.u32 %v620_v38, 16 }
  0x1a   : > { %v622_v43 = vld [vmem:[#allocation2 + $0xc] sm:$0xc]  ;;  %1380 = vmatpush.bf16.msra.mxu2 %v1371_v45  ;;  %v464_v51 = vsel %vm3004_vm6, 0, %v463_v48  ;;  %v466_v52 = vld [vmem:[#allocation2 + $0x5c] sm:$0x3]  ;;  %v642_v53 = vshll.u32 %v620_v38, 16 }
  0x1b   : > { %456 = vst [vmem:[#allocation2 + $0x2c] sm:$0x3] %v455_v39  ;;  %v467_v54 = vsel %vm3004_vm6, 0, %v466_v52  ;;  %v427_v55 = vld [vmem:[#allocation2 + $0x24] sm:$0xc]  ;;  %v641_v58 = vrot.slane %v639_v49, 6 }
  0x1c   : > { %459 = vst [vmem:[#allocation2 + $0x38] sm:$0x3] %v458_v46  ;;  %v428_v57 = vsel %vm2997_vm3, 0, %v427_v55  ;;  %v657_v59 = vshrl.u32 %v622_v43, 16  ;;  %v644_v62 = vrot.slane %v642_v53, 7  ;;  %v660_v63 = vshll.u32 %v622_v43, 16 }
  0x1d   : > { %462 = vst [vmem:[#allocation2 + $0x44] sm:$0x3] %v461_v47  ;;  %v2665_v0 = vld [vmem:[%s3596_s5 + $0x14] sm:$0xf]  ;;  %v430_v5 = vld [vmem:[#allocation2 + $0x30] sm:$0xc] }
  0x1e   : > { %465 = vst [vmem:[#allocation2 + $0x50] sm:$0x3] %v464_v51  ;;  %v624_v60 = vld [vmem:[#allocation2 + $0x18] sm:$0xc]  ;;  %v1496_v1 = vsel %vm869_vm7, %v2665_v0, 0  ;;  %v659_v9 = vrot.slane %v657_v59, 6 }
  0x1f   : > { %468 = vst [vmem:[#allocation2 + $0x5c] sm:$0x3] %v467_v54  ;;  %1505 = vmatpush.bf16.msra.mxu3 %v1496_v1  ;;  %v675_v3 = vshrl.u32 %v624_v60, 16  ;;  %v678_v4 = vshll.u32 %v624_v60, 16  ;;  %v783_v8 = vld [vmem:[#allocation2] sm:$0x8] }
  0x20   : > { %429 = vst [vmem:[#allocation2 + $0x24] sm:$0xc] %v428_v57  ;;  %v431_v10 = vsel %vm2997_vm3, 0, %v430_v5  ;;  %v433_v11 = vld [vmem:[#allocation2 + $0x3c] sm:$0xc]  ;;  %v662_v15 = vrot.slane %v660_v63, 7 }
  0x21   : > { %2590 = vmatmul.msk.bf16.gmra.mxu0 %vm501_vm0, %v486_v12  ;;  %2598 = vmatmul.msk.bf16.gmra.mxu1 %vm501_vm0, %v486_v12  ;;  %v2670_v16 = vld [vmem:[%s3596_s5 + $0x18] sm:$0xf]  ;;  %432 = vst [vmem:[#allocation2 + $0x30] sm:$0xc] %v431_v10  ;;  %v434_v17 = vsel %vm2997_vm3, 0, %v433_v11  ;;  %v970_v19 = vshrl.u32 %v783_v8, 16 }
  0x22   : > { %2592 = vmatmul.msk.bf16.gmra.mxu2 %vm501_vm0, %v488_v13  ;;  %2600 = vmatmul.msk.bf16.gmra.mxu3 %vm501_vm0, %v488_v13  ;;  %v645_v13 = vor.u32 %v644_v62, %v641_v58  ;;  %v1717_v20 = vsel %vm869_vm7, %v2670_v16, 0  ;;  %435 = vst [vmem:[#allocation2 + $0x3c] sm:$0xc] %v434_v17  ;;  %v677_v22 = vrot.slane %v675_v3, 6  ;;  %v680_v23 = vrot.slane %v678_v4, 7 }
  0x23   : > { %1726 = vmatpush.bf16.msra.mxu0 %v1717_v20  ;;  %v3071_v25 = vld [vmem:[#allocation2 + $0xc] sm:$0x8]  ;;  %v2601_v26 = vrot.slane %v783_v8, 11  ;;  %vm636_vm11 = vsmask.f32 5392  ;;  %v663_v29 = vor.u32 %v662_v15, %v659_v9  ;;  %v3079_v33 = vrot.slane %v970_v19, 11 }
  0x24   : > { %v3073_v28 = vrot.slane %v645_v13, 4  ;;  %v983_v30 = vshrl.u32 %v3071_v25, 16  ;;  %v3076_v31 = vld [vmem:[#allocation2 + $0x18] sm:$0x8]  ;;  %v681_v40 = vor.u32 %v680_v23, %v677_v22  ;;  %vm966_vm14 = vsmask.f32 256  ;;  %vm3111_vm1 = vmor %vm443_vm5, %vm636_vm11 }
  0x25   : > { %v996_v34 = vshrl.u32 %v3076_v31, 16  ;;  %vm967_vm15 = vsmask.f32 4368  ;;  %v664_v47 = vrot.slane %v663_v29, 4  ;;  %v2603_v49 = vrot.slane %v3076_v31, 11 }
  0x26   : > { %v3092_v48 = vrot.slane %v983_v30, 11  ;;  %v3099_v58 = vrot.slane %v681_v40, 4  ;;  %vm3131_vm2 = vmor %vm966_vm14, %vm967_vm15  ;;  %vm1230_vm4 = vsmask.f32 7440  ;;  %vm1434_vm5 = vcmask 1042432  }
  0x27   : > { %v3095_v55 = vld [vmem:[#allocation2 + $0x24] sm:$0x8]  ;;  %v3101_v59 = vrot.slane %v996_v34, 11  ;;  %vm1435_vm6 = vcmask 1046532   ;;  %vm1543_vm11 = vsmask.f32 2304 }
  0x28   : > { %v1009_v63 = vshrl.u32 %v3095_v55, 16  ;;  %v2604_v4 = vrot.slane %v3095_v55, 11  ;;  %v3106_v9 = vld [vmem:[#allocation2 + $0x30] sm:$0x8]  ;;  %vm3270_vm10 = vmor %vm1434_vm5, %vm1435_vm6 }
  0x29   : > { %v628_v40 = vld [vmem:[#allocation2 + $0x30] sm:$0xc] }
  0x2a   : > { %v3120_v22 = vrot.slane %v1009_v63, 11 }
  0x8e   : > { %v523_v44 = vpop.f32.mrf.mxu0 }
  0x8f   : > { %v524_v50 = vadd.f32 %v3037_v36, %v523_v44  ;;  %v2602_v44 = vrot.slane %v3071_v25, 11 }
  0x91   : > { %v543_v56 = vmax.f32 %v524_v50, 0.0  ;;  %v626_v50 = vld [vmem:[#allocation2 + $0x24] sm:$0xc] }
  0x92   : > { %v696_v62 = vshll.u32 %v626_v50, 16 }
  0x93   : > { %v604_v61 = vpack.c.bf16 %v543_v56, %v543_v56 }
  0x95   : > { %612 = vst.msk [vmem:[#allocation2 + $0x4] sm:$0xf] %vm469_vm8, %v604_v61  ;;  %v533_v2 = vpop.f32.mrf.mxu2  ;;  %v693_v61 = vshrl.u32 %v626_v50, 16 }
  0x96   : > { %v525_v6 = vpop.f32.mrf.mxu0  ;;  %v534_v7 = vadd.f32 %v3037_v36, %v533_v2 }
  0x97   : > { %v526_v12 = vadd.f32 %v3037_v36, %v525_v6  ;;  %v3116_v20 = vrot.slane %v693_v61, 6  ;;  %v711_v61 = vshrl.u32 %v628_v40, 16 }
  0x98   : > { %v547_v18 = vmax.f32 %v534_v7, 0.0 }
  0x99   : > { %v544_v21 = vmax.f32 %v526_v12, 0.0  ;;  %v1535_v12 = vld [vmem:[#allocation2 + $0x8] sm:$0x3] }
  0x9a   : > { %v608_v24 = vpack.c.bf16 %v547_v18, %v547_v18 }
  0x9b   : > { %v605_v27 = vpack.c.bf16 %v544_v21, %v544_v21  ;;  %v3118_v21 = vrot.slane %v696_v62, 7 }
  0x9c   : > { %616 = vst.msk [vmem:[#allocation2 + $0x34] sm:$0xf] %vm469_vm8, %v608_v24  ;;  %v621_v32 = vld [vmem:[#allocation2 + $0x4] sm:$0x7] }
  0x9d   : > { %613 = vst.msk [vmem:[#allocation2 + $0x10] sm:$0xf] %vm469_vm8, %v605_v27  ;;  %v535_v35 = vpop.f32.mrf.mxu2  ;;  %v812_v37 = vrot.slane %v621_v32, 7  ;;  %v648_v38 = vshrl.u32 %v621_v32, 16  ;;  %v651_v39 = vshll.u32 %v621_v32, 16 }
  0x9e   : > { %v528_v41 = vpop.f32.mrf.mxu0  ;;  %v536_v42 = vadd.f32 %v3037_v36, %v535_v35  ;;  %v958_v45 = vld [vmem:[#allocation2 + $0x4] sm:$0xf] }
  0x9f   : > { %v529_v46 = vadd.f32 %v3037_v36, %v528_v41  ;;  %v650_v52 = vrot.slane %v648_v38, 6  ;;  %v653_v53 = vrot.slane %v651_v39, 7  ;;  %v975_v54 = vshrl.u32 %v958_v45, 16  ;;  %v2634_v1 = vld [vmem:[#allocation2 + $0x4] sm:$0xf] }
  0xa0   : > { %v548_v51 = vmax.f32 %v536_v42, 0.0  ;;  %v813_v57 = vsel %vm3086_vm13, %v2601_v26, %v812_v37  ;;  %v978_v3 = vshll.u32 %v958_v45, 16  ;;  %v2605_v39 = vrot.slane %v3106_v9, 11 }
  0xa1   : > { %v545_v56 = vmax.f32 %v529_v46, 0.0  ;;  %v977_v2 = vrot.slane %v975_v54, 7  ;;  %v844_v7 = vunpack.c.l.b16 %v813_v57  ;;  %v654_v8 = vor.u32 %v653_v53, %v650_v52 }
  0xa2   : > { %v609_v60 = vpack.c.bf16 %v548_v51, %v548_v51 }
  0xa3   : > { %v606_v0 = vpack.c.bf16 %v545_v56, %v545_v56  ;;  %v655_v29 = vsel %vm3111_vm1, %v3073_v28, %v654_v8  ;;  %v980_v30 = vor.u32 %v978_v3, %v977_v2  ;;  %v699_v28 = vor.u32 %v3118_v21, %v3116_v20  ;;  %v3140_v52 = vld [vmem:[#allocation2 + $0x34] sm:$0x7] }
  0xa4   : > { %v2835_v5 = vld [vmem:[#allocation2 + $0xc] sm:$0xf0]  ;;  %617 = vst.msk [vmem:[#allocation2 + $0x40] sm:$0xf] %vm469_vm8, %v609_v60  ;;  %v902_v50 = vunpack.c.l.b16 %v655_v29  ;;  %v723_v31 = vshll.u32 %v3140_v52, 16 }
  0xa5   : > { %v623_v6 = vld [vmem:[#allocation2 + $0x10] sm:$0x7]  ;;  %614 = vst.msk [vmem:[#allocation2 + $0x1c] sm:$0xf] %vm469_vm8, %v606_v0  ;;  %v2635_v10 = vor.u32 %v2835_v5, %v2634_v1  ;;  %v538_v16 = vpop.f32.mrf.mxu2  ;;  %v981_v54 = vsel %vm3131_vm2, %v3079_v33, %v980_v30  ;;  %v3152_v5 = vld [vmem:[#allocation2 + $0x3c] sm:$0x8] }
  0xa6   : > { %v816_v11 = vrot.slane %v623_v6, 7  ;;  %v666_v13 = vshrl.u32 %v623_v6, 16  ;;  %v669_v15 = vshll.u32 %v623_v6, 16  ;;  %v530_v17 = vpop.f32.mrf.mxu0  ;;  %v959_v18 = vld [vmem:[#allocation2 + $0x10] sm:$0xf]  ;;  %v539_v19 = vadd.f32 %v3037_v36, %v538_v16 }
  0xa7   : > { %v531_v23 = vadd.f32 %v3037_v36, %v530_v17  ;;  %2648 = vmatmul.msk.bf16.vlgmr.msrb.gmra.mxu1 %vm856_vm12, %v2635_v10  ;;  %v988_v32 = vshrl.u32 %v959_v18, 16  ;;  %v714_v6 = vshll.u32 %v628_v40, 16  ;;  %v2606_v20 = vrot.slane %v3152_v5, 11 }
  0xa8   : > { %v817_v24 = vsel %vm3086_vm13, %v2602_v44, %v816_v11  ;;  %v668_v25 = vrot.slane %v666_v13, 6  ;;  %v671_v26 = vrot.slane %v669_v15, 7  ;;  %v549_v38 = vmax.f32 %v539_v19, 0.0 }
  0xa9   : > { %v845_v27 = vunpack.c.l.b16 %v817_v24  ;;  %v546_v34 = vmax.f32 %v531_v23, 0.0  ;;  %v990_v42 = vrot.slane %v988_v32, 7  ;;  %v991_v44 = vshll.u32 %v959_v18, 16 }
  0xaa   : > { %v672_v35 = vor.u32 %v671_v26, %v668_v25  ;;  %v610_v51 = vpack.c.bf16 %v549_v38, %v549_v38  ;;  %v713_v24 = vrot.slane %v711_v61, 6  ;;  %v716_v25 = vrot.slane %v714_v6, 7  ;;  %v962_v6 = vld [vmem:[#allocation2 + $0x34] sm:$0xf] }
  0xab   : > { %v852_v41 = vpack.c.b16 %v845_v27, %v844_v7  ;;  %v607_v45 = vpack.c.bf16 %v546_v34, %v546_v34  ;;  %v993_v56 = vor.u32 %v991_v44, %v990_v42  ;;  %v1075_v7 = vunpack.c.l.b16 %v981_v54  ;;  %v3155_v17 = vld [vmem:[#allocation2 + $0x40] sm:$0x7] }
  0xac   : > { %v673_v46 = vsel %vm3111_vm1, %v664_v47, %v672_v35  ;;  %v625_v57 = vld [vmem:[#allocation2 + $0x1c] sm:$0x7]  ;;  %618 = vst.msk [vmem:[#allocation2 + $0x4c] sm:$0xf] %vm469_vm8, %v610_v51  ;;  %v700_v27 = vrot.slane %v699_v28, 4  ;;  %v832_v29 = vrot.slane %v3155_v17, 7  ;;  %v717_v51 = vor.u32 %v716_v25, %v713_v24 }
  0xad   : > { %2610 = vmatmul.msk.bf16.vlgmr.msrb.gmra.mxu2 %vm856_vm12, %v852_v41  ;;  %v903_v53 = vunpack.c.l.b16 %v673_v46  ;;  %v960_v60 = vld [vmem:[#allocation2 + $0x1c] sm:$0xf]  ;;  %615 = vst.msk [vmem:[#allocation2 + $0x28] sm:$0xf] %vm469_vm8, %v607_v45  ;;  %v540_v62 = vpop.f32.mrf.mxu2  ;;  %v820_v63 = vrot.slane %v625_v57, 7  ;;  %v684_v47 = vshrl.u32 %v625_v57, 16  ;;  %v994_v3 = vsel %vm3131_vm2, %v3092_v48, %v993_v56 }
  0xae   : > { %v687_v0 = vshll.u32 %v625_v57, 16  ;;  %v1001_v1 = vshrl.u32 %v960_v60, 16  ;;  %v541_v33 = vadd.f32 %v3037_v36, %v540_v62  ;;  %v1076_v8 = vunpack.c.l.b16 %v994_v3  ;;  %v2638_v26 = vld [vmem:[#allocation2 + $0x1c] sm:$0xf]  ;;  %v436_v24 = vld [vmem:[#allocation2 + $0x48] sm:$0xc] }
  0xaf   : > { %v910_v2 = vpack.c.b16 %v903_v53, %v902_v50  ;;  %v686_v10 = vrot.slane %v684_v47, 6  ;;  %v1004_v16 = vshll.u32 %v960_v60, 16  ;;  %v828_v48 = vrot.slane %v3140_v52, 7  ;;  %v630_v50 = vld [vmem:[#allocation2 + $0x3c] sm:$0xc] }
  0xb0   : > { %v689_v11 = vrot.slane %v687_v0, 7  ;;  %v550_v13 = vmax.f32 %v541_v33, 0.0  ;;  %v1003_v15 = vrot.slane %v1001_v1, 7  ;;  %v1083_v18 = vpack.c.b16 %v1076_v8, %v1075_v7  ;;  %v439_v25 = vld [vmem:[#allocation2 + $0x54] sm:$0xc] }
  0xb1   : > { %2614 = vmatmul.msk.bf16.vlgmr.msrb.gmra.mxu3 %vm856_vm12, %v910_v2  ;;  %v821_v36 = vsel %vm3086_vm13, %v2603_v49, %v820_v63  ;;  %v720_v30 = vshrl.u32 %v3140_v52, 16  ;;  %v3170_v35 = vsel %vm3086_vm13, %v2605_v39, %v828_v48  ;;  %v725_v60 = vrot.slane %v723_v31, 7 }
  0xb2   : > { %v690_v19 = vor.u32 %v689_v11, %v686_v10  ;;  %v611_v21 = vpack.c.bf16 %v550_v13, %v550_v13  ;;  %v1006_v23 = vor.u32 %v1004_v16, %v1003_v15  ;;  %2627 = vmatmul.msk.bf16.vlgmr.msrb.gmra.mxu0 %vm856_vm12, %v1083_v18  ;;  %v846_v34 = vunpack.c.l.b16 %v821_v36  ;;  %v963_v18 = vld [vmem:[#allocation2 + $0x40] sm:$0xf] }
  0xb3   : > { %v729_v62 = vshrl.u32 %v630_v50, 16  ;;  %v738_v63 = vshrl.u32 %v3155_v17, 16  ;;  %v741_v55 = vshll.u32 %v3155_v17, 16  ;;  %v718_v15 = vrot.slane %v717_v51, 4 }
  0xb4   : > { %v2836_v32 = vld [vmem:[#allocation2 + $0x24] sm:$0xf0]  ;;  %619 = vst.msk [vmem:[#allocation2 + $0x58] sm:$0xf] %vm469_vm8, %v611_v21  ;;  %v691_v28 = vsel %vm3111_vm1, %v3099_v58, %v690_v19  ;;  %v1007_v45 = vsel %vm3131_vm2, %v3101_v59, %v1006_v23  ;;  %v722_v58 = vrot.slane %v720_v30, 6  ;;  %v732_v59 = vshll.u32 %v630_v50, 16 }
  0xb5   : > { %v627_v49 = vld [vmem:[#allocation2 + $0x28] sm:$0x7]  ;;  %v2639_v38 = vor.u32 %v2836_v32, %v2638_v26  ;;  %v904_v0 = vunpack.c.l.b16 %v691_v28  ;;  %v731_v2 = vrot.slane %v729_v62, 6  ;;  %v740_v33 = vrot.slane %v738_v63, 6  ;;  %v964_v50 = vld [vmem:[#allocation2 + $0x4c] sm:$0xf] }
  0xb6   : > { %v824_v40 = vrot.slane %v627_v49, 7  ;;  %v702_v41 = vshrl.u32 %v627_v49, 16  ;;  %v705_v42 = vshll.u32 %v627_v49, 16  ;;  %v961_v44 = vld [vmem:[#allocation2 + $0x28] sm:$0xf]  ;;  %v734_v3 = vrot.slane %v732_v59, 7 }
  0xb7   : > { %v1014_v46 = vshrl.u32 %v961_v44, 16  ;;  %2649 = vmatmul.msk.bf16.gmra.mxu1 %vm856_vm12, %v2639_v38  ;;  %v1017_v54 = vshll.u32 %v961_v44, 16  ;;  %v1077_v10 = vunpack.c.l.b16 %v1007_v45  ;;  %v743_v11 = vrot.slane %v741_v55, 7  ;;  %v3194_v38 = vld [vmem:[#allocation2 + $0x4c] sm:$0x7] }
  0xb8   : > { %v825_v39 = vsel %vm3086_vm13, %v2604_v4, %v824_v40  ;;  %v704_v52 = vrot.slane %v702_v41, 6  ;;  %v707_v53 = vrot.slane %v705_v42, 7  ;;  %v726_v16 = vor.u32 %v725_v60, %v722_v58  ;;  %v2837_v40 = vld [vmem:[#allocation2 + $0x3c] sm:$0xf0] }
  0xb9   : > { %v847_v56 = vunpack.c.l.b16 %v825_v39  ;;  %v1016_v57 = vrot.slane %v1014_v46, 7  ;;  %v735_v48 = vor.u32 %v734_v3, %v731_v2  ;;  %v744_v19 = vor.u32 %v743_v11, %v740_v33 }
  0xba   : > { %v708_v61 = vor.u32 %v707_v53, %v704_v52  ;;  %v1022_v21 = vshrl.u32 %v3106_v9, 16  ;;  %v1027_v23 = vshrl.u32 %v962_v6, 16  ;;  %v1030_v30 = vshll.u32 %v962_v6, 16 }
  0xbb   : > { %v853_v47 = vpack.c.b16 %v847_v56, %v846_v34  ;;  %v1019_v1 = vor.u32 %v1017_v54, %v1016_v57  ;;  %v1035_v31 = vshrl.u32 %v3152_v5, 16  ;;  %v1040_v49 = vshrl.u32 %v963_v18, 16  ;;  %v3201_v44 = vld [vmem:[#allocation2 + $0x58] sm:$0x7] }
  0xbc   : > { %v709_v4 = vsel %vm3111_vm1, %v700_v27, %v708_v61  ;;  %v736_v27 = vrot.slane %v735_v48, 4  ;;  %v1029_v32 = vrot.slane %v1027_v23, 7  ;;  %v1043_v34 = vshll.u32 %v963_v18, 16  ;;  %v965_v58 = vld [vmem:[#allocation2 + $0x58] sm:$0xf] }
  0xbd   : > { %2611 = vmatmul.msk.bf16.gmra.mxu2 %vm856_vm12, %v853_v47  ;;  %v905_v7 = vunpack.c.l.b16 %v709_v4  ;;  %v1020_v8 = vsel %vm3131_vm2, %v3120_v22, %v1019_v1  ;;  %v2642_v22 = vld [vmem:[#allocation2 + $0x34] sm:$0xf]  ;;  %v848_v41 = vunpack.c.l.b16 %v3170_v35  ;;  %v437_v9 = vsel %vm2997_vm3, 0, %v436_v24  ;;  %v1213_v4 = vld [vmem:[#allocation2 + $0x4] sm:$0xf] }
  0xbe   : > { %v1078_v13 = vunpack.c.l.b16 %v1020_v8  ;;  %v440_v42 = vsel %vm2997_vm3, 0, %v439_v25  ;;  %v833_v28 = vsel %vm3086_vm13, %v2606_v20, %v832_v29  ;;  %v727_v45 = vsel %vm3111_vm1, %v718_v15, %v726_v16  ;;  %438 = vst [vmem:[#allocation2 + $0x48] sm:$0xc] %v437_v9 }
  0xbf   : > { %v911_v36 = vpack.c.b16 %v905_v7, %v904_v0  ;;  %v745_v35 = vsel %vm3111_vm1, %v736_v27, %v744_v19  ;;  %v1042_v46 = vrot.slane %v1040_v49, 7  ;;  %v2622_v14 = vrot.slane %v1022_v21, 11  ;;  %441 = vst [vmem:[#allocation2 + $0x54] sm:$0xc] %v440_v42 }
  0xc0   : > { %v1084_v26 = vpack.c.b16 %v1078_v13, %v1077_v10  ;;  %v1032_v51 = vor.u32 %v1030_v30, %v1029_v32  ;;  %v2623_v39 = vrot.slane %v1035_v31, 11  ;;  %v756_v5 = vshrl.u32 %v3194_v38, 16 }
  0xc1   : > { %2615 = vmatmul.msk.bf16.gmra.mxu3 %vm856_vm12, %v911_v36  ;;  %v1045_v17 = vor.u32 %v1043_v34, %v1042_v46  ;;  %v759_v20 = vshll.u32 %v3194_v38, 16  ;;  %v774_v29 = vshrl.u32 %v3201_v44, 16  ;;  %v777_v52 = vshll.u32 %v3201_v44, 16 }
  0xc2   : > { %2628 = vmatmul.msk.bf16.gmra.mxu0 %vm856_vm12, %v1084_v26  ;;  %v2643_v53 = vor.u32 %v2837_v40, %v2642_v22  ;;  %v849_v54 = vunpack.c.l.b16 %v833_v28  ;;  %v906_v56 = vunpack.c.l.b16 %v727_v45  ;;  %v907_v57 = vunpack.c.l.b16 %v745_v35  ;;  %v2646_v28 = vld [vmem:[#allocation2 + $0x4c] sm:$0xf] }
  0xc3   : > { %v1053_v60 = vshrl.u32 %v964_v50, 16  ;;  %v1033_v61 = vsel %vm3131_vm2, %v2622_v14, %v1032_v51  ;;  %v1046_v62 = vsel %vm3131_vm2, %v2623_v39, %v1045_v17  ;;  %v836_v59 = vrot.slane %v3194_v38, 7  ;;  %v2838_v14 = vld [vmem:[#allocation2 + $0x54] sm:$0xf0] }
  0xc4   : > { %v840_v63 = vrot.slane %v3201_v44, 7  ;;  %v3225_v47 = vrot.slane %v756_v5, 6  ;;  %v3227_v0 = vrot.slane %v759_v20, 7  ;;  %v3229_v1 = vrot.slane %v774_v29, 6  ;;  %v1215_v44 = vld [vmem:[#allocation2 + $0x10] sm:$0xf] }
  0xc5   : > { %v779_v55 = vrot.slane %v777_v52, 7  ;;  %v854_v2 = vpack.c.b16 %v849_v54, %v848_v41  ;;  %v912_v3 = vpack.c.b16 %v907_v57, %v906_v56  ;;  %v789_v33 = vld [vmem:[#allocation2 + $0x48] sm:$0x8]  ;;  %v1056_v7 = vshll.u32 %v964_v50, 16  ;;  %v3240_v52 = vld [vmem:[#allocation2 + $0x8] sm:$0x1] }
  0xc6   : > { %v632_v6 = vld [vmem:[#allocation2 + $0x48] sm:$0xc]  ;;  %v1066_v8 = vshrl.u32 %v965_v58, 16  ;;  %v1079_v10 = vunpack.c.l.b16 %v1033_v61  ;;  %v1080_v11 = vunpack.c.l.b16 %v1046_v62  ;;  %v790_v13 = vld [vmem:[#allocation2 + $0x54] sm:$0x8]  ;;  %v1055_v48 = vrot.slane %v1053_v60, 7 }
  0xc7   : > { %2650 = vmatmul.msk.bf16.gmra.mxu1 %vm856_vm12, %v2643_v53  ;;  %v634_v15 = vld [vmem:[#allocation2 + $0x54] sm:$0xc]  ;;  %v747_v16 = vshrl.u32 %v632_v6, 16  ;;  %v750_v18 = vshll.u32 %v632_v6, 16  ;;  %v1233_v21 = vshrl.u32 %v1213_v4, 16  ;;  %v2607_v23 = vrot.slane %v789_v33, 11 }
  0xc8   : > { %v765_v36 = vshrl.u32 %v634_v15, 16  ;;  %v768_v19 = vshll.u32 %v634_v15, 16  ;;  %v2608_v24 = vrot.slane %v790_v13, 11  ;;  %v1048_v26 = vshrl.u32 %v789_v33, 16 }
  0xc9   : > { %v749_v25 = vrot.slane %v747_v16, 6  ;;  %v752_v27 = vrot.slane %v750_v18, 7  ;;  %v1061_v31 = vshrl.u32 %v790_v13, 16  ;;  %v1236_v22 = vshll.u32 %v1213_v4, 16  ;;  %v1536_v18 = vld [vmem:[#allocation2 + $0x14] sm:$0x3] }
  0xca   : > { %v767_v30 = vrot.slane %v765_v36, 6  ;;  %v762_v32 = vor.u32 %v3227_v0, %v3225_v47  ;;  %v770_v49 = vrot.slane %v768_v19, 7  ;;  %v1068_v34 = vrot.slane %v1066_v8, 7 }
  0xcb   : > { %v1069_v38 = vshll.u32 %v965_v58, 16  ;;  %v1085_v40 = vpack.c.b16 %v1080_v11, %v1079_v10  ;;  %v753_v41 = vor.u32 %v752_v27, %v749_v25  ;;  %v780_v9 = vor.u32 %v779_v55, %v3229_v1  ;;  %v1410_v1 = vld [vmem:[#allocation2 + $0x4] sm:$0xe]  ;;  %v1411_v10 = vld [vmem:[#allocation2 + $0x10] sm:$0xe] }
  0xcc   : > { %v1058_v42 = vor.u32 %v1056_v7, %v1055_v48  ;;  %v837_v45 = vsel %vm3086_vm13, %v2607_v23, %v836_v59  ;;  %v841_v35 = vsel %vm3086_vm13, %v2608_v24, %v840_v63  ;;  %v771_v46 = vor.u32 %v770_v49, %v767_v30  ;;  %v3250_v63 = vld [vmem:[#allocation2 + $0x14] sm:$0x1] }
  0xcd   : > { %2612 = vmatmul.msk.bf16.gmra.mxu2 %vm856_vm12, %v854_v2  ;;  %v2624_v50 = vrot.slane %v1048_v26, 11  ;;  %v754_v51 = vrot.slane %v753_v41, 4  ;;  %v2625_v39 = vrot.slane %v1061_v31, 11  ;;  %v1235_v5 = vrot.slane %v1233_v21, 4  ;;  %v1217_v31 = vld [vmem:[#allocation2 + $0x1c] sm:$0xf] }
  0xce   : > { %v1238_v17 = vrot.slane %v1236_v22, 5  ;;  %v772_v20 = vrot.slane %v771_v46, 4  ;;  %v1071_v29 = vor.u32 %v1069_v38, %v1068_v34  ;;  %v1247_v53 = vshrl.u32 %v1215_v44, 16 }
  0xcf   : > { %v1250_v54 = vshll.u32 %v1215_v44, 16  ;;  %v850_v56 = vunpack.c.l.b16 %v837_v45  ;;  %v851_v57 = vunpack.c.l.b16 %v841_v35  ;;  %v1242_v43 = vshll.u32 %v3240_v52, 16 }
  0xd0   : > { %v2647_v58 = vor.u32 %v2838_v14, %v2646_v28  ;;  %v1059_v60 = vsel %vm3131_vm2, %v2624_v50, %v1058_v42  ;;  %v1249_v61 = vrot.slane %v1247_v53, 4  ;;  %v763_v62 = vsel %vm3111_vm1, %v754_v51, %v762_v32 }
  0xd1   : > { %2616 = vmatmul.msk.bf16.gmra.mxu3 %vm856_vm12, %v912_v3  ;;  %v781_v59 = vsel %vm3111_vm1, %v772_v20, %v780_v9  ;;  %v1239_v47 = vor.u32 %v1238_v17, %v1235_v5  ;;  %v1252_v0 = vrot.slane %v1250_v54, 5  ;;  %v1072_v55 = vsel %vm3131_vm2, %v2625_v39, %v1071_v29 }
  0xd2   : > { %2629 = vmatmul.msk.bf16.gmra.mxu0 %vm856_vm12, %v1085_v40  ;;  %vm1229_vm3 = vsmask.f32 3328  ;;  %v1256_v4 = vshll.u32 %v3250_v63, 16  ;;  %v855_v2 = vpack.c.b16 %v851_v57, %v850_v56  ;;  %v3256_v3 = vrot.slane %v1242_v43, 5  ;;  %v1219_v40 = vld [vmem:[#allocation2 + $0x28] sm:$0xf] }
  0xd3   : > { %v1253_v33 = vor.u32 %v1252_v0, %v1249_v61  ;;  %v908_v6 = vunpack.c.l.b16 %v763_v62  ;;  %v909_v7 = vunpack.c.l.b16 %v781_v59  ;;  %v1081_v8 = vunpack.c.l.b16 %v1059_v60  ;;  %vm3262_vm9 = vmor %vm1229_vm3, %vm1230_vm4  ;;  %v1412_v60 = vld [vmem:[#allocation2 + $0x1c] sm:$0xe]  ;;  %v2716_v61 = vld [vmem:[%s3598_s7 + $0x8] sm:$0xf] }
  0xd4   : > { %v1547_v11 = vshrl.u32 %v1410_v1, 16  ;;  %v1082_v13 = vunpack.c.l.b16 %v1072_v55  ;;  %v1240_v15 = vrot.slane %v1239_v47, 4  ;;  %v1550_v37 = vshll.u32 %v1410_v1, 16 }
  0xd5   : > { %v1254_v16 = vrot.slane %v1253_v33, 4  ;;  %v1258_v48 = vrot.slane %v1256_v4, 5  ;;  %v1556_v19 = vshrl.u32 %v1535_v12, 16  ;;  %v1559_v23 = vshll.u32 %v1535_v12, 16  ;;  %v1537_v4 = vld [vmem:[#allocation2 + $0x20] sm:$0x3] }
  0xd6   : > { %v1549_v36 = vrot.slane %v1547_v11, 5  ;;  %v1552_v21 = vrot.slane %v1550_v37, 6  ;;  %v1565_v24 = vshrl.u32 %v1411_v10, 16  ;;  %v1568_v25 = vshll.u32 %v1411_v10, 16  ;;  %v1220_v33 = vld [vmem:[#allocation2 + $0x2c] sm:$0x1] }
  0xd7   : > { %2651 = vmatmul.msk.bf16.gmra.mxu1 %vm856_vm12, %v2647_v58  ;;  %v913_v26 = vpack.c.b16 %v909_v7, %v908_v6  ;;  %v2657_v27 = vrot.slane %v1410_v1, 9  ;;  %v1439_v30 = vrot.slane %v3240_v52, 5  ;;  %v2658_v32 = vrot.slane %v1411_v10, 9  ;;  %v1413_v12 = vld [vmem:[#allocation2 + $0x28] sm:$0xe] }
  0xd8   : > { %v1567_v49 = vrot.slane %v1565_v24, 5  ;;  %v1570_v34 = vrot.slane %v1568_v25, 6  ;;  %v1574_v38 = vshrl.u32 %v1536_v18, 16  ;;  %v1259_v41 = vsel %vm3262_vm9, %v1254_v16, %v1258_v48 }
  0xd9   : > { %v1443_v9 = vrot.slane %v3250_v63, 5  ;;  %v1558_v42 = vrot.slane %v1556_v19, 5  ;;  %v1577_v44 = vshll.u32 %v1536_v18, 16  ;;  %v1553_v45 = vor.u32 %v1552_v21, %v1549_v36  ;;  %v1218_v63 = vld [vmem:[#allocation2 + $0x20] sm:$0x1] }
  0xda   : > { %v1561_v35 = vrot.slane %v1559_v23, 6  ;;  %v1261_v46 = vshrl.u32 %v1217_v31, 16  ;;  %v1264_v50 = vshll.u32 %v1217_v31, 16  ;;  %v1571_v14 = vor.u32 %v1570_v34, %v1567_v49 }
  0xdb   : > { %v1576_v51 = vrot.slane %v1574_v38, 5  ;;  %v1579_v39 = vrot.slane %v1577_v44, 6  ;;  %v1275_v5 = vshrl.u32 %v1219_v40, 16  ;;  %v1086_v17 = vpack.c.b16 %v1082_v13, %v1081_v8 }
  0xdc   : > { %vm1544_vm13 = vsmask.f32 6416  ;;  %v1278_v20 = vshll.u32 %v1219_v40, 16  ;;  %v1245_v29 = vsel %vm3262_vm9, %v1240_v15, %v3256_v3  ;;  %v1347_v52 = vunpack.c.l.b16 %v1259_v41 }
  0xdd   : > { %2613 = vmatmul.msk.bf16.gmra.mxu2 %vm856_vm12, %v855_v2  ;;  %v1440_v53 = vsel %vm3270_vm10, %v2657_v27, %v1439_v30  ;;  %v1444_v54 = vsel %vm3270_vm10, %v2658_v32, %v1443_v9  ;;  %v1554_v56 = vrot.slane %v1553_v45, 4  ;;  %v1562_v57 = vor.u32 %v1561_v35, %v1558_v42  ;;  %vm3283_vm14 = vmor %vm1543_vm11, %vm1544_vm13 }
  0xde   : > { %v1263_v43 = vrot.slane %v1261_v46, 4  ;;  %v1266_v58 = vrot.slane %v1264_v50, 5  ;;  %v1572_v62 = vrot.slane %v1571_v14, 4  ;;  %v1580_v59 = vor.u32 %v1579_v39, %v1576_v51  ;;  %v1221_v51 = vld [vmem:[#allocation2 + $0x34] sm:$0xf] }
  0xdf   : > { %v1277_v47 = vrot.slane %v1275_v5, 4  ;;  %v1280_v0 = vrot.slane %v1278_v20, 5  ;;  %v1346_v1 = vunpack.c.l.b16 %v1245_v29  ;;  %v1270_v55 = vshll.u32 %v1218_v63, 16  ;;  %v1223_v39 = vld [vmem:[#allocation2 + $0x40] sm:$0xf] }
  0xe0   : > { %v1471_v2 = vunpack.c.l.b16 %v1440_v53  ;;  %v1472_v3 = vunpack.c.l.b16 %v1444_v54  ;;  %v1583_v6 = vshrl.u32 %v1412_v60, 16  ;;  %v1586_v7 = vshll.u32 %v1412_v60, 16 }
  0xe1   : > { %2617 = vmatmul.msk.bf16.gmra.mxu3 %vm856_vm12, %v913_v26  ;;  %v1354_v8 = vpack.c.b16 %v1347_v52, %v1346_v1  ;;  %v1563_v10 = vsel %vm3283_vm14, %v1554_v56, %v1562_v57  ;;  %v1267_v11 = vor.u32 %v1266_v58, %v1263_v43  ;;  %v1284_v13 = vshll.u32 %v1220_v33, 16  ;;  %v1538_v26 = vld [vmem:[#allocation2 + $0x2c] sm:$0x3] }
  0xe2   : > { %2630 = vmatmul.msk.bf16.gmra.mxu0 %vm856_vm12, %v1086_v17  ;;  %v1581_v15 = vsel %vm3283_vm14, %v1572_v62, %v1580_v59  ;;  %v1281_v37 = vor.u32 %v1280_v0, %v1277_v47  ;;  %v1585_v16 = vrot.slane %v1583_v6, 5  ;;  %v1588_v48 = vrot.slane %v1586_v7, 6  ;;  %v1414_v47 = vld [vmem:[#allocation2 + $0x34] sm:$0xe]  ;;  %v1415_v6 = vld [vmem:[#allocation2 + $0x40] sm:$0xe] }
  0xe3   : > { %v1272_v18 = vrot.slane %v1270_v55, 5  ;;  %v1592_v36 = vshrl.u32 %v1537_v4, 16  ;;  %v1595_v19 = vshll.u32 %v1537_v4, 16  ;;  %v1601_v21 = vshrl.u32 %v1413_v12, 16 }
  0xe4   : > { %v2659_v23 = vrot.slane %v1412_v60, 9  ;;  %v1447_v24 = vrot.slane %v1218_v63, 5  ;;  %v2660_v25 = vrot.slane %v1413_v12, 9  ;;  %v1604_v27 = vshll.u32 %v1413_v12, 16 }
  0xe5   : > { %v1693_v30 = vunpack.c.l.b16 %v1581_v15  ;;  %v1268_v31 = vrot.slane %v1267_v11, 4  ;;  %v1286_v32 = vrot.slane %v1284_v13, 5  ;;  %v1451_v49 = vrot.slane %v1220_v33, 5  ;;  %v1222_v13 = vld [vmem:[#allocation2 + $0x38] sm:$0x1] }
  0xe6   : > { %v1282_v34 = vrot.slane %v1281_v37, 4  ;;  %v1589_v38 = vor.u32 %v1588_v48, %v1585_v16  ;;  %v1594_v40 = vrot.slane %v1592_v36, 5  ;;  %v1597_v41 = vrot.slane %v1595_v19, 6  ;;  %v1224_v15 = vld [vmem:[#allocation2 + $0x44] sm:$0x1] }
  0xe7   : > { %v1603_v9 = vrot.slane %v1601_v21, 5  ;;  %v1606_v42 = vrot.slane %v1604_v27, 6  ;;  %v1610_v44 = vshrl.u32 %v1538_v26, 16  ;;  %v1613_v45 = vshll.u32 %v1538_v26, 16  ;;  %v1539_v37 = vld [vmem:[#allocation2 + $0x38] sm:$0x3] }
  0xe8   : > { %v1479_v35 = vpack.c.b16 %v1472_v3, %v1471_v2  ;;  %v1692_v46 = vunpack.c.l.b16 %v1563_v10  ;;  %v1448_v50 = vsel %vm3270_vm10, %v2659_v23, %v1447_v24  ;;  %v1452_v14 = vsel %vm3270_vm10, %v2660_v25, %v1451_v49  ;;  %v1540_v36 = vld [vmem:[#allocation2 + $0x44] sm:$0x3] }
  0xe9   : > { %v1273_v17 = vsel %vm3262_vm9, %v1268_v31, %v1272_v18  ;;  %v1287_v20 = vsel %vm3262_vm9, %v1282_v34, %v1286_v32  ;;  %v1590_v29 = vrot.slane %v1589_v38, 4  ;;  %v1598_v52 = vor.u32 %v1597_v41, %v1594_v40 }
  0xea   : > { %v1700_v5 = vpack.c.b16 %v1693_v30, %v1692_v46  ;;  %v1607_v53 = vor.u32 %v1606_v42, %v1603_v9  ;;  %v1612_v54 = vrot.slane %v1610_v44, 5  ;;  %v1615_v56 = vrot.slane %v1613_v45, 6  ;;  %v1225_v44 = vld [vmem:[#allocation2 + $0x4c] sm:$0xf] }
  0xeb   : > { %v1289_v57 = vshrl.u32 %v1221_v51, 16  ;;  %v1292_v43 = vshll.u32 %v1221_v51, 16  ;;  %v1303_v58 = vshrl.u32 %v1223_v39, 16  ;;  %v1306_v60 = vshll.u32 %v1223_v39, 16 }
  0xec   : > { %v1349_v62 = vunpack.c.l.b16 %v1287_v20  ;;  %v1473_v59 = vunpack.c.l.b16 %v1448_v50  ;;  %v1474_v63 = vunpack.c.l.b16 %v1452_v14  ;;  %v1348_v0 = vunpack.c.l.b16 %v1273_v17  ;;  %v1227_v17 = vld [vmem:[#allocation2 + $0x58] sm:$0xf] }
  0xed   : > { %2653 = vmatmul.msk.bf16.vlgmr.msra.gmra.mxu2 %vm856_vm12, %v1354_v8  ;;  %v1599_v1 = vsel %vm3283_vm14, %v1590_v29, %v1598_v52  ;;  %v1608_v55 = vrot.slane %v1607_v53, 4  ;;  %v1616_v4 = vor.u32 %v1615_v56, %v1612_v54  ;;  %v1291_v2 = vrot.slane %v1289_v57, 4 }
  0xee   : > { %v1294_v3 = vrot.slane %v1292_v43, 5  ;;  %v1305_v33 = vrot.slane %v1303_v58, 4  ;;  %v1308_v12 = vrot.slane %v1306_v60, 5  ;;  %v1619_v7 = vshrl.u32 %v1414_v47, 16 }
  0xef   : > { %v1622_v8 = vshll.u32 %v1414_v47, 16  ;;  %v1355_v10 = vpack.c.b16 %v1349_v62, %v1348_v0  ;;  %v1480_v11 = vpack.c.b16 %v1474_v63, %v1473_v59  ;;  %v1694_v16 = vunpack.c.l.b16 %v1599_v1 }
  0xf0   : > { %v1298_v48 = vshll.u32 %v1222_v13, 16  ;;  %v1312_v18 = vshll.u32 %v1224_v15, 16  ;;  %v1637_v19 = vshrl.u32 %v1415_v6, 16  ;;  %v1617_v21 = vsel %vm3283_vm14, %v1608_v55, %v1616_v4 }
  0xf1   : > { %2666 = vmatmul.msk.bf16.vlgmr.msra.gmra.mxu3 %vm856_vm12, %v1479_v35  ;;  %v1295_v23 = vor.u32 %v1294_v3, %v1291_v2  ;;  %v1309_v24 = vor.u32 %v1308_v12, %v1305_v33  ;;  %v1640_v25 = vshll.u32 %v1415_v6, 16  ;;  %v1621_v26 = vrot.slane %v1619_v7, 5 }
  0xf2   : > { %2671 = vmatmul.msk.bf16.vlgmr.msra.gmra.mxu0 %vm856_vm12, %v1700_v5  ;;  %v1624_v27 = vrot.slane %v1622_v8, 6  ;;  %v1628_v30 = vshrl.u32 %v1539_v37, 16  ;;  %v1631_v31 = vshll.u32 %v1539_v37, 16  ;;  %v1639_v32 = vrot.slane %v1637_v19, 5  ;;  %v1541_v19 = vld [vmem:[#allocation2 + $0x50] sm:$0x3] }
  0xf3   : > { %v1642_v49 = vrot.slane %v1640_v25, 6  ;;  %v1646_v34 = vshrl.u32 %v1540_v36, 16  ;;  %v1649_v38 = vshll.u32 %v1540_v36, 16  ;;  %v1695_v40 = vunpack.c.l.b16 %v1617_v21 }
  0xf4   : > { %v1300_v41 = vrot.slane %v1298_v48, 5  ;;  %v1314_v9 = vrot.slane %v1312_v18, 5  ;;  %v2661_v42 = vrot.slane %v1414_v47, 9  ;;  %v1296_v45 = vrot.slane %v1295_v23, 4 }
  0xf5   : > { %v1455_v35 = vrot.slane %v1222_v13, 5  ;;  %v2662_v46 = vrot.slane %v1415_v6, 9  ;;  %v1459_v50 = vrot.slane %v1224_v15, 5  ;;  %v1310_v14 = vrot.slane %v1309_v24, 4  ;;  %v1416_v6 = vld [vmem:[#allocation2 + $0x4c] sm:$0xe] }
  0xf6   : > { %v1625_v51 = vor.u32 %v1624_v27, %v1621_v26  ;;  %v1630_v39 = vrot.slane %v1628_v30, 5  ;;  %v1633_v5 = vrot.slane %v1631_v31, 6  ;;  %v1643_v20 = vor.u32 %v1642_v49, %v1639_v32  ;;  %v1228_v13 = vld [vmem:[#allocation2 + $0x5c] sm:$0x1]  ;;  %v1417_v15 = vld [vmem:[#allocation2 + $0x58] sm:$0xe] }
  0xf7   : > { %v1648_v29 = vrot.slane %v1646_v34, 5  ;;  %v1651_v52 = vrot.slane %v1649_v38, 6  ;;  %v1317_v53 = vshrl.u32 %v1225_v44, 16  ;;  %v1701_v54 = vpack.c.b16 %v1695_v40, %v1694_v16  ;;  %v1542_v31 = vld [vmem:[#allocation2 + $0x5c] sm:$0x3] }
  0xf8   : > { %v1320_v56 = vshll.u32 %v1225_v44, 16  ;;  %v1301_v57 = vsel %vm3262_vm9, %v1296_v45, %v1300_v41  ;;  %v1456_v43 = vsel %vm3270_vm10, %v2661_v42, %v1455_v35  ;;  %v1331_v58 = vshrl.u32 %v1227_v17, 16  ;;  %v3322_v41 = vpop.f32.mrf.mxu3 }
  0xf9   : > { %v1334_v60 = vshll.u32 %v1227_v17, 16  ;;  %v1315_v62 = vsel %vm3262_vm9, %v1310_v14, %v1314_v9  ;;  %v1460_v59 = vsel %vm3270_vm10, %v2662_v46, %v1459_v50  ;;  %v1626_v63 = vrot.slane %v1625_v51, 4 }
  0xfa   : > { %v1634_v47 = vor.u32 %v1633_v5, %v1630_v39  ;;  %v1644_v0 = vrot.slane %v1643_v20, 4  ;;  %v1652_v1 = vor.u32 %v1651_v52, %v1648_v29  ;;  %v1319_v55 = vrot.slane %v1317_v53, 4 }
  0xfb   : > { %v1322_v4 = vrot.slane %v1320_v56, 5  ;;  %v1333_v2 = vrot.slane %v1331_v58, 4  ;;  %v1336_v3 = vrot.slane %v1334_v60, 5  ;;  %v1350_v33 = vunpack.c.l.b16 %v1301_v57 }
  0xfc   : > { %v1351_v12 = vunpack.c.l.b16 %v1315_v62  ;;  %v1475_v7 = vunpack.c.l.b16 %v1456_v43  ;;  %v1476_v8 = vunpack.c.l.b16 %v1460_v59  ;;  %v1653_v37 = vsel %vm3283_vm14, %v1644_v0, %v1652_v1 }
  0xfd   : > { %2654 = vmatmul.msk.bf16.gmra.mxu2 %vm856_vm12, %v1355_v10  ;;  %v1635_v10 = vsel %vm3283_vm14, %v1626_v63, %v1634_v47  ;;  %v1323_v16 = vor.u32 %v1322_v4, %v1319_v55  ;;  %v1340_v18 = vshll.u32 %v1228_v13, 16  ;;  %v1337_v36 = vor.u32 %v1336_v3, %v1333_v2 }
  0xfe   : > { %v1655_v21 = vshrl.u32 %v1416_v6, 16  ;;  %v1658_v23 = vshll.u32 %v1416_v6, 16  ;;  %v1356_v24 = vpack.c.b16 %v1351_v12, %v1350_v33  ;;  %v1673_v25 = vshrl.u32 %v1417_v15, 16 }
  0xff   : > { %v1481_v26 = vpack.c.b16 %v1476_v8, %v1475_v7  ;;  %v1696_v27 = vunpack.c.l.b16 %v1635_v10  ;;  %v1697_v30 = vunpack.c.l.b16 %v1653_v37  ;;  %v1676_v32 = vshll.u32 %v1417_v15, 16 }
 0x100   : > { %v1324_v49 = vrot.slane %v1323_v16, 4  ;;  %v1342_v38 = vrot.slane %v1340_v18, 5  ;;  %v1664_v40 = vshrl.u32 %v1541_v19, 16  ;;  %v1338_v9 = vrot.slane %v1337_v36, 4  ;;  %v3332_v1 = vpop.f32.mrf.mxu3 }
 0x101   : > { %2667 = vmatmul.msk.bf16.gmra.mxu3 %vm856_vm12, %v1480_v11  ;;  %v1226_v11 = vld [vmem:[#allocation2 + $0x50] sm:$0x1]  ;;  %v1657_v42 = vrot.slane %v1655_v21, 5  ;;  %v1660_v44 = vrot.slane %v1658_v23, 6  ;;  %v1667_v45 = vshll.u32 %v1541_v19, 16  ;;  %v1675_v35 = vrot.slane %v1673_v25, 5 }
 0x102   : > { %2672 = vmatmul.msk.bf16.gmra.mxu0 %vm856_vm12, %v1701_v54  ;;  %v1326_v48 = vshll.u32 %v1226_v11, 16  ;;  %v1678_v46 = vrot.slane %v1676_v32, 6  ;;  %v1682_v50 = vshrl.u32 %v1542_v31, 16  ;;  %v1685_v14 = vshll.u32 %v1542_v31, 16 }
 0x103   : > { %v1702_v51 = vpack.c.b16 %v1697_v30, %v1696_v27  ;;  %v2663_v39 = vrot.slane %v1416_v6, 9  ;;  %v1463_v5 = vrot.slane %v1226_v11, 5  ;;  %v1343_v20 = vsel %vm3262_vm9, %v1338_v9, %v1342_v38  ;;  %v1801_v11 = vld [vmem:[%s3598_s7] sm:$0xf] }
 0x104   : > { %v1328_v34 = vrot.slane %v1326_v48, 5  ;;  %v1661_v29 = vor.u32 %v1660_v44, %v1657_v42  ;;  %v1666_v52 = vrot.slane %v1664_v40, 5  ;;  %v1669_v53 = vrot.slane %v1667_v45, 6 }
 0x105   : > { %v1679_v54 = vor.u32 %v1678_v46, %v1675_v35  ;;  %v1684_v56 = vrot.slane %v1682_v50, 5  ;;  %v1687_v57 = vrot.slane %v1685_v14, 6  ;;  %v2664_v43 = vrot.slane %v1417_v15, 9 }
 0x106   : > { %v1329_v17 = vsel %vm3262_vm9, %v1324_v49, %v1328_v34  ;;  %v1467_v58 = vrot.slane %v1228_v13, 5  ;;  %v1353_v62 = vunpack.c.l.b16 %v1343_v20  ;;  %v1464_v59 = vsel %vm3270_vm10, %v2663_v39, %v1463_v5  ;;  %v2675_v13 = vld [vmem:[%s3598_s7 + $0x4] sm:$0xf] }
 0x107   : > { %v1352_v60 = vunpack.c.l.b16 %v1329_v17  ;;  %v1662_v63 = vrot.slane %v1661_v29, 4  ;;  %v1670_v47 = vor.u32 %v1669_v53, %v1666_v52  ;;  %v1680_v0 = vrot.slane %v1679_v54, 4 }
 0x108   : > { %v1688_v22 = vor.u32 %v1687_v57, %v1684_v56  ;;  %v1468_v55 = vsel %vm3270_vm10, %v2664_v43, %v1467_v58  ;;  %v1477_v4 = vunpack.c.l.b16 %v1464_v59  ;;  %v3342_v10 = vpop.f32.mrf.mxu3  ;;  %v1910_v15 = vsel %vm869_vm7, %v1801_v11, 0  ;;  %v2779_v43 = vld [vmem:[%s3598_s7 + $0x14] sm:$0xf]  ;;  %v2737_v58 = vld [vmem:[%s3598_s7 + $0xc] sm:$0xf] }
 0x109   : > { %v1357_v2 = vpack.c.b16 %v1353_v62, %v1352_v60  ;;  %v1478_v3 = vunpack.c.l.b16 %v1468_v55  ;;  %v1671_v33 = vsel %vm3283_vm14, %v1662_v63, %v1670_v47  ;;  %v1985_v37 = vsel %vm869_vm7, %v2716_v61, 0  ;;  %1919 = vmatpush.bf16.msrb.mxu2 %v1910_v15  ;;  %v2800_v60 = vld [vmem:[%s3598_s7 + $0x18] sm:$0xf] }
 0x10a   : > { %v1689_v12 = vsel %vm3283_vm14, %v1680_v0, %v1688_v22  ;;  %v1698_v6 = vunpack.c.l.b16 %v1671_v33  ;;  %v1846_v16 = vsel %vm869_vm7, %v2675_v13, 0  ;;  %1994 = vmatpush.bf16.msrb.mxu3 %v1985_v37  ;;  %v2891_v14 = vmov 0   ;;  %v2758_v0 = vld [vmem:[%s3598_s7 + $0x10] sm:$0xf] }
 0x10b   : > { %v1699_v7 = vunpack.c.l.b16 %v1689_v12  ;;  %v1482_v8 = vpack.c.b16 %v1478_v3, %v1477_v4  ;;  %1855 = vmatpush.bf16.msra.mxu1 %v1846_v16  ;;  %470 = vst.msk [vmem:[#allocation3] sm:$0xf] %vm469_vm8, %v2891_v14  ;;  %v2233_v59 = vsel %vm869_vm7, %v2779_v43, 0  ;;  %v2067_v63 = vsel %vm869_vm7, %v2737_v58, 0 }
 0x10c   : > { %471 = vst.msk [vmem:[#allocation3 + $0x4] sm:$0xf] %vm469_vm8, %v2891_v14  ;;  %v2316_v47 = vsel %vm869_vm7, %v2800_v60, 0  ;;  %2076 = vmatpush.bf16.msrb.mxu0 %v2067_v63 }
 0x10d   : > { %2655 = vmatmul.msk.bf16.gmra.mxu2 %vm856_vm12, %v1356_v24  ;;  %v1703_v28 = vpack.c.b16 %v1699_v7, %v1698_v6  ;;  %v3359_v24 = vpop.f32.mrf.mxu1  ;;  %472 = vst.msk [vmem:[#allocation3 + $0x8] sm:$0xf] %vm469_vm8, %v2891_v14  ;;  %v3426_v7 = vld [vmem:[%s3597_s6] ss:$0 sm:$0xff] }
 0x10e   : > { %474 = vst.msk [vmem:[#allocation3 + $0x2c] sm:$0xf] %vm469_vm8, %v2891_v14  ;;  %2242 = vmatpush.bf16.msra.mxu2 %v2233_v59  ;;  %2325 = vmatpush.bf16.msra.mxu3 %v2316_v47 }
 0x10f   : > { %475 = vst.msk [vmem:[#allocation3 + $0x30] sm:$0xf] %vm469_vm8, %v2891_v14 }
 0x110   : > { %v3357_v48 = vpop.f32.mrf.mxu3  ;;  %476 = vst.msk [vmem:[#allocation3 + $0x34] sm:$0xf] %vm469_vm8, %v2891_v14 }
 0x111   : > { %2668 = vmatmul.msk.bf16.gmra.mxu3 %vm856_vm12, %v1481_v26 }
 0x112   : > { %2673 = vmatmul.msk.bf16.gmra.mxu0 %vm856_vm12, %v1702_v51 }
 0x113   : > { %v2839_v20 = vld [vmem:[#allocation3] sm:$0xff] }
 0x114   : > { %v2843_v53 = vld [vmem:[#allocation3 + $0x4] sm:$0xff] }
 0x115   : > { %v3363_v30 = vpop.f32.mrf.mxu1  ;;  %2692 = vmatmul.msk.bf16.vlgmr.msra.gmra.mxu1 %vm856_vm12, %v2843_v53 }
 0x11d   : > { %2656 = vmatmul.msk.bf16.gmra.mxu2 %vm856_vm12, %v1357_v2  ;;  %v3371_v38 = vpop.f32.mrf.mxu1  ;;  %v2150_v2 = vsel %vm869_vm7, %v2758_v0, 0 }
 0x11e   : > { %2159 = vmatpush.bf16.msrb.mxu1 %v2150_v2 }
 0x121   : > { %2669 = vmatmul.msk.bf16.gmra.mxu3 %vm856_vm12, %v1482_v8 }
 0x122   : > { %2674 = vmatmul.msk.bf16.gmra.mxu0 %vm856_vm12, %v1703_v28 }
 0x125   : > { %v3379_v44 = vpop.f32.mrf.mxu1 }
 0x12d   : > { %v1185_v39 = vpop.f32.mrf.mxu1  ;;  %2712 = vmatmul.msk.bf16.vlgmr.msrb.gmra.mxu2 %vm856_vm12, %v2839_v20 }
 0x12f   : > { %v1111_v36 = vpop.f32.mrf.mxu0 }
 0x130   : > { %v882_v18 = vpop.f32.mrf.mxu2 }
 0x134   : > { %v938_v19 = vpop.f32.mrf.mxu3 }
 0x135   : > { %v939_v29 = vadd.f32 %v938_v19, %v882_v18  ;;  %v1187_v54 = vpop.f32.mrf.mxu1 }
 0x137   : > { %v1113_v23 = vpop.f32.mrf.mxu0  ;;  %v1131_v57 = vadd.f32 %v1111_v36, %v939_v29 }
 0x138   : > { %v884_v21 = vpop.f32.mrf.mxu2 }
 0x139   : > { %v1205_v4 = vadd.f32 %v1185_v39, %v1131_v57 }
 0x13c   : > { %v940_v25 = vpop.f32.mrf.mxu3 }
 0x13d   : > { %v941_v22 = vadd.f32 %v940_v25, %v884_v21  ;;  %v1190_v8 = vpop.f32.mrf.mxu1 }
 0x13f   : > { %v3361_v27 = vpop.f32.mrf.mxu0  ;;  %v1132_v12 = vadd.f32 %v1113_v23, %v941_v22 }
 0x140   : > { %v887_v26 = vpop.f32.mrf.mxu2 }
 0x141   : > { %v1206_v37 = vadd.f32 %v1187_v54, %v1132_v12 }
 0x144   : > { %v943_v31 = vpop.f32.mrf.mxu3 }
 0x145   : > { %v944_v61 = vadd.f32 %v943_v31, %v887_v26  ;;  %v1192_v14 = vpop.f32.mrf.mxu1 }
 0x147   : > { %v3367_v49 = vpop.f32.mrf.mxu0  ;;  %v1133_v19 = vadd.f32 %v3361_v27, %v944_v61 }
 0x148   : > { %v3365_v32 = vpop.f32.mrf.mxu2 }
 0x149   : > { %v1207_v29 = vadd.f32 %v1190_v8, %v1133_v19 }
 0x14c   : > { %v3369_v34 = vpop.f32.mrf.mxu3 }
 0x14d   : > { %v946_v20 = vadd.f32 %v3369_v34, %v3365_v32 }
 0x14f   : > { %v3375_v9 = vpop.f32.mrf.mxu0  ;;  %v1134_v43 = vadd.f32 %v3367_v49, %v946_v20  ;;  %v1195_v49 = vpop.f32.mrf.mxu1 }
 0x150   : > { %v3373_v40 = vpop.f32.mrf.mxu2 }
 0x151   : > { %v1208_v0 = vadd.f32 %v1192_v14, %v1134_v43 }
 0x154   : > { %v3377_v42 = vpop.f32.mrf.mxu3 }
 0x155   : > { %v949_v32 = vadd.f32 %v3377_v42, %v3373_v40 }
 0x157   : > { %v3383_v35 = vpop.f32.mrf.mxu0  ;;  %v1135_v2 = vadd.f32 %v3375_v9, %v949_v32 }
 0x158   : > { %v3381_v45 = vpop.f32.mrf.mxu2 }
 0x159   : > { %v1209_v61 = vadd.f32 %v1195_v49, %v1135_v2 }
 0x15c   : > { %v3385_v46 = vpop.f32.mrf.mxu3 }
 0x15d   : > { %v951_v40 = vadd.f32 %v3385_v46, %v3381_v45 }
 0x15f   : > { %v3390_v51 = vpop.f32.mrf.mxu0 }
 0x160   : > { %v3387_v50 = vpop.f32.mrf.mxu2 }
 0x164   : > { %v3395_v5 = vpop.f32.mrf.mxu3 }
 0x165   : > { %v954_v45 = vadd.f32 %v3395_v5, %v3387_v50 }
 0x167   : > { %v3401_v52 = vpop.f32.mrf.mxu0 }
 0x168   : > { %v3399_v17 = vpop.f32.mrf.mxu2 }
 0x16c   : > { %v3405_v56 = vpop.f32.mrf.mxu3 }
 0x16d   : > { %v956_v50 = vadd.f32 %v3405_v56, %v3399_v17 }
 0x16f   : > { %v1728_v55 = vpop.f32.mrf.mxu0  ;;  %v1138_v32 = vadd.f32 %v3401_v52, %v956_v50 }
 0x170   : > { %v1382_v62 = vpop.f32.mrf.mxu2 }
 0x171   : > { %v1402_v3 = vadd.f32 %v1382_v62, %v1205_v4 }
 0x174   : > { %v1507_v33 = vpop.f32.mrf.mxu3 }
 0x175   : > { %v1527_v6 = vadd.f32 %v1507_v33, %v1402_v3 }
 0x177   : > { %v1748_v28 = vadd.f32 %v1728_v55, %v1527_v6  ;;  %v1730_v15 = vpop.f32.mrf.mxu0 }
 0x178   : > { %v1384_v11 = vpop.f32.mrf.mxu2 }
 0x179   : > { %v1760_v13 = vadd.f32 %v3426_v7, %v1748_v28  ;;  %v1403_v18 = vadd.f32 %v1384_v11, %v1206_v37 }
 0x17b   : > { %v1768_v16 = vmax.f32 %v1760_v13, 0.0 }
 0x17c   : > { %v1509_v36 = vpop.f32.mrf.mxu3 }
 0x17d   : > { %v1776_v21 = vpack.c.bf16 %v1768_v16, %v1768_v16  ;;  %v1528_v23 = vadd.f32 %v1509_v36, %v1403_v18  ;;  %v1136_v16 = vadd.f32 %v3383_v35, %v951_v40 }
 0x17f   : > { %1785 = vst.msk [vmem:[#allocation3 + $0xc] sm:$0xf] %vm469_vm8, %v1776_v21  ;;  %v1749_v25 = vadd.f32 %v1730_v15, %v1528_v23  ;;  %v1733_v31 = vpop.f32.mrf.mxu0  ;;  %v1197_v15 = vpop.f32.mrf.mxu1 }
 0x180   : > { %v1387_v39 = vpop.f32.mrf.mxu2  ;;  %v1210_v14 = vadd.f32 %v1197_v15, %v1136_v16 }
 0x181   : > { %v1761_v26 = vadd.f32 %v3426_v7, %v1749_v25  ;;  %v1404_v54 = vadd.f32 %v1387_v39, %v1207_v29 }
 0x183   : > { %v1769_v53 = vmax.f32 %v1761_v26, 0.0 }
 0x184   : > { %v1512_v57 = vpop.f32.mrf.mxu3 }
 0x185   : > { %v1777_v27 = vpack.c.bf16 %v1769_v53, %v1769_v53  ;;  %v1529_v58 = vadd.f32 %v1512_v57, %v1404_v54 }
 0x186   : > { %v2840_v60 = vld [vmem:[#allocation3 + $0x8] sm:$0xff] }
 0x187   : > { %v2847_v62 = vld [vmem:[#allocation3 + $0x8] sm:$0xff]  ;;  %1786 = vst.msk [vmem:[#allocation3 + $0x10] sm:$0xf] %vm469_vm8, %v1777_v27  ;;  %v1750_v59 = vadd.f32 %v1733_v31, %v1529_v58  ;;  %2713 = vmatmul.msk.bf16.gmra.mxu2 %vm856_vm12, %v2840_v60  ;;  %v1735_v47 = vpop.f32.mrf.mxu0  ;;  %v1137_v31 = vadd.f32 %v3390_v51, %v954_v45  ;;  %v1200_v54 = vpop.f32.mrf.mxu1 }
 0x188   : > { %v1389_v63 = vpop.f32.mrf.mxu2  ;;  %2733 = vmatmul.msk.bf16.vlgmr.msrb.gmra.mxu3 %vm856_vm12, %v2847_v62  ;;  %v2862_v45 = vld [vmem:[#allocation3 + $0x2c] sm:$0xff] }
 0x189   : > { %v1762_v34 = vadd.f32 %v3426_v7, %v1750_v59  ;;  %v1405_v55 = vadd.f32 %v1389_v63, %v1208_v0  ;;  %v1211_v60 = vadd.f32 %v1200_v54, %v1137_v31  ;;  %v2866_v31 = vld [vmem:[#allocation3 + $0x30] sm:$0xff] }
 0x18b   : > { %v1770_v22 = vmax.f32 %v1762_v34, 0.0 }
 0x18c   : > { %v1514_v4 = vpop.f32.mrf.mxu3 }
 0x18d   : > { %v1778_v3 = vpack.c.bf16 %v1770_v22, %v1770_v22  ;;  %v1530_v33 = vadd.f32 %v1514_v4, %v1405_v55 }
 0x18e   : > { %v2844_v12 = vld [vmem:[#allocation3 + $0xc] sm:$0xff] }
 0x18f   : > { %v2851_v6 = vld [vmem:[#allocation3 + $0xc] sm:$0xff]  ;;  %1787 = vst.msk [vmem:[#allocation3 + $0x14] sm:$0xf] %vm469_vm8, %v1778_v3  ;;  %v1751_v8 = vadd.f32 %v1735_v47, %v1530_v33  ;;  %2693 = vmatmul.msk.bf16.gmra.mxu1 %vm856_vm12, %v2844_v12  ;;  %v1738_v11 = vpop.f32.mrf.mxu0  ;;  %v1202_v55 = vpop.f32.mrf.mxu1 }
 0x190   : > { %v1392_v28 = vpop.f32.mrf.mxu2  ;;  %2754 = vmatmul.msk.bf16.vlgmr.msrb.gmra.mxu0 %vm856_vm12, %v2851_v6  ;;  %v1212_v56 = vadd.f32 %v1202_v55, %v1138_v32 }
 0x191   : > { %v1763_v42 = vadd.f32 %v3426_v7, %v1751_v8  ;;  %v1406_v13 = vadd.f32 %v1392_v28, %v1209_v61 }
 0x193   : > { %v1771_v9 = vmax.f32 %v1763_v42, 0.0 }
 0x194   : > { %v1517_v37 = vpop.f32.mrf.mxu3 }
 0x195   : > { %v1779_v18 = vpack.c.bf16 %v1771_v9, %v1771_v9  ;;  %v1531_v36 = vadd.f32 %v1517_v37, %v1406_v13 }
 0x196   : > { %v2841_v19 = vld [vmem:[#allocation3 + $0x10] sm:$0xff] }
 0x197   : > { %v2848_v21 = vld [vmem:[#allocation3 + $0x10] sm:$0xff]  ;;  %1788 = vst.msk [vmem:[#allocation3 + $0x18] sm:$0xf] %vm469_vm8, %v1779_v18  ;;  %v1752_v23 = vadd.f32 %v1738_v11, %v1531_v36  ;;  %2714 = vmatmul.msk.bf16.gmra.mxu2 %vm856_vm12, %v2841_v19  ;;  %v1740_v39 = vpop.f32.mrf.mxu0 }
 0x198   : > { %v1394_v25 = vpop.f32.mrf.mxu2  ;;  %2734 = vmatmul.msk.bf16.gmra.mxu3 %vm856_vm12, %v2848_v21  ;;  %v2855_v37 = vld [vmem:[#allocation3 + $0x10] sm:$0xff]  ;;  %v2379_v21 = vld [vmem:[%s3600_s9] sm:$0xf] }
 0x199   : > { %v1764_v46 = vadd.f32 %v3426_v7, %v1752_v23  ;;  %v1407_v20 = vadd.f32 %v1394_v25, %v1210_v14  ;;  %v2438_v23 = vsel %vm869_vm7, %v2379_v21, 0 }
 0x19a   : > { %2447 = vmatpush.bf16.msra.mxu1 %v2438_v23 }
 0x19b   : > { %v1772_v35 = vmax.f32 %v1764_v46, 0.0 }
 0x19c   : > { %v1519_v26 = vpop.f32.mrf.mxu3 }
 0x19d   : > { %v1780_v29 = vpack.c.bf16 %v1772_v35, %v1772_v35  ;;  %v1532_v53 = vadd.f32 %v1519_v26, %v1407_v20  ;;  %v2879_v26 = vld [vmem:[%s3593_s2] ss:$0 sm:$0xff] }
 0x19e   : > { %v2845_v57 = vld [vmem:[#allocation3 + $0x14] sm:$0xff]  ;;  %v583_v55 = vadd.f32 %v2879_v26, %v3322_v41  ;;  %v590_v41 = vadd.f32 %v2879_v26, %v3357_v48 }
 0x19f   : > { %v2852_v43 = vld [vmem:[#allocation3 + $0x14] sm:$0xff]  ;;  %1789 = vst.msk [vmem:[#allocation3 + $0x1c] sm:$0xf] %vm469_vm8, %v1780_v29  ;;  %v1753_v27 = vadd.f32 %v1740_v39, %v1532_v53  ;;  %2694 = vmatmul.msk.bf16.gmra.mxu1 %vm856_vm12, %v2845_v57  ;;  %v1743_v59 = vpop.f32.mrf.mxu0  ;;  %v1857_v39 = vpop.f32.mrf.mxu1  ;;  %v573_v29 = vadd.f32 %v2879_v26, %v3359_v24  ;;  %v575_v53 = vadd.f32 %v2879_v26, %v3363_v30 }
 0x1a0   : > { %v1397_v58 = vpop.f32.mrf.mxu2  ;;  %2755 = vmatmul.msk.bf16.gmra.mxu0 %vm856_vm12, %v2852_v43  ;;  %v2859_v13 = vld [vmem:[#allocation3 + $0x14] sm:$0xff]  ;;  %v2380_v43 = vld [vmem:[%s3601_s10] sm:$0xf]  ;;  %v578_v24 = vadd.f32 %v2879_v26, %v3371_v38  ;;  %v580_v30 = vadd.f32 %v2879_v26, %v3379_v44  ;;  %v596_v38 = vmax.f32 %v583_v55, 0.0 }
 0x1a1   : > { %v1765_v5 = vadd.f32 %v3426_v7, %v1753_v27  ;;  %v1408_v62 = vadd.f32 %v1397_v58, %v1211_v60  ;;  %v592_v54 = vmax.f32 %v573_v29, 0.0  ;;  %v593_v57 = vmax.f32 %v575_v53, 0.0 }
 0x1a2   : > { %v2394_v27 = vsel %vm869_vm7, %v2380_v43, 0  ;;  %v594_v60 = vmax.f32 %v578_v24, 0.0 }
 0x1a3   : > { %v1773_v51 = vmax.f32 %v1765_v5, 0.0  ;;  %v600_v58 = vpack.c.bf16 %v593_v57, %v592_v54  ;;  %2403 = vmatpush.bf16.msra.mxu0 %v2394_v27  ;;  %v3524_v27 = vld [vmem:[%s3599_s8] ss:$0 sm:$0xff] }
 0x1a4   : > { %v1522_v63 = vpop.f32.mrf.mxu3 }
 0x1a5   : > { %v1781_v34 = vpack.c.bf16 %v1773_v51, %v1773_v51  ;;  %v1533_v47 = vadd.f32 %v1522_v63, %v1408_v62  ;;  %v595_v51 = vmax.f32 %v580_v30, 0.0 }
 0x1a6   : > { %v2842_v0 = vld [vmem:[#allocation3 + $0x18] sm:$0xff] }
 0x1a7   : > { %v2849_v49 = vld [vmem:[#allocation3 + $0x18] sm:$0xff]  ;;  %1790 = vst.msk [vmem:[#allocation3 + $0x20] sm:$0xf] %vm469_vm8, %v1781_v34  ;;  %v1754_v22 = vadd.f32 %v1743_v59, %v1533_v47  ;;  %2715 = vmatmul.msk.bf16.gmra.mxu2 %vm856_vm12, %v2842_v0  ;;  %v1745_v6 = vpop.f32.mrf.mxu0  ;;  %v1859_v5 = vpop.f32.mrf.mxu1  ;;  %v601_v34 = vpack.c.bf16 %v595_v51, %v594_v60 }
 0x1a8   : > { %v1399_v4 = vpop.f32.mrf.mxu2  ;;  %2735 = vmatmul.msk.bf16.gmra.mxu3 %vm856_vm12, %v2849_v49  ;;  %v2863_v18 = vld [vmem:[#allocation3 + $0x18] sm:$0xff] }
 0x1a9   : > { %v1766_v17 = vadd.f32 %v3426_v7, %v1754_v22  ;;  %v1409_v3 = vadd.f32 %v1399_v4, %v1212_v56  ;;  %v585_v4 = vadd.f32 %v2879_v26, %v3332_v1 }
 0x1ab   : > { %v1774_v2 = vmax.f32 %v1766_v17, 0.0  ;;  %v597_v17 = vmax.f32 %v585_v4, 0.0 }
 0x1ac   : > { %v1524_v33 = vpop.f32.mrf.mxu3 }
 0x1ad   : > { %v1782_v52 = vpack.c.bf16 %v1774_v2, %v1774_v2  ;;  %v1534_v12 = vadd.f32 %v1524_v33, %v1409_v3  ;;  %v602_v33 = vpack.c.bf16 %v597_v17, %v596_v38 }
 0x1ae   : > { %v2846_v8 = vld [vmem:[#allocation3 + $0x1c] sm:$0xff] }
 0x1af   : > { %v2853_v28 = vld [vmem:[#allocation3 + $0x1c] sm:$0xff]  ;;  %1791 = vst.msk [vmem:[#allocation3 + $0x24] sm:$0xf] %vm469_vm8, %v1782_v52  ;;  %v1755_v40 = vadd.f32 %v1745_v6, %v1534_v12  ;;  %2695 = vmatmul.msk.bf16.gmra.mxu1 %vm856_vm12, %v2846_v8 }
 0x1b0   : > { %2756 = vmatmul.msk.bf16.gmra.mxu0 %vm856_vm12, %v2853_v28  ;;  %v2860_v16 = vld [vmem:[#allocation3 + $0x1c] sm:$0xff]  ;;  %v1921_v14 = vpop.f32.mrf.mxu2  ;;  %v588_v28 = vadd.f32 %v2879_v26, %v3342_v10 }
 0x1b1   : > { %v1767_v42 = vadd.f32 %v3426_v7, %v1755_v40  ;;  %v2856_v7 = vld [vmem:[#allocation3 + $0x18] sm:$0xff]  ;;  %v1922_v20 = vadd.f32 %v1921_v14, %v1857_v39  ;;  %v599_v40 = vmax.f32 %v590_v41, 0.0 }
 0x1b2   : > { %v598_v1 = vmax.f32 %v588_v28, 0.0 }
 0x1b3   : > { %v1775_v11 = vmax.f32 %v1767_v42, 0.0 }
 0x1b5   : > { %v1783_v61 = vpack.c.bf16 %v1775_v11, %v1775_v11 }
 0x1b6   : > { %v2850_v9 = vld [vmem:[#allocation3 + $0x20] sm:$0xff] }
 0x1b7   : > { %1792 = vst.msk [vmem:[#allocation3 + $0x28] sm:$0xf] %vm469_vm8, %v1783_v61  ;;  %2796 = vmatmul.msk.bf16.vlgmr.msra.gmra.mxu2 %vm856_vm12, %v2859_v13  ;;  %v2864_v19 = vld [vmem:[#allocation3 + $0x20] sm:$0xff]  ;;  %v603_v13 = vpack.c.bf16 %v599_v40, %v598_v1 }
 0x1b8   : > { %2736 = vmatmul.msk.bf16.gmra.mxu3 %vm856_vm12, %v2850_v9  ;;  %v2857_v25 = vld [vmem:[#allocation3 + $0x20] sm:$0xff]  ;;  %v1923_v50 = vpop.f32.mrf.mxu2 }
 0x1be   : > { %v2854_v15 = vld [vmem:[#allocation3 + $0x24] sm:$0xff] }
 0x1bf   : > { %2775 = vmatmul.msk.bf16.vlgmr.msrb.gmra.mxu1 %vm856_vm12, %v2855_v37  ;;  %v2861_v36 = vld [vmem:[#allocation3 + $0x24] sm:$0xff] }
 0x1c0   : > { %2757 = vmatmul.msk.bf16.gmra.mxu0 %vm856_vm12, %v2854_v15  ;;  %v2865_v46 = vld [vmem:[#allocation3 + $0x28] sm:$0xff] }
 0x1c1   : > { %v2858_v35 = vld [vmem:[#allocation3 + $0x28] sm:$0xff] }
 0x1c7   : > { %2797 = vmatmul.msk.bf16.gmra.mxu2 %vm856_vm12, %v2860_v16 }
 0x1c8   : > { %2817 = vmatmul.msk.bf16.vlgmr.msra.gmra.mxu3 %vm856_vm12, %v2863_v18 }
 0x1cf   : > { %2776 = vmatmul.msk.bf16.gmra.mxu1 %vm856_vm12, %v2856_v7 }
 0x1d7   : > { %2798 = vmatmul.msk.bf16.gmra.mxu2 %vm856_vm12, %v2861_v36 }
 0x1d8   : > { %2818 = vmatmul.msk.bf16.gmra.mxu3 %vm856_vm12, %v2864_v19 }
 0x1df   : > { %2777 = vmatmul.msk.bf16.gmra.mxu1 %vm856_vm12, %v2857_v25 }
 0x1e7   : > { %2799 = vmatmul.msk.bf16.gmra.mxu2 %vm856_vm12, %v2862_v45 }
 0x1e8   : > { %2819 = vmatmul.msk.bf16.gmra.mxu3 %vm856_vm12, %v2865_v46  ;;  %v1924_v46 = vadd.f32 %v1923_v50, %v1859_v5 }
 0x1ef   : > { %2778 = vmatmul.msk.bf16.gmra.mxu1 %vm856_vm12, %v2858_v35 }
 0x1f8   : > { %2820 = vmatmul.msk.bf16.gmra.mxu3 %vm856_vm12, %v2866_v31 }
 0x1ff   : > { %2825 = vmatmul.msk.bf16.vlgmr.msra.gmra.mxu1 %vm856_vm12, %v600_v58 }
 0x20a   : > { %v1926_v62 = vpop.f32.mrf.mxu2 }
 0x20b   : > { %v1996_v59 = vpop.f32.mrf.mxu3 }
 0x20c   : > { %v2016_v63 = vadd.f32 %v1996_v59, %v1922_v20  ;;  %v1862_v32 = vpop.f32.mrf.mxu1 }
 0x20d   : > { %v1927_v47 = vadd.f32 %v1926_v62, %v1862_v32  ;;  %v2078_v37 = vpop.f32.mrf.mxu0 }
 0x20e   : > { %v2098_v39 = vadd.f32 %v2078_v37, %v2016_v63 }
 0x20f   : > { %2826 = vmatmul.msk.bf16.gmra.mxu1 %vm856_vm12, %v601_v34 }
 0x212   : > { %v1928_v0 = vpop.f32.mrf.mxu2 }
 0x213   : > { %v1998_v49 = vpop.f32.mrf.mxu3 }
 0x214   : > { %v1864_v22 = vpop.f32.mrf.mxu1  ;;  %v2017_v35 = vadd.f32 %v1998_v49, %v1924_v46 }
 0x215   : > { %v2080_v48 = vpop.f32.mrf.mxu0  ;;  %v1929_v51 = vadd.f32 %v1928_v0, %v1864_v22 }
 0x216   : > { %v2099_v31 = vadd.f32 %v2080_v48, %v2017_v35 }
 0x21a   : > { %v1931_v44 = vpop.f32.mrf.mxu2 }
 0x21b   : > { %v2001_v56 = vpop.f32.mrf.mxu3 }
 0x21c   : > { %v2018_v2 = vadd.f32 %v2001_v56, %v1927_v47  ;;  %v1867_v3 = vpop.f32.mrf.mxu1 }
 0x21d   : > { %v1932_v52 = vadd.f32 %v1931_v44, %v1867_v3  ;;  %v2083_v14 = vpop.f32.mrf.mxu0 }
 0x21e   : > { %v2100_v59 = vadd.f32 %v2083_v14, %v2018_v2 }
 0x21f   : > { %2827 = vmatmul.msk.bf16.gmra.mxu1 %vm856_vm12, %v602_v33 }
 0x222   : > { %v3506_v12 = vpop.f32.mrf.mxu2 }
 0x223   : > { %v2003_v6 = vpop.f32.mrf.mxu3 }
 0x224   : > { %v3508_v8 = vpop.f32.mrf.mxu1  ;;  %v2019_v63 = vadd.f32 %v2003_v6, %v1929_v51 }
 0x225   : > { %v2085_v58 = vpop.f32.mrf.mxu0  ;;  %v1934_v41 = vadd.f32 %v3506_v12, %v3508_v8 }
 0x226   : > { %v2101_v17 = vadd.f32 %v2085_v58, %v2019_v63 }
 0x22a   : > { %v1936_v42 = vpop.f32.mrf.mxu2 }
 0x22b   : > { %v2006_v11 = vpop.f32.mrf.mxu3 }
 0x22c   : > { %v2020_v61 = vadd.f32 %v2006_v11, %v1932_v52  ;;  %v1872_v9 = vpop.f32.mrf.mxu1 }
 0x22d   : > { %v1937_v15 = vadd.f32 %v1936_v42, %v1872_v9  ;;  %v2088_v4 = vpop.f32.mrf.mxu0 }
 0x22e   : > { %v2102_v42 = vadd.f32 %v2088_v4, %v2020_v61 }
 0x22f   : > { %2828 = vmatmul.msk.bf16.gmra.mxu1 %vm856_vm12, %v603_v13 }
 0x232   : > { %v3513_v16 = vpop.f32.mrf.mxu2 }
 0x233   : > { %v2008_v18 = vpop.f32.mrf.mxu3 }
 0x234   : > { %v3515_v7 = vpop.f32.mrf.mxu1  ;;  %v2021_v11 = vadd.f32 %v2008_v18, %v1934_v41 }
 0x235   : > { %v2090_v28 = vpop.f32.mrf.mxu0  ;;  %v1939_v35 = vadd.f32 %v3513_v16, %v3515_v7 }
 0x23a   : > { %v2244_v10 = vpop.f32.mrf.mxu2 }
 0x23b   : > { %v2011_v36 = vpop.f32.mrf.mxu3 }
 0x23c   : > { %v3517_v19 = vadd.f32 %v2011_v36, %v1937_v15  ;;  %v2161_v21 = vpop.f32.mrf.mxu1 }
 0x23d   : > { %v2181_v20 = vadd.f32 %v2161_v21, %v2098_v39 }
 0x23f   : > { %v2264_v54 = vadd.f32 %v2244_v10, %v2181_v20  ;;  %v2103_v10 = vadd.f32 %v2090_v28, %v2021_v11  ;;  %v2483_v11 = vld [vmem:[%s2979_s30 + $0x10] sm:$0xff] }
 0x242   : > { %v2246_v25 = vpop.f32.mrf.mxu2 }
 0x243   : > { %v3519_v23 = vpop.f32.mrf.mxu3 }
 0x244   : > { %v2163_v45 = vpop.f32.mrf.mxu1 }
 0x245   : > { %v2182_v53 = vadd.f32 %v2163_v45, %v2099_v31  ;;  %v2093_v45 = vpop.f32.mrf.mxu0  ;;  %v2023_v31 = vadd.f32 %v3519_v23, %v1939_v35 }
 0x247   : > { %v2265_v24 = vadd.f32 %v2246_v25, %v2182_v53 }
 0x24a   : > { %v2249_v57 = vpop.f32.mrf.mxu2 }
 0x24b   : > { %v2327_v26 = vpop.f32.mrf.mxu3 }
 0x24c   : > { %v2166_v29 = vpop.f32.mrf.mxu1  ;;  %v2347_v43 = vadd.f32 %v2327_v26, %v2264_v54  ;;  %v2104_v26 = vadd.f32 %v2093_v45, %v3517_v19 }
 0x24d   : > { %v2183_v49 = vadd.f32 %v2166_v29, %v2100_v59  ;;  %v2095_v54 = vpop.f32.mrf.mxu0 }
 0x24e   : > { %v2359_v50 = vadd.f32 %v3524_v27, %v2347_v43 }
 0x24f   : > { %v2266_v3 = vadd.f32 %v2249_v57, %v2183_v49  ;;  %v3547_v49 = vld [vmem:[%s3602_s11] ss:$0 sm:$0xff] }
 0x250   : > { %v2367_v32 = vmax.f32 %v2359_v50, 0.0 }
 0x252   : > { %v2251_v47 = vpop.f32.mrf.mxu2 }
 0x253   : > { %v2329_v30 = vpop.f32.mrf.mxu3 }
 0x254   : > { %v2348_v5 = vadd.f32 %v2329_v30, %v2265_v24  ;;  %v2168_v60 = vpop.f32.mrf.mxu1  ;;  %v2105_v30 = vadd.f32 %v2095_v54, %v2023_v31 }
 0x255   : > { %v2184_v56 = vadd.f32 %v2168_v60, %v2101_v17  ;;  %v2481_v17 = vld [vmem:[%s2979_s30] sm:$0xff] }
 0x256   : > { %v2360_v62 = vadd.f32 %v3524_v27, %v2348_v5 }
 0x257   : > { %v2267_v52 = vadd.f32 %v2251_v47, %v2184_v56 }
 0x258   : > { %v2368_v34 = vmax.f32 %v2360_v62, 0.0 }
 0x25a   : > { %v2375_v55 = vpack.c.bf16 %v2368_v34, %v2367_v32  ;;  %v2254_v0 = vpop.f32.mrf.mxu2 }
 0x25b   : > { %v2332_v38 = vpop.f32.mrf.mxu3 }
 0x25c   : > { %2821 = vmatmul.msk.bf16.vlgmr.msra.gmra.mxu0 %vm856_vm12, %v2375_v55  ;;  %v2171_v44 = vpop.f32.mrf.mxu1  ;;  %v2349_v33 = vadd.f32 %v2332_v38, %v2266_v3 }
 0x25d   : > { %v2185_v15 = vadd.f32 %v2171_v44, %v2102_v42 }
 0x25e   : > { %v2361_v2 = vadd.f32 %v3524_v27, %v2349_v33 }
 0x25f   : > { %v2268_v25 = vadd.f32 %v2254_v0, %v2185_v15 }
 0x260   : > { %v2369_v9 = vmax.f32 %v2361_v2, 0.0 }
 0x262   : > { %v2256_v48 = vpop.f32.mrf.mxu2 }
 0x263   : > { %v2334_v22 = vpop.f32.mrf.mxu3 }
 0x264   : > { %v2350_v6 = vadd.f32 %v2334_v22, %v2267_v52  ;;  %v2173_v40 = vpop.f32.mrf.mxu1  ;;  %v2482_v22 = vld [vmem:[%s2979_s30 + $0x8] sm:$0xff] }
 0x265   : > { %v2186_v21 = vadd.f32 %v2173_v40, %v2103_v10 }
 0x266   : > { %v2362_v1 = vadd.f32 %v3524_v27, %v2350_v6 }
 0x267   : > { %v2269_v12 = vadd.f32 %v2256_v48, %v2186_v21  ;;  %v2484_v21 = vld [vmem:[%s2979_s30 + $0x18] sm:$0xff] }
 0x268   : > { %v2370_v13 = vmax.f32 %v2362_v1, 0.0 }
 0x26a   : > { %v2376_v37 = vpack.c.bf16 %v2370_v13, %v2369_v9  ;;  %v2259_v18 = vpop.f32.mrf.mxu2 }
 0x26b   : > { %v2337_v36 = vpop.f32.mrf.mxu3 }
 0x26c   : > { %2822 = vmatmul.msk.bf16.gmra.mxu0 %vm856_vm12, %v2376_v37  ;;  %v2351_v46 = vadd.f32 %v2337_v36, %v2268_v25  ;;  %v2176_v14 = vpop.f32.mrf.mxu1 }
 0x26d   : > { %v2187_v57 = vadd.f32 %v2176_v14, %v2104_v26 }
 0x26e   : > { %v2363_v39 = vadd.f32 %v3524_v27, %v2351_v46 }
 0x26f   : > { %v2270_v50 = vadd.f32 %v2259_v18, %v2187_v57 }
 0x270   : > { %v2371_v29 = vmax.f32 %v2363_v39, 0.0 }
 0x272   : > { %v2261_v60 = vpop.f32.mrf.mxu2 }
 0x273   : > { %v2339_v8 = vpop.f32.mrf.mxu3 }
 0x274   : > { %v2352_v61 = vadd.f32 %v2339_v8, %v2269_v12  ;;  %v2178_v58 = vpop.f32.mrf.mxu1 }
 0x275   : > { %v2188_v5 = vadd.f32 %v2178_v58, %v2105_v30 }
 0x276   : > { %v2364_v20 = vadd.f32 %v3524_v27, %v2352_v61  ;;  %v2485_v61 = vld [vmem:[%s2979_s30 + $0x20] sm:$0xff] }
 0x277   : > { %v2271_v7 = vadd.f32 %v2261_v60, %v2188_v5  ;;  %v2487_v5 = vld [vmem:[%s2979_s30 + $0x30] sm:$0xff] }
 0x278   : > { %v2372_v53 = vmax.f32 %v2364_v20, 0.0 }
 0x27a   : > { %v2377_v43 = vpack.c.bf16 %v2372_v53, %v2371_v29  ;;  %v2486_v53 = vld [vmem:[%s2979_s30 + $0x28] sm:$0xff] }
 0x27b   : > { %v2342_v24 = vpop.f32.mrf.mxu3 }
 0x27c   : > { %2823 = vmatmul.msk.bf16.gmra.mxu0 %vm856_vm12, %v2377_v43  ;;  %v2353_v16 = vadd.f32 %v2342_v24, %v2270_v50  ;;  %v2449_v34 = vpop.f32.mrf.mxu1 }
 0x27e   : > { %v2365_v19 = vadd.f32 %v3524_v27, %v2353_v16 }
 0x280   : > { %v2373_v59 = vmax.f32 %v2365_v19, 0.0 }
 0x283   : > { %v2344_v51 = vpop.f32.mrf.mxu3 }
 0x284   : > { %v2354_v23 = vadd.f32 %v2344_v51, %v2271_v7  ;;  %v2451_v47 = vpop.f32.mrf.mxu1 }
 0x286   : > { %v2366_v62 = vadd.f32 %v3524_v27, %v2354_v23 }
 0x288   : > { %v2374_v63 = vmax.f32 %v2366_v62, 0.0 }
 0x28a   : > { %v2378_v32 = vpack.c.bf16 %v2374_v63, %v2373_v59  ;;  %v2488_v59 = vld [vmem:[%s2979_s30 + $0x38] sm:$0xff] }
 0x28c   : > { %2824 = vmatmul.msk.bf16.gmra.mxu0 %vm856_vm12, %v2378_v32  ;;  %v2454_v27 = vpop.f32.mrf.mxu1 }
 0x294   : > { %v2456_v28 = vpop.f32.mrf.mxu1 }
 0x29c   : > { %v2459_v10 = vpop.f32.mrf.mxu1 }
 0x2a4   : > { %v2461_v39 = vpop.f32.mrf.mxu1 }
 0x2ac   : > { %v2464_v57 = vpop.f32.mrf.mxu1 }
 0x2b4   : > { %v2466_v7 = vpop.f32.mrf.mxu1 }
 0x2d9   : > { %v2405_v55 = vpop.f32.mrf.mxu0 }
 0x2da   : > { %v2450_v4 = vadd.f32 %v2449_v34, %v2405_v55 }
 0x2dc   : > { %v2473_v38 = vadd.f32 %v3547_v49, %v2450_v4 }
 0x2de   : > { %v2489_v44 = vmul.f32 0.1, %v2473_v38 }
 0x2e0   : > { %v2497_v56 = vadd.f32 %v2489_v44, %v2481_v17 }
 0x2e1   : > { %v2407_v3 = vpop.f32.mrf.mxu0 }
 0x2e2   : > { %v2505_v33 = vmax.f32 %v2497_v56, 0.0  ;;  %v2452_v52 = vadd.f32 %v2451_v47, %v2407_v3 }
 0x2e4   : > { %2513 = vst.msk [vmem:[%s3556_s15] sm:$0xff] %vm501_vm0, %v2505_v33  ;;  %v2474_v0 = vadd.f32 %v3547_v49, %v2452_v52 }
 0x2e6   : > { %v2490_v2 = vmul.f32 0.1, %v2474_v0 }
 0x2e8   : > { %v2498_v6 = vadd.f32 %v2490_v2, %v2482_v22 }
 0x2e9   : > { %v2410_v41 = vpop.f32.mrf.mxu0 }
 0x2ea   : > { %v2506_v1 = vmax.f32 %v2498_v6, 0.0  ;;  %v2455_v40 = vadd.f32 %v2454_v27, %v2410_v41 }
 0x2ec   : > { %2514 = vst.msk [vmem:[%s3556_s15 + $0x8] sm:$0xff] %vm501_vm0, %v2506_v1  ;;  %v2475_v42 = vadd.f32 %v3547_v49, %v2455_v40 }
 0x2ee   : > { %v2491_v9 = vmul.f32 0.1, %v2475_v42 }
 0x2f0   : > { %v2499_v13 = vadd.f32 %v2491_v9, %v2483_v11 }
 0x2f1   : > { %v2412_v15 = vpop.f32.mrf.mxu0 }
 0x2f2   : > { %v2507_v37 = vmax.f32 %v2499_v13, 0.0  ;;  %v2457_v36 = vadd.f32 %v2456_v28, %v2412_v15 }
 0x2f4   : > { %2515 = vst.msk [vmem:[%s3556_s15 + $0x10] sm:$0xff] %vm501_vm0, %v2507_v37  ;;  %v2476_v48 = vadd.f32 %v3547_v49, %v2457_v36 }
 0x2f6   : > { %v2492_v25 = vmul.f32 0.1, %v2476_v48 }
 0x2f8   : > { %v2500_v45 = vadd.f32 %v2492_v25, %v2484_v21 }
 0x2f9   : > { %v2415_v46 = vpop.f32.mrf.mxu0 }
 0x2fa   : > { %v2508_v14 = vmax.f32 %v2500_v45, 0.0  ;;  %v2460_v12 = vadd.f32 %v2459_v10, %v2415_v46 }
 0x2fc   : > { %2516 = vst.msk [vmem:[%s3556_s15 + $0x18] sm:$0xff] %vm501_vm0, %v2508_v14  ;;  %v2477_v8 = vadd.f32 %v3547_v49, %v2460_v12 }
 0x2fe   : > { %v2493_v18 = vmul.f32 0.1, %v2477_v8 }
 0x300   : > { %v2501_v35 = vadd.f32 %v2493_v18, %v2485_v61 }
 0x301   : > { %v2417_v20 = vpop.f32.mrf.mxu0 }
 0x302   : > { %v2509_v26 = vmax.f32 %v2501_v35, 0.0  ;;  %v2462_v31 = vadd.f32 %v2461_v39, %v2417_v20 }
 0x304   : > { %2517 = vst.msk [vmem:[%s3556_s15 + $0x20] sm:$0xff] %vm501_vm0, %v2509_v26  ;;  %v2478_v29 = vadd.f32 %v3547_v49, %v2462_v31 }
 0x306   : > { %v2494_v54 = vmul.f32 0.1, %v2478_v29 }
 0x308   : > { %v2502_v43 = vadd.f32 %v2494_v54, %v2486_v53 }
 0x309   : > { %v2420_v58 = vpop.f32.mrf.mxu0 }
 0x30a   : > { %v2510_v24 = vmax.f32 %v2502_v43, 0.0  ;;  %v2465_v30 = vadd.f32 %v2464_v57, %v2420_v58 }
 0x30c   : > { %2518 = vst.msk [vmem:[%s3556_s15 + $0x28] sm:$0xff] %vm501_vm0, %v2510_v24  ;;  %v2479_v50 = vadd.f32 %v3547_v49, %v2465_v30 }
 0x30e   : > { %v2495_v60 = vmul.f32 0.1, %v2479_v50 }
 0x310   : > { %v2503_v16 = vadd.f32 %v2495_v60, %v2487_v5 }
 0x311   : > { %v2422_v51 = vpop.f32.mrf.mxu0 }
 0x312   : > { %v2511_v19 = vmax.f32 %v2503_v16, 0.0  ;;  %v2467_v23 = vadd.f32 %v2466_v7, %v2422_v51 }
 0x314   : > { %2519 = vst.msk [vmem:[%s3556_s15 + $0x30] sm:$0xff] %vm501_vm0, %v2511_v19  ;;  %v2480_v62 = vadd.f32 %v3547_v49, %v2467_v23 }
 0x316   : > { %v2496_v63 = vmul.f32 0.1, %v2480_v62 }
 0x318   : > { %v2504_v32 = vadd.f32 %v2496_v63, %v2488_v59 }
 0x31a   : > { %v2512_v34 = vmax.f32 %v2504_v32, 0.0 }
 0x31c   : > { %2520 = vst.msk [vmem:[%s3556_s15 + $0x38] sm:$0xff] %vm501_vm0, %v2512_v34 }
 0x31d PF: > { %s22_s21 = sadd.s32 1, %s2889_s21  }
 0x31e   : > { %p19_p4 = scmp.ge.s32.totalorder %s22_s21, 4  }
 0x320   :  { %21 = sbr.rel (!%p19_p4) target bundleno = 1 (0x1), region = 117 }

</bundles_post_ra>
